<compile_context>
chip_gen: v5e
topology: v5e:2x2
jax: 0.10.0
libtpu: 0.0.40
codegen_flags: <defaults>
</compile_context>

<pallas_src>
import math
import jax
import jax.numpy as jnp
from jax.experimental import pallas as pl
from jax.experimental.pallas import tpu as pltpu

# ---- hyperparameters (match the PyTorch module defaults) ----
VOCAB = 27
VOCAB_PAD = 128                # lane-dense logits slab, sliced back to 27 outside
N_EMBD = 64
N_HEAD = 8
HEAD_SIZE = N_EMBD // N_HEAD   # 8
N_LAYER = 2
MAX_LEN = 8
EPS = 1e-5                     # nn.LayerNorm default
BLOCK_B = 128                  # sequences per grid step (capped at batch size)


def _layer_norm(x, g, b):
    mu = jnp.mean(x, axis=-1, keepdims=True)
    var = jnp.mean((x - mu) ** 2, axis=-1, keepdims=True)
    return (x - mu) * jax.lax.rsqrt(var + EPS) * g + b


def transformer_kernel(x_ref, ebig_ref, asum_ref, gsm_ref, *refs):
    """refs = [<26 per-layer params>, <4 final params (lm head lane-padded)>, out_ref]."""
    o_ref = refs[-1]
    plist = list(refs[:-1])

    def nxt():
        return plist.pop(0)[...]

    BB, T, D = x_ref.shape
    R = BB * T
    x = x_ref[...].reshape(R, D)

    ebig = ebig_ref[...]       # (T*D, H*T)  score selector (scale folded in)
    asum = asum_ref[...]       # (H*T, H*T)  per-head group-sum broadcast
    gsm = gsm_ref[...]         # (H*T, T*D)  attention-weight smear over head lanes

    for _ in range(N_LAYER):
        ln1_g, ln1_b = nxt(), nxt()
        wq, wk, wv = nxt(), nxt(), nxt()
        wp, bp = nxt(), nxt()
        ln2_g, ln2_b = nxt(), nxt()
        w1, b1 = nxt(), nxt()
        w2, b2 = nxt(), nxt()

        # --- multi-head self-attention (no causal mask, per the PyTorch code) ---
        h = _layer_norm(x, ln1_g, ln1_b)                                   # (R, D)
        q = jnp.dot(h, wq, preferred_element_type=jnp.float32)            # (R, D)
        k = jnp.dot(h, wk, preferred_element_type=jnp.float32)
        v = jnp.dot(h, wv, preferred_element_type=jnp.float32)
        k3 = k.reshape(BB, T, D)
        v3 = v.reshape(BB, T, D)

        # Scores: P_cat[r, j*D+d] = q[r, d] * k[seq(r), j, d]   (VPU products),
        # then one tall selector matmul does the per-head segmented reduction:
        #   s[r, h*T+j] = scale * sum_{d in head h} q[r,d] * k[seq(r),j,d]
        parts = []
        for j in range(T):
            kj = jnp.broadcast_to(k3[:, j:j + 1, :], (BB, T, D)).reshape(R, D)
            parts.append(q * kj)
        p_cat = jnp.concatenate(parts, axis=-1)                            # (R, T*D)
        s = jnp.dot(p_cat, ebig, preferred_element_type=jnp.float32)      # (R, H*T)

        # Softmax over key positions (lanes h*T .. h*T+T-1 share one head).
        # Row-wise max is used for all heads: softmax is invariant to the
        # shift, so the result is exact; clamp keeps exp() well-defined.
        m = jnp.max(s, axis=-1, keepdims=True)
        e = jnp.exp(jnp.maximum(s - m, -60.0))
        denom = jnp.dot(e, asum, preferred_element_type=jnp.float32)      # group sums
        w = e * pl.reciprocal(denom, approx=True)                          # (R, H*T)

        # AV: attn[r, h*HS+d] = sum_j w[r, h*T+j] * v[seq(r), j, h*HS+d]
        wg = jnp.dot(w, gsm, preferred_element_type=jnp.float32)          # (R, T*D)
        attn = None
        for j in range(T):
            vj = jnp.broadcast_to(v3[:, j:j + 1, :], (BB, T, D)).reshape(R, D)
            contrib = wg[:, j * D:(j + 1) * D] * vj
            attn = contrib if attn is None else attn + contrib             # (R, D)

        attn = jnp.dot(attn, wp, preferred_element_type=jnp.float32) + bp  # out proj
        x = x + attn  # dropout -> identity

        # --- feed-forward ---
        h2 = _layer_norm(x, ln2_g, ln2_b)
        ff = jnp.maximum(jnp.dot(h2, w1, preferred_element_type=jnp.float32) + b1, 0.0)
        ff = jnp.dot(ff, w2, preferred_element_type=jnp.float32) + b2
        x = x + ff  # dropout -> identity

    lnf_g, lnf_b = nxt(), nxt()
    w_lm, b_lm = nxt(), nxt()                 # lane-padded to VOCAB_PAD
    x = _layer_norm(x, lnf_g, lnf_b)
    logits = jnp.dot(x, w_lm, preferred_element_type=jnp.float32) + b_lm   # (R, 128)
    o_ref[...] = logits.reshape(BB, T, VOCAB_PAD)


def _attention_selectors(T):
    """Constant 0/1 selector matrices that turn per-head score / AV
    contractions into shared-weight matmuls.  Built for sequence length T."""
    D, HS, H = N_EMBD, HEAD_SIZE, N_HEAD
    scale = float(HS) ** -0.5

    # E_big: (T*D, H*T).  E_big[j2*D + d, h*T + j] = scale iff (d//HS == h and j2 == j)
    r = jnp.arange(T * D)
    c = jnp.arange(H * T)
    j_r, d_r = r // D, r % D
    h_r = d_r // HS
    h_c, j_c = c // T, c % T
    e_big = ((h_r[:, None] == h_c[None, :]) &
             (j_r[:, None] == j_c[None, :])).astype(jnp.float32) * scale

    # A: (H*T, H*T).  A[a, c] = 1 iff a//T == c//T   (per-head sum, broadcast in-group)
    a = jnp.arange(H * T)
    a_sum = ((a[:, None] // T) == (a[None, :] // T)).astype(jnp.float32)

    # G: (H*T, T*D).  G[h*T + jj, j*D + d] = 1 iff (jj == j and d//HS == h)
    g_r = jnp.arange(H * T)
    h_g, j_g = g_r // T, g_r % T
    c2 = jnp.arange(T * D)
    j_c2, d_c2 = c2 // D, c2 % D
    h_c2 = d_c2 // HS
    g_sm = ((j_g[:, None] == j_c2[None, :]) &
            (h_g[:, None] == h_c2[None, :])).astype(jnp.float32)
    return e_big, a_sum, g_sm


def init_params(key):
    """Deterministic synthetic parameters (normal(0, 0.02) weights, zero biases,
    unit LayerNorm gains).  Returns (embedding_table, flat_param_list)."""
    keys = iter(jax.random.split(key, 64))

    def nrm(shape):
        return jax.random.normal(next(keys), shape, jnp.float32) * 0.02

    emb = nrm((VOCAB, N_EMBD))
    params = []
    for _ in range(N_LAYER):
        params += [jnp.ones((1, N_EMBD), jnp.float32),    # ln1 gamma
                   jnp.zeros((1, N_EMBD), jnp.float32)]   # ln1 beta
        params += [nrm((N_EMBD, N_HEAD * HEAD_SIZE)),     # Wq (heads concatenated)
                   nrm((N_EMBD, N_HEAD * HEAD_SIZE)),     # Wk
                   nrm((N_EMBD, N_HEAD * HEAD_SIZE))]     # Wv
        params += [nrm((N_EMBD, N_EMBD)),                 # attention output proj W
                   jnp.zeros((1, N_EMBD), jnp.float32)]   # proj bias
        params += [jnp.ones((1, N_EMBD), jnp.float32),    # ln2 gamma
                   jnp.zeros((1, N_EMBD), jnp.float32)]   # ln2 beta
        params += [nrm((N_EMBD, 4 * N_EMBD)),             # FFN W1
                   jnp.zeros((1, 4 * N_EMBD), jnp.float32),
                   nrm((4 * N_EMBD, N_EMBD)),             # FFN W2
                   jnp.zeros((1, N_EMBD), jnp.float32)]
    params += [jnp.ones((1, N_EMBD), jnp.float32),        # ln_f gamma
               jnp.zeros((1, N_EMBD), jnp.float32),       # ln_f beta
               nrm((N_EMBD, VOCAB)),                      # lm_head W
               jnp.zeros((1, VOCAB), jnp.float32)]        # lm_head b
    return emb, params


def positional_encoding(max_length, n_embd):
    # Matches the PyTorch module: note log(1000), not 10000.
    position = jnp.arange(max_length, dtype=jnp.float32)[:, None]
    div_term = jnp.exp(jnp.arange(0, n_embd, 2, dtype=jnp.float32)
                       * (-math.log(1000.0) / n_embd))
    pe = jnp.zeros((max_length, n_embd), jnp.float32)
    pe = pe.at[:, 0::2].set(jnp.sin(position * div_term))
    pe = pe.at[:, 1::2].set(jnp.cos(position * div_term))
    return pe


def transformer_hangman_forward(idx, emb, pe, params, *, block_b=BLOCK_B):
    """idx: (B, T) int32 tokens -> (B, T, VOCAB) float32 logits."""
    B, T = idx.shape
    # glue: embedding lookup + fixed positional encoding (dropout -> identity)
    x = emb[idx] + pe[:T]                                     # (B, T, D) float32

    # Lane-dense lm_head: pad (64, 27) -> (64, 128), (1, 27) -> (1, 128).
    *body, w_lm, b_lm = params
    w_lm_p = jnp.zeros((N_EMBD, VOCAB_PAD), jnp.float32).at[:, :VOCAB].set(w_lm)
    b_lm_p = jnp.zeros((1, VOCAB_PAD), jnp.float32).at[:, :VOCAB].set(b_lm)
    kparams = list(body) + [w_lm_p, b_lm_p]

    e_big, a_sum, g_sm = _attention_selectors(T)
    consts = [e_big, a_sum, g_sm] + kparams

    # Many sequences per grid step; pad batch to a multiple of the block size.
    BB = min(B, block_b)
    nb = pl.cdiv(B, BB)
    Bp = nb * BB
    if Bp != B:
        x = jnp.concatenate([x, jnp.zeros((Bp - B, T, N_EMBD), x.dtype)], axis=0)

    in_specs = [pl.BlockSpec((BB, T, N_EMBD), lambda b: (b, 0, 0))]
    for prm in consts:
        nd = prm.ndim
        in_specs.append(pl.BlockSpec(prm.shape, lambda b, _nd=nd: (0,) * _nd))

    out = pl.pallas_call(
        transformer_kernel,
        out_shape=jax.ShapeDtypeStruct((Bp, T, VOCAB_PAD), jnp.float32),
        grid=(nb,),
        in_specs=in_specs,
        out_specs=pl.BlockSpec((BB, T, VOCAB_PAD), lambda b: (b, 0, 0)),
        compiler_params=pltpu.CompilerParams(
            dimension_semantics=("parallel",)),
    )(x, *consts)

    return out[:B, :, :VOCAB]


def reference_forward(idx, emb, pe, params):
    """Pure-JAX reference mirroring the PyTorch forward (eval mode)."""
    x = emb[idx] + pe[: idx.shape[1]]
    p = list(params)

    def nxt():
        return p.pop(0)

    for _ in range(N_LAYER):
        ln1_g, ln1_b = nxt(), nxt()
        wq, wk, wv = nxt(), nxt(), nxt()
        wp, bp = nxt(), nxt()
        ln2_g, ln2_b = nxt(), nxt()
        w1, b1, w2, b2 = nxt(), nxt(), nxt(), nxt()

        h = _layer_norm(x, ln1_g, ln1_b)
        q, k, v = h @ wq, h @ wk, h @ wv
        B, T, D = q.shape
        qh = q.reshape(B, T, N_HEAD, HEAD_SIZE)
        kh = k.reshape(B, T, N_HEAD, HEAD_SIZE)
        vh = v.reshape(B, T, N_HEAD, HEAD_SIZE)
        s = jnp.einsum('bqhd,bkhd->bhqk', qh, kh) * HEAD_SIZE ** -0.5
        w_att = jax.nn.softmax(s, axis=-1)
        o = jnp.einsum('bhqk,bkhd->bqhd', w_att, vh).reshape(B, T, D)
        x = x + o @ wp + bp
        h2 = _layer_norm(x, ln2_g, ln2_b)
        x = x + jnp.maximum(h2 @ w1 + b1, 0.0) @ w2 + b2

    lnf_g, lnf_b = nxt(), nxt()
    w_lm, b_lm = nxt(), nxt()
    return _layer_norm(x, lnf_g, lnf_b) @ w_lm + b_lm


if __name__ == "__main__":
    key = jax.random.PRNGKey(0)
    k_param, k_idx = jax.random.split(key)

    emb, params = init_params(k_param)
    pe = positional_encoding(MAX_LEN, N_EMBD)

    B, T = 2, MAX_LEN  # seq length must be <= max_length (8), as in the module
    idx = jax.random.randint(k_idx, (B, T), 0, VOCAB, dtype=jnp.int32)

    logits = transformer_hangman_forward(idx, emb, pe, params)
    logits = jax.block_until_ready(logits)

    assert logits.shape == (B, T, VOCAB), logits.shape
    assert bool(jnp.all(jnp.isfinite(logits)))

    ref = reference_forward(idx, emb, pe, params)
    max_err = float(jnp.max(jnp.abs(logits - ref)))
    assert max_err < 5e-2, f"max abs error vs reference: {max_err}"

    print("KERNEL_OK")
</pallas_src>

<mosaic_0001>
module attributes {stable_mosaic.version = 11 : i64} {
  func.func @transformer_kernel(%arg0: i32, %arg1: memref<2x8x64xf32, #tpu.memory_space<vmem>>, %arg2: memref<512x64xf32, #tpu.memory_space<vmem>>, %arg3: memref<64x64xf32, #tpu.memory_space<vmem>>, %arg4: memref<64x512xf32, #tpu.memory_space<vmem>>, %arg5: memref<1x64xf32, #tpu.memory_space<vmem>>, %arg6: memref<1x64xf32, #tpu.memory_space<vmem>>, %arg7: memref<64x64xf32, #tpu.memory_space<vmem>>, %arg8: memref<64x64xf32, #tpu.memory_space<vmem>>, %arg9: memref<64x64xf32, #tpu.memory_space<vmem>>, %arg10: memref<64x64xf32, #tpu.memory_space<vmem>>, %arg11: memref<1x64xf32, #tpu.memory_space<vmem>>, %arg12: memref<1x64xf32, #tpu.memory_space<vmem>>, %arg13: memref<1x64xf32, #tpu.memory_space<vmem>>, %arg14: memref<64x256xf32, #tpu.memory_space<vmem>>, %arg15: memref<1x256xf32, #tpu.memory_space<vmem>>, %arg16: memref<256x64xf32, #tpu.memory_space<vmem>>, %arg17: memref<1x64xf32, #tpu.memory_space<vmem>>, %arg18: memref<1x64xf32, #tpu.memory_space<vmem>>, %arg19: memref<1x64xf32, #tpu.memory_space<vmem>>, %arg20: memref<64x64xf32, #tpu.memory_space<vmem>>, %arg21: memref<64x64xf32, #tpu.memory_space<vmem>>, %arg22: memref<64x64xf32, #tpu.memory_space<vmem>>, %arg23: memref<64x64xf32, #tpu.memory_space<vmem>>, %arg24: memref<1x64xf32, #tpu.memory_space<vmem>>, %arg25: memref<1x64xf32, #tpu.memory_space<vmem>>, %arg26: memref<1x64xf32, #tpu.memory_space<vmem>>, %arg27: memref<64x256xf32, #tpu.memory_space<vmem>>, %arg28: memref<1x256xf32, #tpu.memory_space<vmem>>, %arg29: memref<256x64xf32, #tpu.memory_space<vmem>>, %arg30: memref<1x64xf32, #tpu.memory_space<vmem>>, %arg31: memref<1x64xf32, #tpu.memory_space<vmem>>, %arg32: memref<1x64xf32, #tpu.memory_space<vmem>>, %arg33: memref<64x128xf32, #tpu.memory_space<vmem>>, %arg34: memref<1x128xf32, #tpu.memory_space<vmem>>, %arg35: memref<2x8x128xf32, #tpu.memory_space<vmem>>) attributes {dimension_semantics = [#tpu.dimension_semantics<parallel>], iteration_bounds = array<i64: 1>, scalar_prefetch = 0 : i64, scratch_operands = 0 : i64, tpu.core_type = #tpu.core_type<tc>, window_params = [{transform_indices = @transform_0, window_bounds = array<i64: 2, 8, 64>}, {pipeline_mode = #tpu.pipeline_mode<synchronous>, transform_indices = @transform_1, window_bounds = array<i64: 512, 64>}, {pipeline_mode = #tpu.pipeline_mode<synchronous>, transform_indices = @transform_2, window_bounds = array<i64: 64, 64>}, {pipeline_mode = #tpu.pipeline_mode<synchronous>, transform_indices = @transform_3, window_bounds = array<i64: 64, 512>}, {pipeline_mode = #tpu.pipeline_mode<synchronous>, transform_indices = @transform_4, window_bounds = array<i64: 1, 64>}, {pipeline_mode = #tpu.pipeline_mode<synchronous>, transform_indices = @transform_5, window_bounds = array<i64: 1, 64>}, {pipeline_mode = #tpu.pipeline_mode<synchronous>, transform_indices = @transform_6, window_bounds = array<i64: 64, 64>}, {pipeline_mode = #tpu.pipeline_mode<synchronous>, transform_indices = @transform_7, window_bounds = array<i64: 64, 64>}, {pipeline_mode = #tpu.pipeline_mode<synchronous>, transform_indices = @transform_8, window_bounds = array<i64: 64, 64>}, {pipeline_mode = #tpu.pipeline_mode<synchronous>, transform_indices = @transform_9, window_bounds = array<i64: 64, 64>}, {pipeline_mode = #tpu.pipeline_mode<synchronous>, transform_indices = @transform_10, window_bounds = array<i64: 1, 64>}, {pipeline_mode = #tpu.pipeline_mode<synchronous>, transform_indices = @transform_11, window_bounds = array<i64: 1, 64>}, {pipeline_mode = #tpu.pipeline_mode<synchronous>, transform_indices = @transform_12, window_bounds = array<i64: 1, 64>}, {pipeline_mode = #tpu.pipeline_mode<synchronous>, transform_indices = @transform_13, window_bounds = array<i64: 64, 256>}, {pipeline_mode = #tpu.pipeline_mode<synchronous>, transform_indices = @transform_14, window_bounds = array<i64: 1, 256>}, {pipeline_mode = #tpu.pipeline_mode<synchronous>, transform_indices = @transform_15, window_bounds = array<i64: 256, 64>}, {pipeline_mode = #tpu.pipeline_mode<synchronous>, transform_indices = @transform_16, window_bounds = array<i64: 1, 64>}, {pipeline_mode = #tpu.pipeline_mode<synchronous>, transform_indices = @transform_17, window_bounds = array<i64: 1, 64>}, {pipeline_mode = #tpu.pipeline_mode<synchronous>, transform_indices = @transform_18, window_bounds = array<i64: 1, 64>}, {pipeline_mode = #tpu.pipeline_mode<synchronous>, transform_indices = @transform_19, window_bounds = array<i64: 64, 64>}, {pipeline_mode = #tpu.pipeline_mode<synchronous>, transform_indices = @transform_20, window_bounds = array<i64: 64, 64>}, {pipeline_mode = #tpu.pipeline_mode<synchronous>, transform_indices = @transform_21, window_bounds = array<i64: 64, 64>}, {pipeline_mode = #tpu.pipeline_mode<synchronous>, transform_indices = @transform_22, window_bounds = array<i64: 64, 64>}, {pipeline_mode = #tpu.pipeline_mode<synchronous>, transform_indices = @transform_23, window_bounds = array<i64: 1, 64>}, {pipeline_mode = #tpu.pipeline_mode<synchronous>, transform_indices = @transform_24, window_bounds = array<i64: 1, 64>}, {pipeline_mode = #tpu.pipeline_mode<synchronous>, transform_indices = @transform_25, window_bounds = array<i64: 1, 64>}, {pipeline_mode = #tpu.pipeline_mode<synchronous>, transform_indices = @transform_26, window_bounds = array<i64: 64, 256>}, {pipeline_mode = #tpu.pipeline_mode<synchronous>, transform_indices = @transform_27, window_bounds = array<i64: 1, 256>}, {pipeline_mode = #tpu.pipeline_mode<synchronous>, transform_indices = @transform_28, window_bounds = array<i64: 256, 64>}, {pipeline_mode = #tpu.pipeline_mode<synchronous>, transform_indices = @transform_29, window_bounds = array<i64: 1, 64>}, {pipeline_mode = #tpu.pipeline_mode<synchronous>, transform_indices = @transform_30, window_bounds = array<i64: 1, 64>}, {pipeline_mode = #tpu.pipeline_mode<synchronous>, transform_indices = @transform_31, window_bounds = array<i64: 1, 64>}, {pipeline_mode = #tpu.pipeline_mode<synchronous>, transform_indices = @transform_32, window_bounds = array<i64: 64, 128>}, {pipeline_mode = #tpu.pipeline_mode<synchronous>, transform_indices = @transform_33, window_bounds = array<i64: 1, 128>}, {transform_indices = @transform_34, window_bounds = array<i64: 2, 8, 128>}]} {
    %c0 = arith.constant 0 : index
    %c0_0 = arith.constant 0 : index
    %c0_1 = arith.constant 0 : index
    %0 = vector.load %arg1[%c0, %c0_0, %c0_1] : memref<2x8x64xf32, #tpu.memory_space<vmem>>, vector<2x8x64xf32>
    %1 = vector.shape_cast %0 : vector<2x8x64xf32> to vector<16x64xf32>
    %c0_2 = arith.constant 0 : index
    %c0_3 = arith.constant 0 : index
    %2 = vector.load %arg2[%c0_2, %c0_3] : memref<512x64xf32, #tpu.memory_space<vmem>>, vector<512x64xf32>
    %c0_4 = arith.constant 0 : index
    %c0_5 = arith.constant 0 : index
    %3 = vector.load %arg3[%c0_4, %c0_5] : memref<64x64xf32, #tpu.memory_space<vmem>>, vector<64x64xf32>
    %c0_6 = arith.constant 0 : index
    %c0_7 = arith.constant 0 : index
    %4 = vector.load %arg4[%c0_6, %c0_7] : memref<64x512xf32, #tpu.memory_space<vmem>>, vector<64x512xf32>
    %c0_8 = arith.constant 0 : index
    %c0_9 = arith.constant 0 : index
    %5 = vector.load %arg5[%c0_8, %c0_9] : memref<1x64xf32, #tpu.memory_space<vmem>>, vector<1x64xf32>
    %c0_10 = arith.constant 0 : index
    %c0_11 = arith.constant 0 : index
    %6 = vector.load %arg6[%c0_10, %c0_11] : memref<1x64xf32, #tpu.memory_space<vmem>>, vector<1x64xf32>
    %c0_12 = arith.constant 0 : index
    %c0_13 = arith.constant 0 : index
    %7 = vector.load %arg7[%c0_12, %c0_13] : memref<64x64xf32, #tpu.memory_space<vmem>>, vector<64x64xf32>
    %c0_14 = arith.constant 0 : index
    %c0_15 = arith.constant 0 : index
    %8 = vector.load %arg8[%c0_14, %c0_15] : memref<64x64xf32, #tpu.memory_space<vmem>>, vector<64x64xf32>
    %c0_16 = arith.constant 0 : index
    %c0_17 = arith.constant 0 : index
    %9 = vector.load %arg9[%c0_16, %c0_17] : memref<64x64xf32, #tpu.memory_space<vmem>>, vector<64x64xf32>
    %c0_18 = arith.constant 0 : index
    %c0_19 = arith.constant 0 : index
    %10 = vector.load %arg10[%c0_18, %c0_19] : memref<64x64xf32, #tpu.memory_space<vmem>>, vector<64x64xf32>
    %c0_20 = arith.constant 0 : index
    %c0_21 = arith.constant 0 : index
    %11 = vector.load %arg11[%c0_20, %c0_21] : memref<1x64xf32, #tpu.memory_space<vmem>>, vector<1x64xf32>
    %c0_22 = arith.constant 0 : index
    %c0_23 = arith.constant 0 : index
    %12 = vector.load %arg12[%c0_22, %c0_23] : memref<1x64xf32, #tpu.memory_space<vmem>>, vector<1x64xf32>
    %c0_24 = arith.constant 0 : index
    %c0_25 = arith.constant 0 : index
    %13 = vector.load %arg13[%c0_24, %c0_25] : memref<1x64xf32, #tpu.memory_space<vmem>>, vector<1x64xf32>
    %c0_26 = arith.constant 0 : index
    %c0_27 = arith.constant 0 : index
    %14 = vector.load %arg14[%c0_26, %c0_27] : memref<64x256xf32, #tpu.memory_space<vmem>>, vector<64x256xf32>
    %c0_28 = arith.constant 0 : index
    %c0_29 = arith.constant 0 : index
    %15 = vector.load %arg15[%c0_28, %c0_29] : memref<1x256xf32, #tpu.memory_space<vmem>>, vector<1x256xf32>
    %c0_30 = arith.constant 0 : index
    %c0_31 = arith.constant 0 : index
    %16 = vector.load %arg16[%c0_30, %c0_31] : memref<256x64xf32, #tpu.memory_space<vmem>>, vector<256x64xf32>
    %c0_32 = arith.constant 0 : index
    %c0_33 = arith.constant 0 : index
    %17 = vector.load %arg17[%c0_32, %c0_33] : memref<1x64xf32, #tpu.memory_space<vmem>>, vector<1x64xf32>
    %cst = arith.constant dense<0.000000e+00> : vector<16xf32>
    %18 = vector.multi_reduction <add>, %1, %cst [1] : vector<16x64xf32> to vector<16xf32>
    %19 = vector.shape_cast %18 : vector<16xf32> to vector<16x1xf32>
    %cst_34 = arith.constant 6.400000e+01 : f32
    %20 = vector.broadcast %cst_34 : f32 to vector<16x1xf32>
    %21 = arith.divf %19, %20 : vector<16x1xf32>
    %22 = vector.broadcast %21 : vector<16x1xf32> to vector<16x64xf32>
    %23 = arith.subf %1, %22 : vector<16x64xf32>
    %24 = arith.mulf %23, %23 : vector<16x64xf32>
    %cst_35 = arith.constant dense<0.000000e+00> : vector<16xf32>
    %25 = vector.multi_reduction <add>, %24, %cst_35 [1] : vector<16x64xf32> to vector<16xf32>
    %26 = vector.shape_cast %25 : vector<16xf32> to vector<16x1xf32>
    %cst_36 = arith.constant 6.400000e+01 : f32
    %27 = vector.broadcast %cst_36 : f32 to vector<16x1xf32>
    %28 = arith.divf %26, %27 : vector<16x1xf32>
    %29 = vector.broadcast %21 : vector<16x1xf32> to vector<16x64xf32>
    %30 = arith.subf %1, %29 : vector<16x64xf32>
    %cst_37 = arith.constant 9.99999974E-6 : f32
    %31 = vector.broadcast %cst_37 : f32 to vector<16x1xf32>
    %32 = arith.addf %28, %31 : vector<16x1xf32>
    %33 = math.rsqrt %32 : vector<16x1xf32>
    %34 = vector.broadcast %33 : vector<16x1xf32> to vector<16x64xf32>
    %35 = arith.mulf %30, %34 : vector<16x64xf32>
    %36 = vector.broadcast %5 : vector<1x64xf32> to vector<16x64xf32>
    %37 = arith.mulf %35, %36 : vector<16x64xf32>
    %38 = vector.broadcast %6 : vector<1x64xf32> to vector<16x64xf32>
    %39 = arith.addf %37, %38 : vector<16x64xf32>
    %cst_38 = arith.constant dense<0.000000e+00> : vector<16x64xf32>
    %40 = tpu.matmul %39, %7, %cst_38 {dimension_numbers = #tpu.dot_dimension_numbers<[1], [0], [0], [1], [0, 0, 1, 1], [], []>} : vector<16x64xf32>, vector<64x64xf32>, vector<16x64xf32> -> vector<16x64xf32>
    %cst_39 = arith.constant dense<0.000000e+00> : vector<16x64xf32>
    %41 = tpu.matmul %39, %8, %cst_39 {dimension_numbers = #tpu.dot_dimension_numbers<[1], [0], [0], [1], [0, 0, 1, 1], [], []>} : vector<16x64xf32>, vector<64x64xf32>, vector<16x64xf32> -> vector<16x64xf32>
    %cst_40 = arith.constant dense<0.000000e+00> : vector<16x64xf32>
    %42 = tpu.matmul %39, %9, %cst_40 {dimension_numbers = #tpu.dot_dimension_numbers<[1], [0], [0], [1], [0, 0, 1, 1], [], []>} : vector<16x64xf32>, vector<64x64xf32>, vector<16x64xf32> -> vector<16x64xf32>
    %43 = vector.shape_cast %41 : vector<16x64xf32> to vector<2x8x64xf32>
    %44 = vector.shape_cast %42 : vector<16x64xf32> to vector<2x8x64xf32>
    %45 = vector.extract_strided_slice %43 {offsets = [0, 0, 0], sizes = [2, 1, 64], strides = [1, 1, 1]} : vector<2x8x64xf32> to vector<2x1x64xf32>
    %46 = vector.shape_cast %45 : vector<2x1x64xf32> to vector<2x1x64xf32>
    %47 = vector.broadcast %46 : vector<2x1x64xf32> to vector<2x8x64xf32>
    %48 = vector.shape_cast %47 : vector<2x8x64xf32> to vector<16x64xf32>
    %49 = arith.mulf %40, %48 : vector<16x64xf32>
    %50 = vector.extract_strided_slice %43 {offsets = [0, 1, 0], sizes = [2, 1, 64], strides = [1, 1, 1]} : vector<2x8x64xf32> to vector<2x1x64xf32>
    %51 = vector.shape_cast %50 : vector<2x1x64xf32> to vector<2x1x64xf32>
    %52 = vector.broadcast %51 : vector<2x1x64xf32> to vector<2x8x64xf32>
    %53 = vector.shape_cast %52 : vector<2x8x64xf32> to vector<16x64xf32>
    %54 = arith.mulf %40, %53 : vector<16x64xf32>
    %55 = vector.extract_strided_slice %43 {offsets = [0, 2, 0], sizes = [2, 1, 64], strides = [1, 1, 1]} : vector<2x8x64xf32> to vector<2x1x64xf32>
    %56 = vector.shape_cast %55 : vector<2x1x64xf32> to vector<2x1x64xf32>
    %57 = vector.broadcast %56 : vector<2x1x64xf32> to vector<2x8x64xf32>
    %58 = vector.shape_cast %57 : vector<2x8x64xf32> to vector<16x64xf32>
    %59 = arith.mulf %40, %58 : vector<16x64xf32>
    %60 = vector.extract_strided_slice %43 {offsets = [0, 3, 0], sizes = [2, 1, 64], strides = [1, 1, 1]} : vector<2x8x64xf32> to vector<2x1x64xf32>
    %61 = vector.shape_cast %60 : vector<2x1x64xf32> to vector<2x1x64xf32>
    %62 = vector.broadcast %61 : vector<2x1x64xf32> to vector<2x8x64xf32>
    %63 = vector.shape_cast %62 : vector<2x8x64xf32> to vector<16x64xf32>
    %64 = arith.mulf %40, %63 : vector<16x64xf32>
    %65 = vector.extract_strided_slice %43 {offsets = [0, 4, 0], sizes = [2, 1, 64], strides = [1, 1, 1]} : vector<2x8x64xf32> to vector<2x1x64xf32>
    %66 = vector.shape_cast %65 : vector<2x1x64xf32> to vector<2x1x64xf32>
    %67 = vector.broadcast %66 : vector<2x1x64xf32> to vector<2x8x64xf32>
    %68 = vector.shape_cast %67 : vector<2x8x64xf32> to vector<16x64xf32>
    %69 = arith.mulf %40, %68 : vector<16x64xf32>
    %70 = vector.extract_strided_slice %43 {offsets = [0, 5, 0], sizes = [2, 1, 64], strides = [1, 1, 1]} : vector<2x8x64xf32> to vector<2x1x64xf32>
    %71 = vector.shape_cast %70 : vector<2x1x64xf32> to vector<2x1x64xf32>
    %72 = vector.broadcast %71 : vector<2x1x64xf32> to vector<2x8x64xf32>
    %73 = vector.shape_cast %72 : vector<2x8x64xf32> to vector<16x64xf32>
    %74 = arith.mulf %40, %73 : vector<16x64xf32>
    %75 = vector.extract_strided_slice %43 {offsets = [0, 6, 0], sizes = [2, 1, 64], strides = [1, 1, 1]} : vector<2x8x64xf32> to vector<2x1x64xf32>
    %76 = vector.shape_cast %75 : vector<2x1x64xf32> to vector<2x1x64xf32>
    %77 = vector.broadcast %76 : vector<2x1x64xf32> to vector<2x8x64xf32>
    %78 = vector.shape_cast %77 : vector<2x8x64xf32> to vector<16x64xf32>
    %79 = arith.mulf %40, %78 : vector<16x64xf32>
    %80 = vector.extract_strided_slice %43 {offsets = [0, 7, 0], sizes = [2, 1, 64], strides = [1, 1, 1]} : vector<2x8x64xf32> to vector<2x1x64xf32>
    %81 = vector.shape_cast %80 : vector<2x1x64xf32> to vector<2x1x64xf32>
    %82 = vector.broadcast %81 : vector<2x1x64xf32> to vector<2x8x64xf32>
    %83 = vector.shape_cast %82 : vector<2x8x64xf32> to vector<16x64xf32>
    %84 = arith.mulf %40, %83 : vector<16x64xf32>
    %85 = tpu.concatenate %49, %54, %59, %64, %69, %74, %79, %84 in 1 : vector<16x64xf32>, vector<16x64xf32>, vector<16x64xf32>, vector<16x64xf32>, vector<16x64xf32>, vector<16x64xf32>, vector<16x64xf32>, vector<16x64xf32> -> vector<16x512xf32>
    %cst_41 = arith.constant dense<0.000000e+00> : vector<16x64xf32>
    %86 = tpu.matmul %85, %2, %cst_41 {dimension_numbers = #tpu.dot_dimension_numbers<[1], [0], [0], [1], [0, 0, 1, 1], [], []>} : vector<16x512xf32>, vector<512x64xf32>, vector<16x64xf32> -> vector<16x64xf32>
    %cst_42 = arith.constant dense<0xFF800000> : vector<16xf32>
    %87 = vector.multi_reduction <maximumf>, %86, %cst_42 [1] : vector<16x64xf32> to vector<16xf32>
    %88 = vector.shape_cast %87 : vector<16xf32> to vector<16x1xf32>
    %89 = vector.broadcast %88 : vector<16x1xf32> to vector<16x64xf32>
    %90 = arith.subf %86, %89 : vector<16x64xf32>
    %cst_43 = arith.constant -6.000000e+01 : f32
    %91 = vector.broadcast %cst_43 : f32 to vector<16x64xf32>
    %92 = arith.maximumf %90, %91 : vector<16x64xf32>
    %93 = math.exp %92 : vector<16x64xf32>
    %cst_44 = arith.constant dense<0.000000e+00> : vector<16x64xf32>
    %94 = tpu.matmul %93, %3, %cst_44 {dimension_numbers = #tpu.dot_dimension_numbers<[1], [0], [0], [1], [0, 0, 1, 1], [], []>} : vector<16x64xf32>, vector<64x64xf32>, vector<16x64xf32> -> vector<16x64xf32>
    %95 = tpu.reciprocal %94 {approx = true} : vector<16x64xf32> -> vector<16x64xf32>
    %96 = arith.mulf %93, %95 : vector<16x64xf32>
    %cst_45 = arith.constant dense<0.000000e+00> : vector<16x512xf32>
    %97 = tpu.matmul %96, %4, %cst_45 {dimension_numbers = #tpu.dot_dimension_numbers<[1], [0], [0], [1], [0, 0, 1, 1], [], []>} : vector<16x64xf32>, vector<64x512xf32>, vector<16x512xf32> -> vector<16x512xf32>
    %98 = vector.extract_strided_slice %44 {offsets = [0, 0, 0], sizes = [2, 1, 64], strides = [1, 1, 1]} : vector<2x8x64xf32> to vector<2x1x64xf32>
    %99 = vector.shape_cast %98 : vector<2x1x64xf32> to vector<2x1x64xf32>
    %100 = vector.broadcast %99 : vector<2x1x64xf32> to vector<2x8x64xf32>
    %101 = vector.shape_cast %100 : vector<2x8x64xf32> to vector<16x64xf32>
    %102 = vector.extract_strided_slice %97 {offsets = [0, 0], sizes = [16, 64], strides = [1, 1]} : vector<16x512xf32> to vector<16x64xf32>
    %103 = arith.mulf %102, %101 : vector<16x64xf32>
    %104 = vector.extract_strided_slice %44 {offsets = [0, 1, 0], sizes = [2, 1, 64], strides = [1, 1, 1]} : vector<2x8x64xf32> to vector<2x1x64xf32>
    %105 = vector.shape_cast %104 : vector<2x1x64xf32> to vector<2x1x64xf32>
    %106 = vector.broadcast %105 : vector<2x1x64xf32> to vector<2x8x64xf32>
    %107 = vector.shape_cast %106 : vector<2x8x64xf32> to vector<16x64xf32>
    %108 = vector.extract_strided_slice %97 {offsets = [0, 64], sizes = [16, 64], strides = [1, 1]} : vector<16x512xf32> to vector<16x64xf32>
    %109 = arith.mulf %108, %107 : vector<16x64xf32>
    %110 = arith.addf %103, %109 : vector<16x64xf32>
    %111 = vector.extract_strided_slice %44 {offsets = [0, 2, 0], sizes = [2, 1, 64], strides = [1, 1, 1]} : vector<2x8x64xf32> to vector<2x1x64xf32>
    %112 = vector.shape_cast %111 : vector<2x1x64xf32> to vector<2x1x64xf32>
    %113 = vector.broadcast %112 : vector<2x1x64xf32> to vector<2x8x64xf32>
    %114 = vector.shape_cast %113 : vector<2x8x64xf32> to vector<16x64xf32>
    %115 = vector.extract_strided_slice %97 {offsets = [0, 128], sizes = [16, 64], strides = [1, 1]} : vector<16x512xf32> to vector<16x64xf32>
    %116 = arith.mulf %115, %114 : vector<16x64xf32>
    %117 = arith.addf %110, %116 : vector<16x64xf32>
    %118 = vector.extract_strided_slice %44 {offsets = [0, 3, 0], sizes = [2, 1, 64], strides = [1, 1, 1]} : vector<2x8x64xf32> to vector<2x1x64xf32>
    %119 = vector.shape_cast %118 : vector<2x1x64xf32> to vector<2x1x64xf32>
    %120 = vector.broadcast %119 : vector<2x1x64xf32> to vector<2x8x64xf32>
    %121 = vector.shape_cast %120 : vector<2x8x64xf32> to vector<16x64xf32>
    %122 = vector.extract_strided_slice %97 {offsets = [0, 192], sizes = [16, 64], strides = [1, 1]} : vector<16x512xf32> to vector<16x64xf32>
    %123 = arith.mulf %122, %121 : vector<16x64xf32>
    %124 = arith.addf %117, %123 : vector<16x64xf32>
    %125 = vector.extract_strided_slice %44 {offsets = [0, 4, 0], sizes = [2, 1, 64], strides = [1, 1, 1]} : vector<2x8x64xf32> to vector<2x1x64xf32>
    %126 = vector.shape_cast %125 : vector<2x1x64xf32> to vector<2x1x64xf32>
    %127 = vector.broadcast %126 : vector<2x1x64xf32> to vector<2x8x64xf32>
    %128 = vector.shape_cast %127 : vector<2x8x64xf32> to vector<16x64xf32>
    %129 = vector.extract_strided_slice %97 {offsets = [0, 256], sizes = [16, 64], strides = [1, 1]} : vector<16x512xf32> to vector<16x64xf32>
    %130 = arith.mulf %129, %128 : vector<16x64xf32>
    %131 = arith.addf %124, %130 : vector<16x64xf32>
    %132 = vector.extract_strided_slice %44 {offsets = [0, 5, 0], sizes = [2, 1, 64], strides = [1, 1, 1]} : vector<2x8x64xf32> to vector<2x1x64xf32>
    %133 = vector.shape_cast %132 : vector<2x1x64xf32> to vector<2x1x64xf32>
    %134 = vector.broadcast %133 : vector<2x1x64xf32> to vector<2x8x64xf32>
    %135 = vector.shape_cast %134 : vector<2x8x64xf32> to vector<16x64xf32>
    %136 = vector.extract_strided_slice %97 {offsets = [0, 320], sizes = [16, 64], strides = [1, 1]} : vector<16x512xf32> to vector<16x64xf32>
    %137 = arith.mulf %136, %135 : vector<16x64xf32>
    %138 = arith.addf %131, %137 : vector<16x64xf32>
    %139 = vector.extract_strided_slice %44 {offsets = [0, 6, 0], sizes = [2, 1, 64], strides = [1, 1, 1]} : vector<2x8x64xf32> to vector<2x1x64xf32>
    %140 = vector.shape_cast %139 : vector<2x1x64xf32> to vector<2x1x64xf32>
    %141 = vector.broadcast %140 : vector<2x1x64xf32> to vector<2x8x64xf32>
    %142 = vector.shape_cast %141 : vector<2x8x64xf32> to vector<16x64xf32>
    %143 = vector.extract_strided_slice %97 {offsets = [0, 384], sizes = [16, 64], strides = [1, 1]} : vector<16x512xf32> to vector<16x64xf32>
    %144 = arith.mulf %143, %142 : vector<16x64xf32>
    %145 = arith.addf %138, %144 : vector<16x64xf32>
    %146 = vector.extract_strided_slice %44 {offsets = [0, 7, 0], sizes = [2, 1, 64], strides = [1, 1, 1]} : vector<2x8x64xf32> to vector<2x1x64xf32>
    %147 = vector.shape_cast %146 : vector<2x1x64xf32> to vector<2x1x64xf32>
    %148 = vector.broadcast %147 : vector<2x1x64xf32> to vector<2x8x64xf32>
    %149 = vector.shape_cast %148 : vector<2x8x64xf32> to vector<16x64xf32>
    %150 = vector.extract_strided_slice %97 {offsets = [0, 448], sizes = [16, 64], strides = [1, 1]} : vector<16x512xf32> to vector<16x64xf32>
    %151 = arith.mulf %150, %149 : vector<16x64xf32>
    %152 = arith.addf %145, %151 : vector<16x64xf32>
    %cst_46 = arith.constant dense<0.000000e+00> : vector<16x64xf32>
    %153 = tpu.matmul %152, %10, %cst_46 {dimension_numbers = #tpu.dot_dimension_numbers<[1], [0], [0], [1], [0, 0, 1, 1], [], []>} : vector<16x64xf32>, vector<64x64xf32>, vector<16x64xf32> -> vector<16x64xf32>
    %154 = vector.broadcast %11 : vector<1x64xf32> to vector<16x64xf32>
    %155 = arith.addf %153, %154 : vector<16x64xf32>
    %156 = arith.addf %1, %155 : vector<16x64xf32>
    %cst_47 = arith.constant dense<0.000000e+00> : vector<16xf32>
    %157 = vector.multi_reduction <add>, %156, %cst_47 [1] : vector<16x64xf32> to vector<16xf32>
    %158 = vector.shape_cast %157 : vector<16xf32> to vector<16x1xf32>
    %cst_48 = arith.constant 6.400000e+01 : f32
    %159 = vector.broadcast %cst_48 : f32 to vector<16x1xf32>
    %160 = arith.divf %158, %159 : vector<16x1xf32>
    %161 = vector.broadcast %160 : vector<16x1xf32> to vector<16x64xf32>
    %162 = arith.subf %156, %161 : vector<16x64xf32>
    %163 = arith.mulf %162, %162 : vector<16x64xf32>
    %cst_49 = arith.constant dense<0.000000e+00> : vector<16xf32>
    %164 = vector.multi_reduction <add>, %163, %cst_49 [1] : vector<16x64xf32> to vector<16xf32>
    %165 = vector.shape_cast %164 : vector<16xf32> to vector<16x1xf32>
    %cst_50 = arith.constant 6.400000e+01 : f32
    %166 = vector.broadcast %cst_50 : f32 to vector<16x1xf32>
    %167 = arith.divf %165, %166 : vector<16x1xf32>
    %168 = vector.broadcast %160 : vector<16x1xf32> to vector<16x64xf32>
    %169 = arith.subf %156, %168 : vector<16x64xf32>
    %cst_51 = arith.constant 9.99999974E-6 : f32
    %170 = vector.broadcast %cst_51 : f32 to vector<16x1xf32>
    %171 = arith.addf %167, %170 : vector<16x1xf32>
    %172 = math.rsqrt %171 : vector<16x1xf32>
    %173 = vector.broadcast %172 : vector<16x1xf32> to vector<16x64xf32>
    %174 = arith.mulf %169, %173 : vector<16x64xf32>
    %175 = vector.broadcast %12 : vector<1x64xf32> to vector<16x64xf32>
    %176 = arith.mulf %174, %175 : vector<16x64xf32>
    %177 = vector.broadcast %13 : vector<1x64xf32> to vector<16x64xf32>
    %178 = arith.addf %176, %177 : vector<16x64xf32>
    %cst_52 = arith.constant dense<0.000000e+00> : vector<16x256xf32>
    %179 = tpu.matmul %178, %14, %cst_52 {dimension_numbers = #tpu.dot_dimension_numbers<[1], [0], [0], [1], [0, 0, 1, 1], [], []>} : vector<16x64xf32>, vector<64x256xf32>, vector<16x256xf32> -> vector<16x256xf32>
    %180 = vector.broadcast %15 : vector<1x256xf32> to vector<16x256xf32>
    %181 = arith.addf %179, %180 : vector<16x256xf32>
    %cst_53 = arith.constant 0.000000e+00 : f32
    %182 = vector.broadcast %cst_53 : f32 to vector<16x256xf32>
    %183 = arith.maximumf %181, %182 : vector<16x256xf32>
    %cst_54 = arith.constant dense<0.000000e+00> : vector<16x64xf32>
    %184 = tpu.matmul %183, %16, %cst_54 {dimension_numbers = #tpu.dot_dimension_numbers<[1], [0], [0], [1], [0, 0, 1, 1], [], []>} : vector<16x256xf32>, vector<256x64xf32>, vector<16x64xf32> -> vector<16x64xf32>
    %185 = vector.broadcast %17 : vector<1x64xf32> to vector<16x64xf32>
    %186 = arith.addf %184, %185 : vector<16x64xf32>
    %187 = arith.addf %156, %186 : vector<16x64xf32>
    %c0_55 = arith.constant 0 : index
    %c0_56 = arith.constant 0 : index
    %188 = vector.load %arg18[%c0_55, %c0_56] : memref<1x64xf32, #tpu.memory_space<vmem>>, vector<1x64xf32>
    %c0_57 = arith.constant 0 : index
    %c0_58 = arith.constant 0 : index
    %189 = vector.load %arg19[%c0_57, %c0_58] : memref<1x64xf32, #tpu.memory_space<vmem>>, vector<1x64xf32>
    %c0_59 = arith.constant 0 : index
    %c0_60 = arith.constant 0 : index
    %190 = vector.load %arg20[%c0_59, %c0_60] : memref<64x64xf32, #tpu.memory_space<vmem>>, vector<64x64xf32>
    %c0_61 = arith.constant 0 : index
    %c0_62 = arith.constant 0 : index
    %191 = vector.load %arg21[%c0_61, %c0_62] : memref<64x64xf32, #tpu.memory_space<vmem>>, vector<64x64xf32>
    %c0_63 = arith.constant 0 : index
    %c0_64 = arith.constant 0 : index
    %192 = vector.load %arg22[%c0_63, %c0_64] : memref<64x64xf32, #tpu.memory_space<vmem>>, vector<64x64xf32>
    %c0_65 = arith.constant 0 : index
    %c0_66 = arith.constant 0 : index
    %193 = vector.load %arg23[%c0_65, %c0_66] : memref<64x64xf32, #tpu.memory_space<vmem>>, vector<64x64xf32>
    %c0_67 = arith.constant 0 : index
    %c0_68 = arith.constant 0 : index
    %194 = vector.load %arg24[%c0_67, %c0_68] : memref<1x64xf32, #tpu.memory_space<vmem>>, vector<1x64xf32>
    %c0_69 = arith.constant 0 : index
    %c0_70 = arith.constant 0 : index
    %195 = vector.load %arg25[%c0_69, %c0_70] : memref<1x64xf32, #tpu.memory_space<vmem>>, vector<1x64xf32>
    %c0_71 = arith.constant 0 : index
    %c0_72 = arith.constant 0 : index
    %196 = vector.load %arg26[%c0_71, %c0_72] : memref<1x64xf32, #tpu.memory_space<vmem>>, vector<1x64xf32>
    %c0_73 = arith.constant 0 : index
    %c0_74 = arith.constant 0 : index
    %197 = vector.load %arg27[%c0_73, %c0_74] : memref<64x256xf32, #tpu.memory_space<vmem>>, vector<64x256xf32>
    %c0_75 = arith.constant 0 : index
    %c0_76 = arith.constant 0 : index
    %198 = vector.load %arg28[%c0_75, %c0_76] : memref<1x256xf32, #tpu.memory_space<vmem>>, vector<1x256xf32>
    %c0_77 = arith.constant 0 : index
    %c0_78 = arith.constant 0 : index
    %199 = vector.load %arg29[%c0_77, %c0_78] : memref<256x64xf32, #tpu.memory_space<vmem>>, vector<256x64xf32>
    %c0_79 = arith.constant 0 : index
    %c0_80 = arith.constant 0 : index
    %200 = vector.load %arg30[%c0_79, %c0_80] : memref<1x64xf32, #tpu.memory_space<vmem>>, vector<1x64xf32>
    %cst_81 = arith.constant dense<0.000000e+00> : vector<16xf32>
    %201 = vector.multi_reduction <add>, %187, %cst_81 [1] : vector<16x64xf32> to vector<16xf32>
    %202 = vector.shape_cast %201 : vector<16xf32> to vector<16x1xf32>
    %cst_82 = arith.constant 6.400000e+01 : f32
    %203 = vector.broadcast %cst_82 : f32 to vector<16x1xf32>
    %204 = arith.divf %202, %203 : vector<16x1xf32>
    %205 = vector.broadcast %204 : vector<16x1xf32> to vector<16x64xf32>
    %206 = arith.subf %187, %205 : vector<16x64xf32>
    %207 = arith.mulf %206, %206 : vector<16x64xf32>
    %cst_83 = arith.constant dense<0.000000e+00> : vector<16xf32>
    %208 = vector.multi_reduction <add>, %207, %cst_83 [1] : vector<16x64xf32> to vector<16xf32>
    %209 = vector.shape_cast %208 : vector<16xf32> to vector<16x1xf32>
    %cst_84 = arith.constant 6.400000e+01 : f32
    %210 = vector.broadcast %cst_84 : f32 to vector<16x1xf32>
    %211 = arith.divf %209, %210 : vector<16x1xf32>
    %212 = vector.broadcast %204 : vector<16x1xf32> to vector<16x64xf32>
    %213 = arith.subf %187, %212 : vector<16x64xf32>
    %cst_85 = arith.constant 9.99999974E-6 : f32
    %214 = vector.broadcast %cst_85 : f32 to vector<16x1xf32>
    %215 = arith.addf %211, %214 : vector<16x1xf32>
    %216 = math.rsqrt %215 : vector<16x1xf32>
    %217 = vector.broadcast %216 : vector<16x1xf32> to vector<16x64xf32>
    %218 = arith.mulf %213, %217 : vector<16x64xf32>
    %219 = vector.broadcast %188 : vector<1x64xf32> to vector<16x64xf32>
    %220 = arith.mulf %218, %219 : vector<16x64xf32>
    %221 = vector.broadcast %189 : vector<1x64xf32> to vector<16x64xf32>
    %222 = arith.addf %220, %221 : vector<16x64xf32>
    %cst_86 = arith.constant dense<0.000000e+00> : vector<16x64xf32>
    %223 = tpu.matmul %222, %190, %cst_86 {dimension_numbers = #tpu.dot_dimension_numbers<[1], [0], [0], [1], [0, 0, 1, 1], [], []>} : vector<16x64xf32>, vector<64x64xf32>, vector<16x64xf32> -> vector<16x64xf32>
    %cst_87 = arith.constant dense<0.000000e+00> : vector<16x64xf32>
    %224 = tpu.matmul %222, %191, %cst_87 {dimension_numbers = #tpu.dot_dimension_numbers<[1], [0], [0], [1], [0, 0, 1, 1], [], []>} : vector<16x64xf32>, vector<64x64xf32>, vector<16x64xf32> -> vector<16x64xf32>
    %cst_88 = arith.constant dense<0.000000e+00> : vector<16x64xf32>
    %225 = tpu.matmul %222, %192, %cst_88 {dimension_numbers = #tpu.dot_dimension_numbers<[1], [0], [0], [1], [0, 0, 1, 1], [], []>} : vector<16x64xf32>, vector<64x64xf32>, vector<16x64xf32> -> vector<16x64xf32>
    %226 = vector.shape_cast %224 : vector<16x64xf32> to vector<2x8x64xf32>
    %227 = vector.shape_cast %225 : vector<16x64xf32> to vector<2x8x64xf32>
    %228 = vector.extract_strided_slice %226 {offsets = [0, 0, 0], sizes = [2, 1, 64], strides = [1, 1, 1]} : vector<2x8x64xf32> to vector<2x1x64xf32>
    %229 = vector.shape_cast %228 : vector<2x1x64xf32> to vector<2x1x64xf32>
    %230 = vector.broadcast %229 : vector<2x1x64xf32> to vector<2x8x64xf32>
    %231 = vector.shape_cast %230 : vector<2x8x64xf32> to vector<16x64xf32>
    %232 = arith.mulf %223, %231 : vector<16x64xf32>
    %233 = vector.extract_strided_slice %226 {offsets = [0, 1, 0], sizes = [2, 1, 64], strides = [1, 1, 1]} : vector<2x8x64xf32> to vector<2x1x64xf32>
    %234 = vector.shape_cast %233 : vector<2x1x64xf32> to vector<2x1x64xf32>
    %235 = vector.broadcast %234 : vector<2x1x64xf32> to vector<2x8x64xf32>
    %236 = vector.shape_cast %235 : vector<2x8x64xf32> to vector<16x64xf32>
    %237 = arith.mulf %223, %236 : vector<16x64xf32>
    %238 = vector.extract_strided_slice %226 {offsets = [0, 2, 0], sizes = [2, 1, 64], strides = [1, 1, 1]} : vector<2x8x64xf32> to vector<2x1x64xf32>
    %239 = vector.shape_cast %238 : vector<2x1x64xf32> to vector<2x1x64xf32>
    %240 = vector.broadcast %239 : vector<2x1x64xf32> to vector<2x8x64xf32>
    %241 = vector.shape_cast %240 : vector<2x8x64xf32> to vector<16x64xf32>
    %242 = arith.mulf %223, %241 : vector<16x64xf32>
    %243 = vector.extract_strided_slice %226 {offsets = [0, 3, 0], sizes = [2, 1, 64], strides = [1, 1, 1]} : vector<2x8x64xf32> to vector<2x1x64xf32>
    %244 = vector.shape_cast %243 : vector<2x1x64xf32> to vector<2x1x64xf32>
    %245 = vector.broadcast %244 : vector<2x1x64xf32> to vector<2x8x64xf32>
    %246 = vector.shape_cast %245 : vector<2x8x64xf32> to vector<16x64xf32>
    %247 = arith.mulf %223, %246 : vector<16x64xf32>
    %248 = vector.extract_strided_slice %226 {offsets = [0, 4, 0], sizes = [2, 1, 64], strides = [1, 1, 1]} : vector<2x8x64xf32> to vector<2x1x64xf32>
    %249 = vector.shape_cast %248 : vector<2x1x64xf32> to vector<2x1x64xf32>
    %250 = vector.broadcast %249 : vector<2x1x64xf32> to vector<2x8x64xf32>
    %251 = vector.shape_cast %250 : vector<2x8x64xf32> to vector<16x64xf32>
    %252 = arith.mulf %223, %251 : vector<16x64xf32>
    %253 = vector.extract_strided_slice %226 {offsets = [0, 5, 0], sizes = [2, 1, 64], strides = [1, 1, 1]} : vector<2x8x64xf32> to vector<2x1x64xf32>
    %254 = vector.shape_cast %253 : vector<2x1x64xf32> to vector<2x1x64xf32>
    %255 = vector.broadcast %254 : vector<2x1x64xf32> to vector<2x8x64xf32>
    %256 = vector.shape_cast %255 : vector<2x8x64xf32> to vector<16x64xf32>
    %257 = arith.mulf %223, %256 : vector<16x64xf32>
    %258 = vector.extract_strided_slice %226 {offsets = [0, 6, 0], sizes = [2, 1, 64], strides = [1, 1, 1]} : vector<2x8x64xf32> to vector<2x1x64xf32>
    %259 = vector.shape_cast %258 : vector<2x1x64xf32> to vector<2x1x64xf32>
    %260 = vector.broadcast %259 : vector<2x1x64xf32> to vector<2x8x64xf32>
    %261 = vector.shape_cast %260 : vector<2x8x64xf32> to vector<16x64xf32>
    %262 = arith.mulf %223, %261 : vector<16x64xf32>
    %263 = vector.extract_strided_slice %226 {offsets = [0, 7, 0], sizes = [2, 1, 64], strides = [1, 1, 1]} : vector<2x8x64xf32> to vector<2x1x64xf32>
    %264 = vector.shape_cast %263 : vector<2x1x64xf32> to vector<2x1x64xf32>
    %265 = vector.broadcast %264 : vector<2x1x64xf32> to vector<2x8x64xf32>
    %266 = vector.shape_cast %265 : vector<2x8x64xf32> to vector<16x64xf32>
    %267 = arith.mulf %223, %266 : vector<16x64xf32>
    %268 = tpu.concatenate %232, %237, %242, %247, %252, %257, %262, %267 in 1 : vector<16x64xf32>, vector<16x64xf32>, vector<16x64xf32>, vector<16x64xf32>, vector<16x64xf32>, vector<16x64xf32>, vector<16x64xf32>, vector<16x64xf32> -> vector<16x512xf32>
    %cst_89 = arith.constant dense<0.000000e+00> : vector<16x64xf32>
    %269 = tpu.matmul %268, %2, %cst_89 {dimension_numbers = #tpu.dot_dimension_numbers<[1], [0], [0], [1], [0, 0, 1, 1], [], []>} : vector<16x512xf32>, vector<512x64xf32>, vector<16x64xf32> -> vector<16x64xf32>
    %cst_90 = arith.constant dense<0xFF800000> : vector<16xf32>
    %270 = vector.multi_reduction <maximumf>, %269, %cst_90 [1] : vector<16x64xf32> to vector<16xf32>
    %271 = vector.shape_cast %270 : vector<16xf32> to vector<16x1xf32>
    %272 = vector.broadcast %271 : vector<16x1xf32> to vector<16x64xf32>
    %273 = arith.subf %269, %272 : vector<16x64xf32>
    %cst_91 = arith.constant -6.000000e+01 : f32
    %274 = vector.broadcast %cst_91 : f32 to vector<16x64xf32>
    %275 = arith.maximumf %273, %274 : vector<16x64xf32>
    %276 = math.exp %275 : vector<16x64xf32>
    %cst_92 = arith.constant dense<0.000000e+00> : vector<16x64xf32>
    %277 = tpu.matmul %276, %3, %cst_92 {dimension_numbers = #tpu.dot_dimension_numbers<[1], [0], [0], [1], [0, 0, 1, 1], [], []>} : vector<16x64xf32>, vector<64x64xf32>, vector<16x64xf32> -> vector<16x64xf32>
    %278 = tpu.reciprocal %277 {approx = true} : vector<16x64xf32> -> vector<16x64xf32>
    %279 = arith.mulf %276, %278 : vector<16x64xf32>
    %cst_93 = arith.constant dense<0.000000e+00> : vector<16x512xf32>
    %280 = tpu.matmul %279, %4, %cst_93 {dimension_numbers = #tpu.dot_dimension_numbers<[1], [0], [0], [1], [0, 0, 1, 1], [], []>} : vector<16x64xf32>, vector<64x512xf32>, vector<16x512xf32> -> vector<16x512xf32>
    %281 = vector.extract_strided_slice %227 {offsets = [0, 0, 0], sizes = [2, 1, 64], strides = [1, 1, 1]} : vector<2x8x64xf32> to vector<2x1x64xf32>
    %282 = vector.shape_cast %281 : vector<2x1x64xf32> to vector<2x1x64xf32>
    %283 = vector.broadcast %282 : vector<2x1x64xf32> to vector<2x8x64xf32>
    %284 = vector.shape_cast %283 : vector<2x8x64xf32> to vector<16x64xf32>
    %285 = vector.extract_strided_slice %280 {offsets = [0, 0], sizes = [16, 64], strides = [1, 1]} : vector<16x512xf32> to vector<16x64xf32>
    %286 = arith.mulf %285, %284 : vector<16x64xf32>
    %287 = vector.extract_strided_slice %227 {offsets = [0, 1, 0], sizes = [2, 1, 64], strides = [1, 1, 1]} : vector<2x8x64xf32> to vector<2x1x64xf32>
    %288 = vector.shape_cast %287 : vector<2x1x64xf32> to vector<2x1x64xf32>
    %289 = vector.broadcast %288 : vector<2x1x64xf32> to vector<2x8x64xf32>
    %290 = vector.shape_cast %289 : vector<2x8x64xf32> to vector<16x64xf32>
    %291 = vector.extract_strided_slice %280 {offsets = [0, 64], sizes = [16, 64], strides = [1, 1]} : vector<16x512xf32> to vector<16x64xf32>
    %292 = arith.mulf %291, %290 : vector<16x64xf32>
    %293 = arith.addf %286, %292 : vector<16x64xf32>
    %294 = vector.extract_strided_slice %227 {offsets = [0, 2, 0], sizes = [2, 1, 64], strides = [1, 1, 1]} : vector<2x8x64xf32> to vector<2x1x64xf32>
    %295 = vector.shape_cast %294 : vector<2x1x64xf32> to vector<2x1x64xf32>
    %296 = vector.broadcast %295 : vector<2x1x64xf32> to vector<2x8x64xf32>
    %297 = vector.shape_cast %296 : vector<2x8x64xf32> to vector<16x64xf32>
    %298 = vector.extract_strided_slice %280 {offsets = [0, 128], sizes = [16, 64], strides = [1, 1]} : vector<16x512xf32> to vector<16x64xf32>
    %299 = arith.mulf %298, %297 : vector<16x64xf32>
    %300 = arith.addf %293, %299 : vector<16x64xf32>
    %301 = vector.extract_strided_slice %227 {offsets = [0, 3, 0], sizes = [2, 1, 64], strides = [1, 1, 1]} : vector<2x8x64xf32> to vector<2x1x64xf32>
    %302 = vector.shape_cast %301 : vector<2x1x64xf32> to vector<2x1x64xf32>
    %303 = vector.broadcast %302 : vector<2x1x64xf32> to vector<2x8x64xf32>
    %304 = vector.shape_cast %303 : vector<2x8x64xf32> to vector<16x64xf32>
    %305 = vector.extract_strided_slice %280 {offsets = [0, 192], sizes = [16, 64], strides = [1, 1]} : vector<16x512xf32> to vector<16x64xf32>
    %306 = arith.mulf %305, %304 : vector<16x64xf32>
    %307 = arith.addf %300, %306 : vector<16x64xf32>
    %308 = vector.extract_strided_slice %227 {offsets = [0, 4, 0], sizes = [2, 1, 64], strides = [1, 1, 1]} : vector<2x8x64xf32> to vector<2x1x64xf32>
    %309 = vector.shape_cast %308 : vector<2x1x64xf32> to vector<2x1x64xf32>
    %310 = vector.broadcast %309 : vector<2x1x64xf32> to vector<2x8x64xf32>
    %311 = vector.shape_cast %310 : vector<2x8x64xf32> to vector<16x64xf32>
    %312 = vector.extract_strided_slice %280 {offsets = [0, 256], sizes = [16, 64], strides = [1, 1]} : vector<16x512xf32> to vector<16x64xf32>
    %313 = arith.mulf %312, %311 : vector<16x64xf32>
    %314 = arith.addf %307, %313 : vector<16x64xf32>
    %315 = vector.extract_strided_slice %227 {offsets = [0, 5, 0], sizes = [2, 1, 64], strides = [1, 1, 1]} : vector<2x8x64xf32> to vector<2x1x64xf32>
    %316 = vector.shape_cast %315 : vector<2x1x64xf32> to vector<2x1x64xf32>
    %317 = vector.broadcast %316 : vector<2x1x64xf32> to vector<2x8x64xf32>
    %318 = vector.shape_cast %317 : vector<2x8x64xf32> to vector<16x64xf32>
    %319 = vector.extract_strided_slice %280 {offsets = [0, 320], sizes = [16, 64], strides = [1, 1]} : vector<16x512xf32> to vector<16x64xf32>
    %320 = arith.mulf %319, %318 : vector<16x64xf32>
    %321 = arith.addf %314, %320 : vector<16x64xf32>
    %322 = vector.extract_strided_slice %227 {offsets = [0, 6, 0], sizes = [2, 1, 64], strides = [1, 1, 1]} : vector<2x8x64xf32> to vector<2x1x64xf32>
    %323 = vector.shape_cast %322 : vector<2x1x64xf32> to vector<2x1x64xf32>
    %324 = vector.broadcast %323 : vector<2x1x64xf32> to vector<2x8x64xf32>
    %325 = vector.shape_cast %324 : vector<2x8x64xf32> to vector<16x64xf32>
    %326 = vector.extract_strided_slice %280 {offsets = [0, 384], sizes = [16, 64], strides = [1, 1]} : vector<16x512xf32> to vector<16x64xf32>
    %327 = arith.mulf %326, %325 : vector<16x64xf32>
    %328 = arith.addf %321, %327 : vector<16x64xf32>
    %329 = vector.extract_strided_slice %227 {offsets = [0, 7, 0], sizes = [2, 1, 64], strides = [1, 1, 1]} : vector<2x8x64xf32> to vector<2x1x64xf32>
    %330 = vector.shape_cast %329 : vector<2x1x64xf32> to vector<2x1x64xf32>
    %331 = vector.broadcast %330 : vector<2x1x64xf32> to vector<2x8x64xf32>
    %332 = vector.shape_cast %331 : vector<2x8x64xf32> to vector<16x64xf32>
    %333 = vector.extract_strided_slice %280 {offsets = [0, 448], sizes = [16, 64], strides = [1, 1]} : vector<16x512xf32> to vector<16x64xf32>
    %334 = arith.mulf %333, %332 : vector<16x64xf32>
    %335 = arith.addf %328, %334 : vector<16x64xf32>
    %cst_94 = arith.constant dense<0.000000e+00> : vector<16x64xf32>
    %336 = tpu.matmul %335, %193, %cst_94 {dimension_numbers = #tpu.dot_dimension_numbers<[1], [0], [0], [1], [0, 0, 1, 1], [], []>} : vector<16x64xf32>, vector<64x64xf32>, vector<16x64xf32> -> vector<16x64xf32>
    %337 = vector.broadcast %194 : vector<1x64xf32> to vector<16x64xf32>
    %338 = arith.addf %336, %337 : vector<16x64xf32>
    %339 = arith.addf %187, %338 : vector<16x64xf32>
    %cst_95 = arith.constant dense<0.000000e+00> : vector<16xf32>
    %340 = vector.multi_reduction <add>, %339, %cst_95 [1] : vector<16x64xf32> to vector<16xf32>
    %341 = vector.shape_cast %340 : vector<16xf32> to vector<16x1xf32>
    %cst_96 = arith.constant 6.400000e+01 : f32
    %342 = vector.broadcast %cst_96 : f32 to vector<16x1xf32>
    %343 = arith.divf %341, %342 : vector<16x1xf32>
    %344 = vector.broadcast %343 : vector<16x1xf32> to vector<16x64xf32>
    %345 = arith.subf %339, %344 : vector<16x64xf32>
    %346 = arith.mulf %345, %345 : vector<16x64xf32>
    %cst_97 = arith.constant dense<0.000000e+00> : vector<16xf32>
    %347 = vector.multi_reduction <add>, %346, %cst_97 [1] : vector<16x64xf32> to vector<16xf32>
    %348 = vector.shape_cast %347 : vector<16xf32> to vector<16x1xf32>
    %cst_98 = arith.constant 6.400000e+01 : f32
    %349 = vector.broadcast %cst_98 : f32 to vector<16x1xf32>
    %350 = arith.divf %348, %349 : vector<16x1xf32>
    %351 = vector.broadcast %343 : vector<16x1xf32> to vector<16x64xf32>
    %352 = arith.subf %339, %351 : vector<16x64xf32>
    %cst_99 = arith.constant 9.99999974E-6 : f32
    %353 = vector.broadcast %cst_99 : f32 to vector<16x1xf32>
    %354 = arith.addf %350, %353 : vector<16x1xf32>
    %355 = math.rsqrt %354 : vector<16x1xf32>
    %356 = vector.broadcast %355 : vector<16x1xf32> to vector<16x64xf32>
    %357 = arith.mulf %352, %356 : vector<16x64xf32>
    %358 = vector.broadcast %195 : vector<1x64xf32> to vector<16x64xf32>
    %359 = arith.mulf %357, %358 : vector<16x64xf32>
    %360 = vector.broadcast %196 : vector<1x64xf32> to vector<16x64xf32>
    %361 = arith.addf %359, %360 : vector<16x64xf32>
    %cst_100 = arith.constant dense<0.000000e+00> : vector<16x256xf32>
    %362 = tpu.matmul %361, %197, %cst_100 {dimension_numbers = #tpu.dot_dimension_numbers<[1], [0], [0], [1], [0, 0, 1, 1], [], []>} : vector<16x64xf32>, vector<64x256xf32>, vector<16x256xf32> -> vector<16x256xf32>
    %363 = vector.broadcast %198 : vector<1x256xf32> to vector<16x256xf32>
    %364 = arith.addf %362, %363 : vector<16x256xf32>
    %cst_101 = arith.constant 0.000000e+00 : f32
    %365 = vector.broadcast %cst_101 : f32 to vector<16x256xf32>
    %366 = arith.maximumf %364, %365 : vector<16x256xf32>
    %cst_102 = arith.constant dense<0.000000e+00> : vector<16x64xf32>
    %367 = tpu.matmul %366, %199, %cst_102 {dimension_numbers = #tpu.dot_dimension_numbers<[1], [0], [0], [1], [0, 0, 1, 1], [], []>} : vector<16x256xf32>, vector<256x64xf32>, vector<16x64xf32> -> vector<16x64xf32>
    %368 = vector.broadcast %200 : vector<1x64xf32> to vector<16x64xf32>
    %369 = arith.addf %367, %368 : vector<16x64xf32>
    %370 = arith.addf %339, %369 : vector<16x64xf32>
    %c0_103 = arith.constant 0 : index
    %c0_104 = arith.constant 0 : index
    %371 = vector.load %arg31[%c0_103, %c0_104] : memref<1x64xf32, #tpu.memory_space<vmem>>, vector<1x64xf32>
    %c0_105 = arith.constant 0 : index
    %c0_106 = arith.constant 0 : index
    %372 = vector.load %arg32[%c0_105, %c0_106] : memref<1x64xf32, #tpu.memory_space<vmem>>, vector<1x64xf32>
    %c0_107 = arith.constant 0 : index
    %c0_108 = arith.constant 0 : index
    %373 = vector.load %arg33[%c0_107, %c0_108] : memref<64x128xf32, #tpu.memory_space<vmem>>, vector<64x128xf32>
    %c0_109 = arith.constant 0 : index
    %c0_110 = arith.constant 0 : index
    %374 = vector.load %arg34[%c0_109, %c0_110] : memref<1x128xf32, #tpu.memory_space<vmem>>, vector<1x128xf32>
    %cst_111 = arith.constant dense<0.000000e+00> : vector<16xf32>
    %375 = vector.multi_reduction <add>, %370, %cst_111 [1] : vector<16x64xf32> to vector<16xf32>
    %376 = vector.shape_cast %375 : vector<16xf32> to vector<16x1xf32>
    %cst_112 = arith.constant 6.400000e+01 : f32
    %377 = vector.broadcast %cst_112 : f32 to vector<16x1xf32>
    %378 = arith.divf %376, %377 : vector<16x1xf32>
    %379 = vector.broadcast %378 : vector<16x1xf32> to vector<16x64xf32>
    %380 = arith.subf %370, %379 : vector<16x64xf32>
    %381 = arith.mulf %380, %380 : vector<16x64xf32>
    %cst_113 = arith.constant dense<0.000000e+00> : vector<16xf32>
    %382 = vector.multi_reduction <add>, %381, %cst_113 [1] : vector<16x64xf32> to vector<16xf32>
    %383 = vector.shape_cast %382 : vector<16xf32> to vector<16x1xf32>
    %cst_114 = arith.constant 6.400000e+01 : f32
    %384 = vector.broadcast %cst_114 : f32 to vector<16x1xf32>
    %385 = arith.divf %383, %384 : vector<16x1xf32>
    %386 = vector.broadcast %378 : vector<16x1xf32> to vector<16x64xf32>
    %387 = arith.subf %370, %386 : vector<16x64xf32>
    %cst_115 = arith.constant 9.99999974E-6 : f32
    %388 = vector.broadcast %cst_115 : f32 to vector<16x1xf32>
    %389 = arith.addf %385, %388 : vector<16x1xf32>
    %390 = math.rsqrt %389 : vector<16x1xf32>
    %391 = vector.broadcast %390 : vector<16x1xf32> to vector<16x64xf32>
    %392 = arith.mulf %387, %391 : vector<16x64xf32>
    %393 = vector.broadcast %371 : vector<1x64xf32> to vector<16x64xf32>
    %394 = arith.mulf %392, %393 : vector<16x64xf32>
    %395 = vector.broadcast %372 : vector<1x64xf32> to vector<16x64xf32>
    %396 = arith.addf %394, %395 : vector<16x64xf32>
    %cst_116 = arith.constant dense<0.000000e+00> : vector<16x128xf32>
    %397 = tpu.matmul %396, %373, %cst_116 {dimension_numbers = #tpu.dot_dimension_numbers<[1], [0], [0], [1], [0, 0, 1, 1], [], []>} : vector<16x64xf32>, vector<64x128xf32>, vector<16x128xf32> -> vector<16x128xf32>
    %398 = vector.broadcast %374 : vector<1x128xf32> to vector<16x128xf32>
    %399 = arith.addf %397, %398 : vector<16x128xf32>
    %400 = vector.shape_cast %399 : vector<16x128xf32> to vector<2x8x128xf32>
    %c0_117 = arith.constant 0 : index
    %c0_118 = arith.constant 0 : index
    %c0_119 = arith.constant 0 : index
    %401 = vector.load %arg35[%c0_117, %c0_118, %c0_119] : memref<2x8x128xf32, #tpu.memory_space<vmem>>, vector<2x8x128xf32>
    tpu.vector_store %arg35[%c0_117, %c0_118, %c0_119], %400 {strides = array<i32>} : memref<2x8x128xf32, #tpu.memory_space<vmem>>, vector<2x8x128xf32>,
    return
  }
  func.func @transform_0(%arg0: i32) -> (i32, i32, i32) {
    %c0_i32 = arith.constant 0 : i32
    %c0_i32_0 = arith.constant 0 : i32
    %c0_i32_1 = arith.constant 0 : i32
    return %arg0, %c0_i32, %c0_i32_0 : i32, i32, i32
  }
  func.func @transform_1(%arg0: i32) -> (i32, i32) {
    %c0_i32 = arith.constant 0 : i32
    %c0_i32_0 = arith.constant 0 : i32
    %c0_i32_1 = arith.constant 0 : i32
    return %c0_i32, %c0_i32_0 : i32, i32
  }
  func.func @transform_2(%arg0: i32) -> (i32, i32) {
    %c0_i32 = arith.constant 0 : i32
    %c0_i32_0 = arith.constant 0 : i32
    %c0_i32_1 = arith.constant 0 : i32
    return %c0_i32, %c0_i32_0 : i32, i32
  }
  func.func @transform_3(%arg0: i32) -> (i32, i32) {
    %c0_i32 = arith.constant 0 : i32
    %c0_i32_0 = arith.constant 0 : i32
    %c0_i32_1 = arith.constant 0 : i32
    return %c0_i32, %c0_i32_0 : i32, i32
  }
  func.func @transform_4(%arg0: i32) -> (i32, i32) {
    %c0_i32 = arith.constant 0 : i32
    %c0_i32_0 = arith.constant 0 : i32
    %c0_i32_1 = arith.constant 0 : i32
    return %c0_i32, %c0_i32_0 : i32, i32
  }
  func.func @transform_5(%arg0: i32) -> (i32, i32) {
    %c0_i32 = arith.constant 0 : i32
    %c0_i32_0 = arith.constant 0 : i32
    %c0_i32_1 = arith.constant 0 : i32
    return %c0_i32, %c0_i32_0 : i32, i32
  }
  func.func @transform_6(%arg0: i32) -> (i32, i32) {
    %c0_i32 = arith.constant 0 : i32
    %c0_i32_0 = arith.constant 0 : i32
    %c0_i32_1 = arith.constant 0 : i32
    return %c0_i32, %c0_i32_0 : i32, i32
  }
  func.func @transform_7(%arg0: i32) -> (i32, i32) {
    %c0_i32 = arith.constant 0 : i32
    %c0_i32_0 = arith.constant 0 : i32
    %c0_i32_1 = arith.constant 0 : i32
    return %c0_i32, %c0_i32_0 : i32, i32
  }
  func.func @transform_8(%arg0: i32) -> (i32, i32) {
    %c0_i32 = arith.constant 0 : i32
    %c0_i32_0 = arith.constant 0 : i32
    %c0_i32_1 = arith.constant 0 : i32
    return %c0_i32, %c0_i32_0 : i32, i32
  }
  func.func @transform_9(%arg0: i32) -> (i32, i32) {
    %c0_i32 = arith.constant 0 : i32
    %c0_i32_0 = arith.constant 0 : i32
    %c0_i32_1 = arith.constant 0 : i32
    return %c0_i32, %c0_i32_0 : i32, i32
  }
  func.func @transform_10(%arg0: i32) -> (i32, i32) {
    %c0_i32 = arith.constant 0 : i32
    %c0_i32_0 = arith.constant 0 : i32
    %c0_i32_1 = arith.constant 0 : i32
    return %c0_i32, %c0_i32_0 : i32, i32
  }
  func.func @transform_11(%arg0: i32) -> (i32, i32) {
    %c0_i32 = arith.constant 0 : i32
    %c0_i32_0 = arith.constant 0 : i32
    %c0_i32_1 = arith.constant 0 : i32
    return %c0_i32, %c0_i32_0 : i32, i32
  }
  func.func @transform_12(%arg0: i32) -> (i32, i32) {
    %c0_i32 = arith.constant 0 : i32
    %c0_i32_0 = arith.constant 0 : i32
    %c0_i32_1 = arith.constant 0 : i32
    return %c0_i32, %c0_i32_0 : i32, i32
  }
  func.func @transform_13(%arg0: i32) -> (i32, i32) {
    %c0_i32 = arith.constant 0 : i32
    %c0_i32_0 = arith.constant 0 : i32
    %c0_i32_1 = arith.constant 0 : i32
    return %c0_i32, %c0_i32_0 : i32, i32
  }
  func.func @transform_14(%arg0: i32) -> (i32, i32) {
    %c0_i32 = arith.constant 0 : i32
    %c0_i32_0 = arith.constant 0 : i32
    %c0_i32_1 = arith.constant 0 : i32
    return %c0_i32, %c0_i32_0 : i32, i32
  }
  func.func @transform_15(%arg0: i32) -> (i32, i32) {
    %c0_i32 = arith.constant 0 : i32
    %c0_i32_0 = arith.constant 0 : i32
    %c0_i32_1 = arith.constant 0 : i32
    return %c0_i32, %c0_i32_0 : i32, i32
  }
  func.func @transform_16(%arg0: i32) -> (i32, i32) {
    %c0_i32 = arith.constant 0 : i32
    %c0_i32_0 = arith.constant 0 : i32
    %c0_i32_1 = arith.constant 0 : i32
    return %c0_i32, %c0_i32_0 : i32, i32
  }
  func.func @transform_17(%arg0: i32) -> (i32, i32) {
    %c0_i32 = arith.constant 0 : i32
    %c0_i32_0 = arith.constant 0 : i32
    %c0_i32_1 = arith.constant 0 : i32
    return %c0_i32, %c0_i32_0 : i32, i32
  }
  func.func @transform_18(%arg0: i32) -> (i32, i32) {
    %c0_i32 = arith.constant 0 : i32
    %c0_i32_0 = arith.constant 0 : i32
    %c0_i32_1 = arith.constant 0 : i32
    return %c0_i32, %c0_i32_0 : i32, i32
  }
  func.func @transform_19(%arg0: i32) -> (i32, i32) {
    %c0_i32 = arith.constant 0 : i32
    %c0_i32_0 = arith.constant 0 : i32
    %c0_i32_1 = arith.constant 0 : i32
    return %c0_i32, %c0_i32_0 : i32, i32
  }
  func.func @transform_20(%arg0: i32) -> (i32, i32) {
    %c0_i32 = arith.constant 0 : i32
    %c0_i32_0 = arith.constant 0 : i32
    %c0_i32_1 = arith.constant 0 : i32
    return %c0_i32, %c0_i32_0 : i32, i32
  }
  func.func @transform_21(%arg0: i32) -> (i32, i32) {
    %c0_i32 = arith.constant 0 : i32
    %c0_i32_0 = arith.constant 0 : i32
    %c0_i32_1 = arith.constant 0 : i32
    return %c0_i32, %c0_i32_0 : i32, i32
  }
  func.func @transform_22(%arg0: i32) -> (i32, i32) {
    %c0_i32 = arith.constant 0 : i32
    %c0_i32_0 = arith.constant 0 : i32
    %c0_i32_1 = arith.constant 0 : i32
    return %c0_i32, %c0_i32_0 : i32, i32
  }
  func.func @transform_23(%arg0: i32) -> (i32, i32) {
    %c0_i32 = arith.constant 0 : i32
    %c0_i32_0 = arith.constant 0 : i32
    %c0_i32_1 = arith.constant 0 : i32
    return %c0_i32, %c0_i32_0 : i32, i32
  }
  func.func @transform_24(%arg0: i32) -> (i32, i32) {
    %c0_i32 = arith.constant 0 : i32
    %c0_i32_0 = arith.constant 0 : i32
    %c0_i32_1 = arith.constant 0 : i32
    return %c0_i32, %c0_i32_0 : i32, i32
  }
  func.func @transform_25(%arg0: i32) -> (i32, i32) {
    %c0_i32 = arith.constant 0 : i32
    %c0_i32_0 = arith.constant 0 : i32
    %c0_i32_1 = arith.constant 0 : i32
    return %c0_i32, %c0_i32_0 : i32, i32
  }
  func.func @transform_26(%arg0: i32) -> (i32, i32) {
    %c0_i32 = arith.constant 0 : i32
    %c0_i32_0 = arith.constant 0 : i32
    %c0_i32_1 = arith.constant 0 : i32
    return %c0_i32, %c0_i32_0 : i32, i32
  }
  func.func @transform_27(%arg0: i32) -> (i32, i32) {
    %c0_i32 = arith.constant 0 : i32
    %c0_i32_0 = arith.constant 0 : i32
    %c0_i32_1 = arith.constant 0 : i32
    return %c0_i32, %c0_i32_0 : i32, i32
  }
  func.func @transform_28(%arg0: i32) -> (i32, i32) {
    %c0_i32 = arith.constant 0 : i32
    %c0_i32_0 = arith.constant 0 : i32
    %c0_i32_1 = arith.constant 0 : i32
    return %c0_i32, %c0_i32_0 : i32, i32
  }
  func.func @transform_29(%arg0: i32) -> (i32, i32) {
    %c0_i32 = arith.constant 0 : i32
    %c0_i32_0 = arith.constant 0 : i32
    %c0_i32_1 = arith.constant 0 : i32
    return %c0_i32, %c0_i32_0 : i32, i32
  }
  func.func @transform_30(%arg0: i32) -> (i32, i32) {
    %c0_i32 = arith.constant 0 : i32
    %c0_i32_0 = arith.constant 0 : i32
    %c0_i32_1 = arith.constant 0 : i32
    return %c0_i32, %c0_i32_0 : i32, i32
  }
  func.func @transform_31(%arg0: i32) -> (i32, i32) {
    %c0_i32 = arith.constant 0 : i32
    %c0_i32_0 = arith.constant 0 : i32
    %c0_i32_1 = arith.constant 0 : i32
    return %c0_i32, %c0_i32_0 : i32, i32
  }
  func.func @transform_32(%arg0: i32) -> (i32, i32) {
    %c0_i32 = arith.constant 0 : i32
    %c0_i32_0 = arith.constant 0 : i32
    %c0_i32_1 = arith.constant 0 : i32
    return %c0_i32, %c0_i32_0 : i32, i32
  }
  func.func @transform_33(%arg0: i32) -> (i32, i32) {
    %c0_i32 = arith.constant 0 : i32
    %c0_i32_0 = arith.constant 0 : i32
    %c0_i32_1 = arith.constant 0 : i32
    return %c0_i32, %c0_i32_0 : i32, i32
  }
  func.func @transform_34(%arg0: i32) -> (i32, i32, i32) {
    %c0_i32 = arith.constant 0 : i32
    %c0_i32_0 = arith.constant 0 : i32
    %c0_i32_1 = arith.constant 0 : i32
    return %arg0, %c0_i32, %c0_i32_0 : i32, i32, i32
  }
}

</mosaic_0001>

<bundles_post_ra>
// kernel: tpu_custom_call.1
= control target key start
LH: loop header
LB: loop body
LE: loop exit
PB: predicated region body
PF: predicated region fallthrough
CT: control target
= control target key end

     0   :  { %s2680_s6 = smov 1   ;;  %s2681_s10 = smov 2   ;;  %s3771_s0 = inlined_call_operand.smem [shape: u32[35], index: -1, kind: input, shape index: {}] }
   0x1   :  { %s2735_s5 = sld [smem:[%s3771_s0]]   ;;  %s2682_s14 = smov 3  }
   0x2   :  { %s2740_s9 = sld [smem:[%s3771_s0 + %s2680_s6]]   ;;  %s2683_s18 = smov 4  }
   0x3   :  { %s2745_s13 = sld [smem:[%s3771_s0 + %s2681_s10]]   ;;  %s2684_s22 = smov 5  }
   0x4   :  { %s2750_s17 = sld [smem:[%s3771_s0 + %s2682_s14]]   ;;  %s2685_s26 = smov 6  }
   0x5   :  { %s2755_s21 = sld [smem:[%s3771_s0 + %s2683_s18]]   ;;  %s2686_s30 = smov 7  }
   0x6   :  { %s2760_s25 = sld [smem:[%s3771_s0 + %s2684_s22]]   ;;  %s2687_s4 = smov 8  }
   0x7   :  { %s2765_s29 = sld [smem:[%s3771_s0 + %s2685_s26]]   ;;  %s2688_s10 = smov 9  }
   0x8   :  { %s2770_s3 = sld [smem:[%s3771_s0 + %s2686_s30]]   ;;  %s2689_s15 = smov 10  }
   0x9   :  { %s2775_s8 = sld [smem:[%s3771_s0 + %s2687_s4]]   ;;  %s2690_s20 = smov 11  }
   0xa   :  { %s2780_s14 = sld [smem:[%s3771_s0 + %s2688_s10]]   ;;  %s2691_s26 = smov 12  }
   0xb   :  { %s2785_s19 = sld [smem:[%s3771_s0 + %s2689_s15]]   ;;  %s2692_s1 = smov 13  }
   0xc   :  { %s2790_s24 = sld [smem:[%s3771_s0 + %s2690_s20]]   ;;  %s2693_s7 = smov 14  }
   0xd   :  { %s2795_s30 = sld [smem:[%s3771_s0 + %s2691_s26]]   ;;  %s2694_s15 = smov 15  }
   0xe   :  { %s2800_s6 = sld [smem:[%s3771_s0 + %s2692_s1]]   ;;  %s2695_s22 = smov 16  }
   0xf   :  { %s2805_s12 = sld [smem:[%s3771_s0 + %s2693_s7]]   ;;  %s2696_s28 = smov 17  }
  0x10   :  { %3788 = sst [smem:[#allocation23_spill]] %s2780_s14  ;;  %s2697_s7 = smov 18  }
  0x11   :  { %s2810_s20 = sld [smem:[%s3771_s0 + %s2694_s15]]   ;;  %s2698_s15 = smov 19  }
  0x12   :  { %s2815_s27 = sld [smem:[%s3771_s0 + %s2695_s22]]   ;;  %s2699_s22 = smov 20  }
  0x13   :  { %s2820_s4 = sld [smem:[%s3771_s0 + %s2696_s28]]   ;;  %s2700_s28 = smov 21  }
  0x14   :  { %3789 = sst [smem:[#allocation24_spill]] %s2800_s6 }
  0x15   :  { %s2825_s6 = sld [smem:[%s3771_s0 + %s2697_s7]]   ;;  %s2701_s7 = smov 22  }
  0x16   :  { %s2835_s14 = sld [smem:[%s3771_s0 + %s2699_s22]]   ;;  %s2703_s22 = smov 24  }
  0x17   :  { %3790 = sst [smem:[#allocation25_spill]] %s2810_s20 }
  0x18   :  { %s2830_s20 = sld [smem:[%s3771_s0 + %s2698_s15]]   ;;  %s2702_s15 = smov 23  }
  0x19   :  { %3791 = sst [smem:[#allocation26_spill]] %s2820_s4 }
  0x1a   :  { %s2840_s4 = sld [smem:[%s3771_s0 + %s2700_s28]]   ;;  %s2704_s28 = smov 25  }
  0x1b   :  { %3792 = sst [smem:[#allocation27_spill]] %s2825_s6 }
  0x1c   :  { %3794 = sst [smem:[#allocation29_spill]] %s2835_s14 }
  0x1d   :  { %s2845_s6 = sld [smem:[%s3771_s0 + %s2701_s7]]   ;;  %s2705_s7 = smov 26  }
  0x1e   :  { %3793 = sst [smem:[#allocation28_spill]] %s2830_s20 }
  0x1f   :  { %s2850_s20 = sld [smem:[%s3771_s0 + %s2702_s15]]   ;;  %s2706_s15 = smov 27  }
  0x20   :  { %3795 = sst [smem:[#allocation30_spill]] %s2840_s4 }
  0x21   :  { %s2855_s14 = sld [smem:[%s3771_s0 + %s2703_s22]]   ;;  %s2707_s22 = smov 28  }
  0x22   :  { %s2860_s4 = sld [smem:[%s3771_s0 + %s2704_s28]]   ;;  %s2708_s28 = smov 29  }
  0x23   :  { %3796 = sst [smem:[#allocation31_spill]] %s2845_s6 }
  0x24   :  { %s2865_s6 = sld [smem:[%s3771_s0 + %s2705_s7]]   ;;  %s2709_s7 = smov 30  }
  0x25   :  { %3797 = sst [smem:[#allocation32_spill]] %s2850_s20 }
  0x26   :  { %s2870_s20 = sld [smem:[%s3771_s0 + %s2706_s15]]   ;;  %s2710_s15 = smov 31  }
  0x27   :  { %3798 = sst [smem:[#allocation33_spill]] %s2855_s14 }
  0x28   :  { %3799 = sst [smem:[#allocation34_spill]] %s2860_s4 }
  0x29   :  { %s2875_s14 = sld [smem:[%s3771_s0 + %s2707_s22]]   ;;  %s2711_s22 = smov 32  }
  0x2a   :  { %3800 = sst [smem:[#allocation35_spill]] %s2865_s6 }
  0x2b   :  { %s2880_s4 = sld [smem:[%s3771_s0 + %s2708_s28]]   ;;  %s2712_s28 = smov 33  }
  0x2c   :  { %3801 = sst [smem:[#allocation36_spill]] %s2870_s20 }
  0x2d   :  { %s2885_s6 = sld [smem:[%s3771_s0 + %s2709_s7]]   ;;  %s2713_s7 = smov 34  }
  0x2e   :  { %s2890_s20 = sld [smem:[%s3771_s0 + %s2710_s15]]  }
  0x2f   :  { %3802 = sst [smem:[#allocation37_spill]] %s2875_s14 }
  0x30   :  { %s2895_s14 = sld [smem:[%s3771_s0 + %s2711_s22]]  }
  0x31   :  { %3803 = sst [smem:[#allocation38_spill]] %s2880_s4 }
  0x32   :  { %s2900_s4 = sld [smem:[%s3771_s0 + %s2712_s28]]  }
  0x33   :  { %3804 = sst [smem:[#allocation39_spill]] %s2885_s6 }
  0x34   :  { %s2905_s6 = sld [smem:[%s3771_s0 + %s2713_s7]]  }
  0x35   :  { %74 = vsyncpa [#allocation3], 0 }
  0x36   :  { %75 = vsyncpa [#allocation6], 0 }
  0x37   :  { %76 = vsyncpa [#allocation9], 0 }
  0x38   :  { %77 = vsyncpa [#allocation12], 0 }
  0x39   :  { %78 = vsyncpa [#allocation15], 0  ;;  %s104_s15 = sshll.u32 %s2755_s21, 4  ;;  %s105_s15 = int_to_ptr.hbm [resolvable:$true] %s104_s15 }
  0x3a   :  { %79 = vsyncpa [#allocation4], 0  ;;  %s2714_s16 = smov [#allocation5]   ;;  %s134_s22 = sshll.u32 %s2785_s19, 4  ;;  %s135_s22 = int_to_ptr.hbm [resolvable:$true] %s134_s22 }
  0x3b   :  { %s106_s18 = sshll.u32 %s2714_s16, 4  ;;  %s2452_s23 = sshra.s32 %s105_s15, 4  ;;  %s107_s18 = int_to_ptr.vmem [resolvable:$true] %s106_s18  ;;  %s2453_s23 = int_to_ptr.hbm [resolvable:$true] %s2452_s23 }
  0x3c   :  { %s2454_s0 = scalar_lea.hbm %s2453_s23, 1  ;;  %s2456_s26 = scalar_lea.hbm %s2755_s21, 1 }
  0x3d   :  { %p2455_p0 = scmp.ne.s32.totalorder %s2453_s23, %s2454_s0  ;;  %p2457_p1 = scmp.lt.s32.totalorder %s2453_s23, %s2755_s21 }
  0x3e   :  { %p2458_p2 = scmp.lt.s32.totalorder %s2456_s26, %s2454_s0 }
  0x40   :  { %p2459_p3 = por %p2458_p2, %p2457_p1 }
  0x42   :  { %p2460_p4 = pnand %p2459_p3, %p2455_p0 }
  0x44   :  { %2463 = shalt.err (!%p2460_p4)
}
  0x45   :  { %109 = dma.hbm_to_vmem [thread:$0]  %s105_s15, 16, %s107_s18, [#allocation6]  }
  0x46   :  { %s2715_s28 = smov [#allocation8]   ;;  %s156_s2 = sshll.u32 %s2795_s30, 4  ;;  %s157_s2 = int_to_ptr.hbm [resolvable:$true] %s156_s2 }
  0x47   :  { %s136_s1 = sshll.u32 %s2715_s28, 4  ;;  %s2476_s7 = sshra.s32 %s135_s22, 4  ;;  %s137_s1 = int_to_ptr.vmem [resolvable:$true] %s136_s1  ;;  %s2477_s7 = int_to_ptr.hbm [resolvable:$true] %s2476_s7 }
  0x48   :  { %s2478_s10 = scalar_lea.hbm %s2477_s7, 1  ;;  %s2480_s11 = scalar_lea.hbm %s2785_s19, 1 }
  0x49   :  { %p2479_p5 = scmp.ne.s32.totalorder %s2477_s7, %s2478_s10  ;;  %p2481_p6 = scmp.lt.s32.totalorder %s2477_s7, %s2785_s19 }
  0x4a   :  { %p2482_p7 = scmp.lt.s32.totalorder %s2480_s11, %s2478_s10 }
  0x4c   :  { %p2483_p8 = por %p2482_p7, %p2481_p6 }
  0x4e   :  { %p2484_p9 = pnand %p2483_p8, %p2479_p5 }
  0x50   :  { %2487 = shalt.err (!%p2484_p9)
}
  0x51   :  { %139 = dma.hbm_to_vmem [thread:$0]  %s135_s22, 16, %s137_s1, [#allocation9]  }
  0x52   :  { %s84_s21 = sshll.u32 %s2735_s5, 4  ;;  %s2716_s15 = smov [#allocation11]   ;;  %s2915_s21 = int_to_ptr.hbm [resolvable:$true] %s84_s21 }
  0x53   :  { %s158_s16 = sshll.u32 %s2716_s15, 4  ;;  %s2500_s18 = sshra.s32 %s157_s2, 4  ;;  %s159_s16 = int_to_ptr.vmem [resolvable:$true] %s158_s16  ;;  %s2501_s18 = int_to_ptr.hbm [resolvable:$true] %s2500_s18 }
  0x54   :  { %s2502_s23 = scalar_lea.hbm %s2501_s18, 1  ;;  %s2504_s0 = scalar_lea.hbm %s2795_s30, 1 }
  0x55   :  { %p2503_p10 = scmp.ne.s32.totalorder %s2501_s18, %s2502_s23  ;;  %p2505_p11 = scmp.lt.s32.totalorder %s2501_s18, %s2795_s30 }
  0x56   :  { %p2506_p12 = scmp.lt.s32.totalorder %s2504_s0, %s2502_s23 }
  0x58   :  { %p2507_p13 = por %p2506_p12, %p2505_p11 }
  0x5a   :  { %p2508_p0 = pnand %p2507_p13, %p2503_p10 }
  0x5c   :  { %2511 = shalt.err (!%p2508_p0)
}
  0x5d   :  { %161 = dma.hbm_to_vmem [thread:$0]  %s157_s2, 16, %s159_s16, [#allocation12]  }
  0x5e   :  { %s2717_s19 = smov [#allocation2]   ;;  %s2524_s26 = sshra.s32 %s2915_s21, 4  ;;  %s2525_s26 = int_to_ptr.hbm [resolvable:$true] %s2524_s26 }
  0x5f   :  { %s86_s22 = sshll.u32 %s2717_s19, 4  ;;  %s2526_s28 = scalar_lea.hbm %s2525_s26, 16  ;;  %s87_s22 = int_to_ptr.vmem [resolvable:$true] %s86_s22 }
  0x60   :  { %p2527_p1 = scmp.ne.s32.totalorder %s2525_s26, %s2526_s28  ;;  %s2528_s1 = scalar_lea.hbm %s2735_s5, 16 }
  0x61   :  { %p2529_p2 = scmp.lt.s32.totalorder %s2525_s26, %s2735_s5  ;;  %p2530_p3 = scmp.lt.s32.totalorder %s2528_s1, %s2526_s28 }
  0x63   :  { %p2531_p4 = por %p2530_p3, %p2529_p2 }
  0x65   :  { %p2532_p5 = pnand %p2531_p4, %p2527_p1 }
  0x67   :  { %2535 = shalt.err (!%p2532_p5)
}
  0x68   :  { %s2718_s30 = smov 128   ;;  %s2719_s2 = smov 8  }
  0x69   :  { %92 = dma.hbm_to_vmem [thread:$0]  %s2915_s21, 256, %s87_s22, [#allocation3], %s2718_s30, %s2718_s30, %s2719_s2  }
  0x6a   :  { %s115_s7 = sshll.u32 %s2760_s25, 4  ;;  %s2720_s10 = smov [#allocation7]   ;;  %s116_s7 = int_to_ptr.hbm [resolvable:$true] %s115_s7 }
  0x6b   :  { %s117_s11 = sshll.u32 %s2720_s10, 4  ;;  %s145_s5 = sshll.u32 %s2790_s24, 4  ;;  %s118_s11 = int_to_ptr.vmem [resolvable:$true] %s117_s11  ;;  %s146_s5 = int_to_ptr.hbm [resolvable:$true] %s145_s5 }
  0x6c   :  { %s2548_s15 = sshra.s32 %s116_s7, 4  ;;  %s2552_s18 = scalar_lea.hbm %s2760_s25, 1  ;;  %s2549_s15 = int_to_ptr.hbm [resolvable:$true] %s2548_s15 }
  0x6d   :  { %s2550_s16 = scalar_lea.hbm %s2549_s15, 1  ;;  %p2553_p7 = scmp.lt.s32.totalorder %s2549_s15, %s2760_s25 }
  0x6e   :  { %p2551_p6 = scmp.ne.s32.totalorder %s2549_s15, %s2550_s16  ;;  %p2554_p8 = scmp.lt.s32.totalorder %s2552_s18, %s2550_s16 }
  0x70   :  { %p2555_p9 = por %p2554_p8, %p2553_p7 }
  0x72   :  { %p2556_p10 = pnand %p2555_p9, %p2551_p6 }
  0x74   :  { %2559 = shalt.err (!%p2556_p10)
}
  0x75   :  { %120 = dma.hbm_to_vmem [thread:$0]  %s116_s7, 16, %s118_s11, [#allocation6]  }
  0x76   :  { %s2721_s21 = smov [#allocation10]   ;;  %s169_s0 = sshll.u32 %s2805_s12, 4  ;;  %s170_s0 = int_to_ptr.hbm [resolvable:$true] %s169_s0 }
  0x77   :  { %s147_s23 = sshll.u32 %s2721_s21, 4  ;;  %s2572_s19 = sshra.s32 %s146_s5, 4  ;;  %s148_s23 = int_to_ptr.vmem [resolvable:$true] %s147_s23  ;;  %s2573_s19 = int_to_ptr.hbm [resolvable:$true] %s2572_s19 }
  0x78   :  { %s2574_s22 = scalar_lea.hbm %s2573_s19, 1  ;;  %s2576_s26 = scalar_lea.hbm %s2790_s24, 1 }
  0x79   :  { %p2575_p11 = scmp.ne.s32.totalorder %s2573_s19, %s2574_s22  ;;  %p2577_p12 = scmp.lt.s32.totalorder %s2573_s19, %s2790_s24 }
  0x7a   :  { %p2578_p13 = scmp.lt.s32.totalorder %s2576_s26, %s2574_s22 }
  0x7c   :  { %p2579_p0 = por %p2578_p13, %p2577_p12 }
  0x7e   :  { %p2580_p1 = pnand %p2579_p0, %p2575_p11 }
  0x80   :  { %2583 = shalt.err (!%p2580_p1)
}
  0x81   :  { %150 = dma.hbm_to_vmem [thread:$0]  %s146_s5, 16, %s148_s23, [#allocation9]  }
  0x82   :  { %s182_s25 = sshll.u32 %s2815_s27, 4  ;;  %s2722_s28 = smov [#allocation13]   ;;  %s183_s25 = int_to_ptr.hbm [resolvable:$true] %s182_s25 }
  0x83   :  { %s171_s1 = sshll.u32 %s2722_s28, 4  ;;  %s2596_s7 = sshra.s32 %s170_s0, 4  ;;  %s172_s1 = int_to_ptr.vmem [resolvable:$true] %s171_s1  ;;  %s2597_s7 = int_to_ptr.hbm [resolvable:$true] %s2596_s7 }
  0x84   :  { %s2598_s10 = scalar_lea.hbm %s2597_s7, 2  ;;  %s2600_s11 = scalar_lea.hbm %s2805_s12, 2 }
  0x85   :  { %p2599_p2 = scmp.ne.s32.totalorder %s2597_s7, %s2598_s10  ;;  %p2601_p3 = scmp.lt.s32.totalorder %s2597_s7, %s2805_s12 }
  0x86   :  { %p2602_p4 = scmp.lt.s32.totalorder %s2600_s11, %s2598_s10 }
  0x88   :  { %p2603_p5 = por %p2602_p4, %p2601_p3 }
  0x8a   :  { %p2604_p6 = pnand %p2603_p5, %p2599_p2 }
  0x8c   :  { %2607 = shalt.err (!%p2604_p6)
}
  0x8d   :  { %174 = dma.hbm_to_vmem [thread:$0]  %s170_s0, 32, %s172_s1, [#allocation12]  }
  0x8e   :  { %s2723_s24 = smov [#allocation14]   ;;  %s2620_s15 = sshra.s32 %s183_s25, 4  ;;  %s2621_s15 = int_to_ptr.hbm [resolvable:$true] %s2620_s15 }
  0x8f   :  { %s184_s5 = sshll.u32 %s2723_s24, 4  ;;  %s2622_s16 = scalar_lea.hbm %s2621_s15, 1  ;;  %s185_s5 = int_to_ptr.vmem [resolvable:$true] %s184_s5 }
  0x90   :  { %p2623_p7 = scmp.ne.s32.totalorder %s2621_s15, %s2622_s16  ;;  %s2624_s18 = scalar_lea.hbm %s2815_s27, 1 }
  0x91   :  { %p2625_p8 = scmp.lt.s32.totalorder %s2621_s15, %s2815_s27  ;;  %p2626_p9 = scmp.lt.s32.totalorder %s2624_s18, %s2622_s16 }
  0x93   :  { %p2627_p10 = por %p2626_p9, %p2625_p8 }
  0x95   :  { %p2628_p11 = pnand %p2627_p10, %p2623_p7 }
  0x97   :  { %2631 = shalt.err (!%p2628_p11)
}
  0x98   :  { %187 = dma.hbm_to_vmem [thread:$0]  %s183_s25, 16, %s185_s5, [#allocation15]  }
  0x99   :  { %2668 = dma.done.wait [#allocation3], 256  }
  0x9a   :  { %2669 = vsyncadd [#allocation3], 4294967040 }
  0x9b   :  { %2670 = dma.done.wait [#allocation6], 32  }
  0x9c   :  { %2671 = vsyncadd [#allocation6], 4294967264 }
  0x9d   :  { %2672 = dma.done.wait [#allocation9], 32  }
  0x9e   :  { %2673 = vsyncadd [#allocation9], 4294967264 }
  0x9f   :  { %2674 = dma.done.wait [#allocation12], 48  }
  0xa0   :  { %2675 = vsyncadd [#allocation12], 4294967248 }
  0xa1   :  { %2676 = dma.done.wait [#allocation15], 16  }
  0xa2   :  { %2677 = vsyncadd [#allocation15], 4294967280  ;;  %vm447_vm0 = vcmask 523264   ;;  %v254_v0 = vld [vmem:[#allocation2] sm:$0xff]  ;;  %v255_v2 = vld [vmem:[#allocation2 + $0x8] sm:$0xff]  ;;  %v2724_v4 = vmov 64.0  }
  0xa3   :  { %v448_v1 = vsel %vm447_vm0, %v254_v0, 0.0  ;;  %v451_v3 = vsel %vm447_vm0, %v255_v2, 0.0  ;;  %2350 = vrcp.f32 %v2724_v4  ;;  %v369_v21 = vld [vmem:[%s2765_s29 + $0x38] sm:$0xff]  ;;  %v368_v24 = vld [vmem:[%s2765_s29 + $0x30] sm:$0xff]  ;;  %v367_v27 = vld [vmem:[%s2765_s29 + $0x28] sm:$0xff]  ;;  %s3814_s12 = sld [smem:[#allocation25_spill]] }
  0xa4   :  { %449 = vadd.xlane.f32.xlu0 %v448_v1  ;;  %v377_v22 = vld [vmem:[%s2770_s3 + $0x38] sm:$0xff]  ;;  %523 = vmatpush.msra.mxu0 %v369_v21  ;;  %v376_v25 = vld [vmem:[%s2770_s3 + $0x30] sm:$0xff]  ;;  %v375_v28 = vld [vmem:[%s2770_s3 + $0x28] sm:$0xff]  ;;  %s3820_s27 = sld [smem:[#allocation29_spill]]  ;;  %s2143_s10 = sshll.u32 %s2905_s6, 4  ;;  %s2144_s10 = int_to_ptr.hbm [resolvable:$true] %s2143_s10 }
  0xa5   :  { %v385_v23 = vld [vmem:[%s2775_s8 + $0x38] sm:$0xff]  ;;  %546 = vmatpush.msra.mxu1 %v377_v22  ;;  %v384_v26 = vld [vmem:[%s2775_s8 + $0x30] sm:$0xff]  ;;  %v383_v29 = vld [vmem:[%s2775_s8 + $0x28] sm:$0xff]  ;;  %s3821_s21 = sld [smem:[#allocation28_spill]]  ;;  %s2656_s11 = sshra.s32 %s2144_s10, 4  ;;  %s2657_s11 = int_to_ptr.hbm [resolvable:$true] %s2656_s11 }
  0xa6   :  { %569 = vmatpush.msra.mxu2 %v385_v23  ;;  %524 = vmatpush.msra.mxu0 %v368_v24  ;;  %v366_v30 = vld [vmem:[%s2765_s29 + $0x20] sm:$0xff]  ;;  %v365_v33 = vld [vmem:[%s2765_s29 + $0x18] sm:$0xff]  ;;  %v364_v36 = vld [vmem:[%s2765_s29 + $0x10] sm:$0xff]  ;;  %s3822_s23 = sld [smem:[#allocation30_spill]]  ;;  %s2658_s24 = scalar_lea.hbm %s2657_s11, 16 }
  0xa7   :  { %547 = vmatpush.msra.mxu1 %v376_v25  ;;  %v374_v31 = vld [vmem:[%s2770_s3 + $0x20] sm:$0xff]  ;;  %v373_v34 = vld [vmem:[%s2770_s3 + $0x18] sm:$0xff]  ;;  %v372_v37 = vld [vmem:[%s2770_s3 + $0x10] sm:$0xff]  ;;  %s3823_s0 = sld [smem:[#allocation26_spill]]  ;;  %p2659_p12 = scmp.ne.s32.totalorder %s2657_s11, %s2658_s24 }
  0xa8   :  { %570 = vmatpush.msra.mxu2 %v384_v26  ;;  %525 = vmatpush.msra.mxu0 %v367_v27  ;;  %v382_v32 = vld [vmem:[%s2775_s8 + $0x20] sm:$0xff]  ;;  %v381_v35 = vld [vmem:[%s2775_s8 + $0x18] sm:$0xff]  ;;  %v380_v38 = vld [vmem:[%s2775_s8 + $0x10] sm:$0xff]  ;;  %s3824_s19 = sld [smem:[#allocation27_spill]]  ;;  %s2660_s5 = scalar_lea.hbm %s2905_s6, 16 }
  0xa9   :  { %v2351_v5 = vpop.eup %2350  ;;  %548 = vmatpush.msra.mxu1 %v375_v28  ;;  %v363_v39 = vld [vmem:[%s2765_s29 + $0x8] sm:$0xff]  ;;  %v362_v42 = vld [vmem:[%s2765_s29] sm:$0xff]  ;;  %v2335_v59 = vld [vmem:[#allocation5] ss:$0 sm:$0xff]  ;;  %s2725_s29 = smov 64   ;;  %s3830_s22 = sld [smem:[#allocation37_spill]] }
  0xaa   :  { %v455_v6 = vmul.f32 64.0, %v2351_v5  ;;  %vm459_vm1 = vweird.f32 %v2351_v5  ;;  %571 = vmatpush.msra.mxu2 %v383_v29  ;;  %526 = vmatpush.msra.mxu0 %v366_v30  ;;  %v371_v40 = vld [vmem:[%s2770_s3 + $0x8] sm:$0xff]  ;;  %v370_v43 = vld [vmem:[%s2770_s3] sm:$0xff]  ;;  %v2336_v63 = vld [vmem:[#allocation7] ss:$0 sm:$0xff]  ;;  %s3812_s3 = sld [smem:[#allocation23_spill]]  ;;  %p2661_p13 = scmp.lt.s32.totalorder %s2657_s11, %s2905_s6 }
  0xab   :  { %549 = vmatpush.msra.mxu1 %v374_v31  ;;  %v379_v41 = vld [vmem:[%s2775_s8 + $0x8] sm:$0xff]  ;;  %v378_v44 = vld [vmem:[%s2775_s8] sm:$0xff]  ;;  %s3813_s8 = sld [smem:[#allocation24_spill]]  ;;  %p2662_p0 = scmp.lt.s32.totalorder %s2660_s5, %s2658_s24 }
  0xac   :  { %452 = vadd.xlane.f32.xlu0 %v451_v3  ;;  %v456_v7 = vsub.f32 1.0, %v455_v6  ;;  %572 = vmatpush.msra.mxu2 %v382_v32  ;;  %s3831_s26 = sld [smem:[#allocation33_spill]] }
  0xad   :  { %527 = vmatpush.msra.mxu0 %v365_v33  ;;  %550 = vmatpush.msra.mxu1 %v373_v34  ;;  %s3832_s25 = sld [smem:[#allocation34_spill]]  ;;  %p2663_p1 = por %p2662_p0, %p2661_p13 }
  0xae   :  { %v457_v8 = vmul.f32 %v2351_v5, %v456_v7  ;;  %573 = vmatpush.msra.mxu2 %v381_v35  ;;  %s3833_s28 = sld [smem:[#allocation36_spill]] }
  0xaf   :  { %528 = vmatpush.msra.mxu0 %v364_v36  ;;  %551 = vmatpush.msra.mxu1 %v372_v37  ;;  %s3834_s1 = sld [smem:[#allocation38_spill]]  ;;  %p2664_p2 = pnand %p2663_p1, %p2659_p12 }
  0xb0   :  { %v458_v9 = vadd.f32 %v2351_v5, %v457_v8  ;;  %574 = vmatpush.msra.mxu2 %v380_v38  ;;  %s3835_s7 = sld [smem:[#allocation39_spill]] }
  0xb1   :  { %529 = vmatpush.msra.mxu0 %v363_v39  ;;  %552 = vmatpush.msra.mxu1 %v371_v40 }
  0xb2   :  { %v2940_v10 = vsel %vm459_vm1, %v2351_v5, %v458_v9  ;;  %575 = vmatpush.msra.mxu2 %v379_v41 }
  0xb3   :  { %530 = vmatpush.msra.mxu0 %v362_v42  ;;  %553 = vmatpush.msra.mxu1 %v370_v43 }
  0xb4   :  { %576 = vmatpush.msra.mxu2 %v378_v44 }
 0x117   :  { %v450_v11 = vpop.xlane.xlu0 %449 }
 0x118   :  { %v461_v12 = vmul.f32 %v2940_v10, %v450_v11 }
 0x11a   :  { %v2943_v13 = vsub.f32 %v254_v0, %v461_v12 }
 0x11c   :  { %v465_v14 = vmul.f32 %v2943_v13, %v2943_v13 }
 0x11e   :  { %v467_v15 = vsel %vm447_vm0, %v465_v14, 0.0 }
 0x11f   :  { %468 = vadd.xlane.f32.xlu1 %v467_v15  ;;  %v453_v16 = vpop.xlane.xlu0 %452 }
 0x120   :  { %v462_v17 = vmul.f32 %v2940_v10, %v453_v16 }
 0x122   :  { %v2949_v18 = vsub.f32 %v255_v2, %v462_v17 }
 0x124   :  { %v466_v19 = vmul.f32 %v2949_v18, %v2949_v18 }
 0x126   :  { %v470_v20 = vsel %vm447_vm0, %v466_v19, 0.0 }
 0x127   :  { %471 = vadd.xlane.f32.xlu1 %v470_v20 }
 0x192   :  { %v469_v45 = vpop.xlane.xlu1 %468 }
 0x193   :  { %v473_v46 = vmul.f32 %v469_v45, %v2940_v10  ;;  %v271_v45 = vld [vmem:[%s2740_s9 + $0x78] sm:$0xff] }
 0x194   :  { %656 = vmatpush.msra.mxu3 %v271_v45  ;;  %v3112_v45 = vld [vmem:[%s2740_s9 + $0x160] sm:$0xff] }
 0x195   :  { %v475_v47 = vadd.f32 1e-05, %v473_v46  ;;  %v319_v46 = vld [vmem:[%s2740_s9 + $0x1f8] sm:$0xff] }
 0x196   :  { %725 = vmatpush.msrb.mxu2 %v319_v46  ;;  %v3117_v46 = vld [vmem:[%s2740_s9 + $0x158] sm:$0xff] }
 0x197   :  { %2352 = vrsqrt.f32 %v475_v47  ;;  %vm483_vm3 = vweird.f32 %v475_v47 }
 0x19a   :  { %v472_v48 = vpop.xlane.xlu1 %471 }
 0x19b   :  { %v474_v49 = vmul.f32 %v472_v48, %v2940_v10  ;;  %v318_v48 = vld [vmem:[%s2740_s9 + $0x1f0] sm:$0xff] }
 0x19c   :  { %726 = vmatpush.msrb.mxu2 %v318_v48  ;;  %v3124_v48 = vld [vmem:[%s2740_s9 + $0x148] sm:$0xff] }
 0x19d   :  { %v2353_v50 = vpop.eup %2352  ;;  %v476_v51 = vadd.f32 1e-05, %v474_v49  ;;  %v269_v49 = vld [vmem:[%s2740_s9 + $0x68] sm:$0xff] }
 0x19e   :  { %v478_v52 = vmul.f32 %v2353_v50, %v475_v47  ;;  %vm484_vm2 = vweird.f32 %v2353_v50  ;;  %v270_v47 = vld [vmem:[%s2740_s9 + $0x70] sm:$0xff] }
 0x19f   :  { %2354 = vrsqrt.f32 %v476_v51  ;;  %vm485_vm4 = vmor %vm483_vm3, %vm484_vm2  ;;  %vm493_vm6 = vweird.f32 %v476_v51  ;;  %657 = vmatpush.msra.mxu3 %v270_v47  ;;  %v3120_v47 = vld [vmem:[%s2740_s9 + $0x150] sm:$0xff] }
 0x1a0   :  { %v479_v53 = vmul.f32 %v2353_v50, %v478_v52  ;;  %v287_v52 = vld [vmem:[%s2740_s9 + $0xf8] sm:$0xff] }
 0x1a1   :  { %679 = vmatpush.msrb.mxu0 %v287_v52  ;;  %658 = vmatpush.msra.mxu3 %v269_v49  ;;  %v3128_v49 = vld [vmem:[%s2740_s9 + $0x140] sm:$0xff]  ;;  %v3136_v52 = vld [vmem:[%s2740_s9 + $0x130] sm:$0xff] }
 0x1a2   :  { %v480_v54 = vmul.f32 0.5, %v479_v53  ;;  %v268_v53 = vld [vmem:[%s2740_s9 + $0x60] sm:$0xff] }
 0x1a3   :  { %659 = vmatpush.msra.mxu3 %v268_v53  ;;  %v3140_v53 = vld [vmem:[%s2740_s9 + $0x128] sm:$0xff] }
 0x1a4   :  { %v481_v55 = vsub.f32 1.5, %v480_v54  ;;  %v316_v54 = vld [vmem:[%s2740_s9 + $0x1e0] sm:$0xff] }
 0x1a5   :  { %v2355_v56 = vpop.eup %2354 }
 0x1a6   :  { %v482_v57 = vmul.f32 %v2353_v50, %v481_v55  ;;  %v488_v58 = vmul.f32 %v2355_v56, %v476_v51  ;;  %vm494_vm5 = vweird.f32 %v2355_v56  ;;  %v286_v55 = vld [vmem:[%s2740_s9 + $0xf0] sm:$0xff] }
 0x1a7   :  { %vm495_vm7 = vmor %vm493_vm6, %vm494_vm5  ;;  %680 = vmatpush.msrb.mxu0 %v286_v55  ;;  %v3148_v55 = vld [vmem:[%s2740_s9 + $0x118] sm:$0xff] }
 0x1a8   :  { %v486_v60 = vsel %vm485_vm4, %v2353_v50, %v482_v57  ;;  %v489_v61 = vmul.f32 %v2355_v56, %v488_v58  ;;  %v317_v50 = vld [vmem:[%s2740_s9 + $0x1e8] sm:$0xff]  ;;  %v267_v58 = vld [vmem:[%s2740_s9 + $0x58] sm:$0xff] }
 0x1a9   :  { %v497_v62 = vmul.f32 %v486_v60, %v2943_v13  ;;  %727 = vmatpush.msrb.mxu2 %v317_v50  ;;  %v284_v60 = vld [vmem:[%s2740_s9 + $0xe0] sm:$0xff]  ;;  %660 = vmatpush.msra.mxu3 %v267_v58  ;;  %v3132_v50 = vld [vmem:[%s2740_s9 + $0x138] sm:$0xff] }
 0x1aa   :  { %v490_v0 = vmul.f32 0.5, %v489_v61  ;;  %v266_v61 = vld [vmem:[%s2740_s9 + $0x50] sm:$0xff] }
 0x1ab   :  { %v502_v1 = vmul.f32 %v2335_v59, %v497_v62  ;;  %728 = vmatpush.msrb.mxu2 %v316_v54  ;;  %v314_v62 = vld [vmem:[%s2740_s9 + $0x1d0] sm:$0xff]  ;;  %661 = vmatpush.msra.mxu3 %v266_v61  ;;  %v3144_v54 = vld [vmem:[%s2740_s9 + $0x120] sm:$0xff] }
 0x1ac   :  { %v491_v2 = vsub.f32 1.5, %v490_v0  ;;  %v265_v0 = vld [vmem:[%s2740_s9 + $0x48] sm:$0xff]  ;;  %v3161_v61 = vld [vmem:[%s2740_s9 + $0x100] sm:$0xff] }
 0x1ad   :  { %v507_v3 = vadd.f32 %v2336_v63, %v502_v1  ;;  %v313_v1 = vld [vmem:[%s2740_s9 + $0x1c8] sm:$0xff]  ;;  %662 = vmatpush.msra.mxu3 %v265_v0 }
 0x1ae   :  { %v492_v4 = vmul.f32 %v2355_v56, %v491_v2  ;;  %v282_v2 = vld [vmem:[%s2740_s9 + $0xd0] sm:$0xff] }
 0x1af   :  { %2194 = vmatmul.msk.f32.vlgmr.msra.gmra.mxu0 %vm447_vm0, %v507_v3  ;;  %2196 = vmatmul.msk.f32.vlgmr.msra.gmra.mxu1 %vm447_vm0, %v507_v3 }
 0x1b0   :  { %v496_v5 = vsel %vm495_vm7, %v2355_v56, %v492_v4  ;;  %2198 = vmatmul.msk.f32.vlgmr.msra.gmra.mxu2 %vm447_vm0, %v507_v3  ;;  %v285_v56 = vld [vmem:[%s2740_s9 + $0xe8] sm:$0xff]  ;;  %v264_v3 = vld [vmem:[%s2740_s9 + $0x40] sm:$0xff] }
 0x1b1   :  { %v498_v6 = vmul.f32 %v496_v5, %v2949_v18  ;;  %681 = vmatpush.msrb.mxu0 %v285_v56  ;;  %v312_v4 = vld [vmem:[%s2740_s9 + $0x1c0] sm:$0xff]  ;;  %v281_v5 = vld [vmem:[%s2740_s9 + $0xc8] sm:$0xff]  ;;  %663 = vmatpush.msra.mxu3 %v264_v3  ;;  %v3152_v56 = vld [vmem:[%s2740_s9 + $0x110] sm:$0xff] }
 0x1b3   :  { %v503_v7 = vmul.f32 %v2335_v59, %v498_v6  ;;  %v315_v59 = vld [vmem:[%s2740_s9 + $0x1d8] sm:$0xff]  ;;  %682 = vmatpush.msrb.mxu0 %v284_v60  ;;  %v3157_v60 = vld [vmem:[%s2740_s9 + $0x108] sm:$0xff] }
 0x1b4   :  { %729 = vmatpush.msrb.mxu2 %v315_v59 }
 0x1b5   :  { %v508_v8 = vadd.f32 %v2336_v63, %v503_v7  ;;  %v283_v63 = vld [vmem:[%s2740_s9 + $0xd8] sm:$0xff] }
 0x1b6   :  { %730 = vmatpush.msrb.mxu2 %v314_v62  ;;  %683 = vmatpush.msrb.mxu0 %v283_v63  ;;  %v263_v7 = vld [vmem:[%s2740_s9 + $0x38] sm:$0xff] }
 0x1b7   :  { %2195 = vmatmul.msk.f32.gmra.mxu0 %vm447_vm0, %v508_v8  ;;  %2197 = vmatmul.msk.f32.gmra.mxu1 %vm447_vm0, %v508_v8 }
 0x1b8   :  { %2199 = vmatmul.msk.f32.gmra.mxu2 %vm447_vm0, %v508_v8  ;;  %v311_v8 = vld [vmem:[%s2740_s9 + $0x1b8] sm:$0xff]  ;;  %684 = vmatpush.msrb.mxu0 %v282_v2 }
 0x1b9   :  { %731 = vmatpush.msrb.mxu2 %v313_v1  ;;  %664 = vmatpush.msra.mxu3 %v263_v7 }
 0x1ba   :  { %685 = vmatpush.msrb.mxu0 %v281_v5 }
 0x1bb   :  { %732 = vmatpush.msrb.mxu2 %v312_v4 }
 0x1bd   :  { %733 = vmatpush.msrb.mxu2 %v311_v8 }
 0x22c   :  { %v532_v9 = vpop.f32.mrf.mxu0  ;;  %v555_v11 = vpop.f32.mrf.mxu1 }
 0x22d   :  { %v588_v12 = vperm.slane %v555_v11, 1  ;;  %v612_v13 = vperm.slane %v555_v11, 7  ;;  %v584_v14 = vperm.slane %v555_v11, 0  ;;  %v608_v15 = vperm.slane %v555_v11, 6 }
 0x22e   :  { %v592_v16 = vperm.slane %v555_v11, 2  ;;  %v600_v17 = vperm.slane %v555_v11, 4  ;;  %v604_v25 = vperm.slane %v555_v11, 5  ;;  %v596_v26 = vperm.slane %v555_v11, 3  ;;  %v262_v11 = vld [vmem:[%s2740_s9 + $0x30] sm:$0xff] }
 0x22f   :  { %v590_v19 = vmul.f32 %v588_v12, %v532_v9  ;;  %v614_v20 = vmul.f32 %v612_v13, %v532_v9  ;;  %v2988_v21 = vmul.f32 %v584_v14, %v532_v9  ;;  %v2990_v18 = vmul.f32 %v608_v15, %v532_v9  ;;  %v310_v12 = vld [vmem:[%s2740_s9 + $0x1b0] sm:$0xff]  ;;  %v3053_v13 = vld [vmem:[%s2740_s9 + $0xb8] sm:$0xff]  ;;  %v261_v14 = vld [vmem:[%s2740_s9 + $0x28] sm:$0xff]  ;;  %665 = vmatpush.msra.mxu3 %v262_v11 }
 0x230   :  { %v2992_v22 = vmul.f32 %v592_v16, %v532_v9  ;;  %v2994_v23 = vmul.f32 %v600_v17, %v532_v9  ;;  %v606_v33 = vmul.f32 %v604_v25, %v532_v9  ;;  %v598_v34 = vmul.f32 %v596_v26, %v532_v9  ;;  %v280_v9 = vld [vmem:[%s2740_s9 + $0xc0] sm:$0xff]  ;;  %v309_v15 = vld [vmem:[%s2740_s9 + $0x1a8] sm:$0xff]  ;;  %734 = vmatpush.msrb.mxu2 %v310_v12  ;;  %v3058_v16 = vld [vmem:[%s2740_s9 + $0xb0] sm:$0xff] }
 0x231   :  { %v2295_v24 = vpack.i.bf16 %v614_v20, %v590_v19  ;;  %686 = vmatpush.msrb.mxu0 %v280_v9  ;;  %v260_v17 = vld [vmem:[%s2740_s9 + $0x20] sm:$0xff]  ;;  %666 = vmatpush.msra.mxu3 %v261_v14  ;;  %v307_v25 = vld [vmem:[%s2740_s9 + $0x198] sm:$0xff]  ;;  %v258_v26 = vld [vmem:[%s2740_s9 + $0x10] sm:$0xff] }
 0x232   :  { %v308_v19 = vld [vmem:[%s2740_s9 + $0x1a0] sm:$0xff]  ;;  %735 = vmatpush.msrb.mxu2 %v309_v15 }
 0x233   :  { %2296 = vrot.lane.b32.xlu2 %v2295_v24, %s2725_s29  ;;  %v3012_v42 = vpop.f32.mrf.mxu2  ;;  %687 = vmatpush.msrb.mxu0 %v3053_v13  ;;  %v259_v24 = vld [vmem:[%s2740_s9 + $0x18] sm:$0xff] }
 0x234   :  { %v2997_v27 = vpop.f32.mrf.mxu1  ;;  %v3003_v32 = vpop.f32.mrf.mxu0  ;;  %v897_v43 = vperm.slane %v3012_v42, 1  ;;  %v925_v44 = vperm.slane %v3012_v42, 3  ;;  %v981_v20 = vperm.slane %v3012_v42, 7  ;;  %667 = vmatpush.msra.mxu3 %v260_v17  ;;  %736 = vmatpush.msrb.mxu2 %v308_v19 }
 0x235   :  { %v613_v28 = vperm.slane %v2997_v27, 7  ;;  %v597_v29 = vperm.slane %v2997_v27, 3  ;;  %v605_v30 = vperm.slane %v2997_v27, 5  ;;  %v589_v31 = vperm.slane %v2997_v27, 1  ;;  %688 = vmatpush.msrb.mxu0 %v3058_v16 }
 0x236   :  { %668 = vmatpush.msra.mxu3 %v259_v24  ;;  %737 = vmatpush.msrb.mxu2 %v307_v25  ;;  %v585_v0 = vperm.slane %v2997_v27, 0 }
 0x237   :  { %v615_v35 = vmul.f32 %v613_v28, %v3003_v32  ;;  %v599_v36 = vmul.f32 %v597_v29, %v3003_v32  ;;  %v607_v37 = vmul.f32 %v605_v30, %v3003_v32  ;;  %v591_v38 = vmul.f32 %v589_v31, %v3003_v32  ;;  %v306_v28 = vld [vmem:[%s2740_s9 + $0x190] sm:$0xff]  ;;  %v257_v30 = vld [vmem:[%s2740_s9 + $0x8] sm:$0xff] }
 0x238   :  { %669 = vmatpush.msra.mxu3 %v258_v26  ;;  %738 = vmatpush.msrb.mxu2 %v306_v28  ;;  %v3074_v31 = vld [vmem:[%s2740_s9 + $0xa8] sm:$0xff]  ;;  %v587_v4 = vmul.f32 %v585_v0, %v3003_v32 }
 0x239   :  { %v2305_v39 = vpack.i.bf16 %v615_v35, %v606_v33  ;;  %v2310_v40 = vpack.i.bf16 %v607_v37, %v599_v36  ;;  %v2300_v41 = vpack.i.bf16 %v591_v38, %v598_v34  ;;  %v305_v33 = vld [vmem:[%s2740_s9 + $0x188] sm:$0xff]  ;;  %689 = vmatpush.msrb.mxu0 %v3074_v31  ;;  %v256_v34 = vld [vmem:[%s2740_s9] sm:$0xff]  ;;  %v3085_v37 = vld [vmem:[%s2740_s9 + $0x98] sm:$0xff] }
 0x23a   :  { %670 = vmatpush.msra.mxu3 %v257_v30  ;;  %v3080_v35 = vld [vmem:[%s2740_s9 + $0xa0] sm:$0xff]  ;;  %739 = vmatpush.msrb.mxu2 %v305_v33  ;;  %v3088_v38 = vld [vmem:[%s2740_s9 + $0x178] sm:$0xff] }
 0x23b   :  { %2306 = vrot.lane.b32.xlu0 %v2305_v39, %s2725_s29  ;;  %2311 = vrot.lane.b32.xlu1 %v2310_v40, %s2725_s29  ;;  %v3024_v51 = vpop.f32.mrf.mxu2  ;;  %v304_v36 = vld [vmem:[%s2740_s9 + $0x180] sm:$0xff]  ;;  %v3092_v39 = vld [vmem:[%s2740_s9 + $0x90] sm:$0xff] }
 0x23c   :  { %2301 = vrot.lane.b32.xlu2 %v2300_v41, %s2725_s29  ;;  %v898_v57 = vperm.slane %v3024_v51, 1  ;;  %v926_v6 = vperm.slane %v3024_v51, 3  ;;  %v982_v29 = vperm.slane %v3024_v51, 7  ;;  %671 = vmatpush.msra.mxu3 %v256_v34  ;;  %v3095_v40 = vld [vmem:[%s2740_s9 + $0x170] sm:$0xff]  ;;  %v3101_v41 = vld [vmem:[%s2740_s9 + $0x88] sm:$0xff] }
 0x23d   :  { %690 = vmatpush.msrb.mxu0 %v3080_v35  ;;  %740 = vmatpush.msrb.mxu2 %v304_v36  ;;  %v327_v36 = vld [vmem:[%s2745_s13 + $0x38] sm:$0xff] }
 0x23e   :  { %702 = vmatpush.msrb.mxu1 %v3088_v38  ;;  %776 = vmatpush.msrb.mxu3 %v327_v36 }
 0x23f   :  { %691 = vmatpush.msrb.mxu0 %v3085_v37 }
 0x240   :  { %703 = vmatpush.msrb.mxu1 %v3095_v40 }
 0x241   :  { %692 = vmatpush.msrb.mxu0 %v3092_v39 }
 0x243   :  { %901 = vrot.lane.b32.xlu1 %v897_v43, %s2725_s29  ;;  %v3104_v43 = vld [vmem:[%s2740_s9 + $0x168] sm:$0xff]  ;;  %693 = vmatpush.msrb.mxu0 %v3101_v41 }
 0x244   :  { %704 = vmatpush.msrb.mxu1 %v3104_v43 }
 0x246   :  { %705 = vmatpush.msrb.mxu1 %v3112_v45 }
 0x248   :  { %706 = vmatpush.msrb.mxu1 %v3117_v46 }
 0x24a   :  { %707 = vmatpush.msrb.mxu1 %v3120_v47 }
 0x24b   :  { %929 = vrot.lane.b32.xlu1 %v925_v44, %s2725_s29  ;;  %v3109_v44 = vld [vmem:[%s2740_s9 + $0x80] sm:$0xff] }
 0x24c   :  { %694 = vmatpush.msrb.mxu0 %v3109_v44  ;;  %708 = vmatpush.msrb.mxu1 %v3124_v48 }
 0x24e   :  { %709 = vmatpush.msrb.mxu1 %v3128_v49 }
 0x250   :  { %710 = vmatpush.msrb.mxu1 %v3132_v50 }
 0x252   :  { %711 = vmatpush.msrb.mxu1 %v3136_v52 }
 0x253   :  { %903 = vrot.lane.b32.xlu1 %v898_v57, %s2725_s29 }
 0x254   :  { %712 = vmatpush.msrb.mxu1 %v3140_v53 }
 0x256   :  { %713 = vmatpush.msrb.mxu1 %v3144_v54 }
 0x258   :  { %714 = vmatpush.msrb.mxu1 %v3148_v55 }
 0x25a   :  { %715 = vmatpush.msrb.mxu1 %v3152_v56 }
 0x25b   :  { %931 = vrot.lane.b32.xlu1 %v926_v6, %s2725_s29 }
 0x25c   :  { %716 = vmatpush.msrb.mxu1 %v3157_v60 }
 0x25e   :  { %717 = vmatpush.msrb.mxu1 %v3161_v61 }
 0x263   :  { %985 = vrot.lane.b32.xlu1 %v981_v20, %s2725_s29  ;;  %v601_v20 = vperm.slane %v2997_v27, 4 }
 0x265   :  { %v603_v25 = vmul.f32 %v601_v20, %v3003_v32  ;;  %v355_v20 = vld [vmem:[%s2750_s17 + $0xd8] sm:$0xff] }
 0x26b   :  { %987 = vrot.lane.b32.xlu1 %v982_v29, %s2725_s29 }
 0x28d   :  { %v2297_v57 = vpop.permute.xlu2 %2296 }
 0x28e   :  { %v2299_v58 = vunpack.i.h.bf16 %v2297_v57  ;;  %v2298_v59 = vunpack.i.l.bf16 %v2297_v57  ;;  %v326_v57 = vld [vmem:[%s2745_s13 + $0x30] sm:$0xff] }
 0x28f   :  { %777 = vmatpush.msrb.mxu3 %v326_v57 }
 0x290   :  { %v648_v62 = vsel %vm447_vm0, %v2988_v21, %v2298_v59  ;;  %v654_v63 = vsel %vm447_vm0, %v2990_v18, %v2299_v58  ;;  %v593_v21 = vperm.slane %v2997_v27, 2  ;;  %v609_v18 = vperm.slane %v2997_v27, 6 }
 0x291   :  { %672 = vmatmul.f32.vlgmr.msra.gmra.mxu3 %v648_v62  ;;  %741 = vmatmul.f32.vlgmr.msrb.gmra.mxu2 %v654_v63 }
 0x292   :  { %v595_v9 = vmul.f32 %v593_v21, %v3003_v32  ;;  %v611_v15 = vmul.f32 %v609_v18, %v3003_v32  ;;  %v324_v21 = vld [vmem:[%s2745_s13 + $0x20] sm:$0xff]  ;;  %v323_v18 = vld [vmem:[%s2745_s13 + $0x18] sm:$0xff] }
 0x296   :  { %v2302_v1 = vpop.permute.xlu2 %2301 }
 0x297   :  { %v2304_v2 = vunpack.i.h.bf16 %v2302_v1  ;;  %v2303_v3 = vunpack.i.l.bf16 %v2302_v1 }
 0x299   :  { %v649_v5 = vsel %vm447_vm0, %v587_v4, %v2304_v2  ;;  %v650_v6 = vsel %vm447_vm0, %v2992_v22, %v2303_v3  ;;  %v953_v4 = vperm.slane %v3012_v42, 5 }
 0x29a   :  { %675 = vmatmul.f32.gmra.mxu3 %v649_v5  ;;  %695 = vmatmul.f32.vlgmr.msrb.gmra.mxu0 %v650_v6  ;;  %v954_v5 = vperm.slane %v3024_v51, 5  ;;  %v325_v6 = vld [vmem:[%s2745_s13 + $0x28] sm:$0xff] }
 0x29b   :  { %778 = vmatpush.msrb.mxu3 %v325_v6  ;;  %v3254_v6 = vld [vmem:[%s2750_s17 + $0x40] sm:$0xff] }
 0x29d   :  { %779 = vmatpush.msrb.mxu3 %v324_v21  ;;  %v338_v21 = vld [vmem:[%s2750_s17 + $0x50] sm:$0xff] }
 0x29f   :  { %780 = vmatpush.msrb.mxu3 %v323_v18  ;;  %v339_v18 = vld [vmem:[%s2750_s17 + $0x58] sm:$0xff] }
 0x2ad   :  { %v2307_v7 = vpop.permute.xlu0 %2306  ;;  %v2312_v8 = vpop.permute.xlu1 %2311 }
 0x2ae   :  { %v2309_v11 = vunpack.i.h.bf16 %v2307_v7  ;;  %v2308_v12 = vunpack.i.l.bf16 %v2307_v7  ;;  %v2313_v14 = vunpack.i.l.bf16 %v2312_v8  ;;  %v2314_v24 = vunpack.i.h.bf16 %v2312_v8  ;;  %v322_v7 = vld [vmem:[%s2745_s13 + $0x10] sm:$0xff]  ;;  %v321_v8 = vld [vmem:[%s2745_s13 + $0x8] sm:$0xff] }
 0x2af   :  { %781 = vmatpush.msrb.mxu3 %v322_v7  ;;  %v3261_v7 = vld [vmem:[%s2750_s17 + $0x28] sm:$0xff] }
 0x2b0   :  { %v651_v17 = vsel %vm447_vm0, %v595_v9, %v2313_v14  ;;  %v652_v22 = vsel %vm447_vm0, %v2994_v23, %v2308_v12  ;;  %v655_v19 = vsel %vm447_vm0, %v611_v15, %v2309_v11  ;;  %v653_v26 = vsel %vm447_vm0, %v603_v25, %v2314_v24  ;;  %v320_v9 = vld [vmem:[%s2745_s13] sm:$0xff]  ;;  %v3199_v11 = vld [vmem:[%s2750_s17 + $0xe8] sm:$0xff]  ;;  %v358_v14 = vld [vmem:[%s2750_s17 + $0xf0] sm:$0xff]  ;;  %3807 = vst [vmem:[#allocation42_spill] sm:$0xff] %v3261_v7 }
 0x2b1   :  { %698 = vmatmul.f32.gmra.mxu0 %v651_v17  ;;  %718 = vmatmul.f32.vlgmr.msrb.gmra.mxu1 %v652_v22  ;;  %v3202_v12 = vld [vmem:[%s2750_s17 + $0xe0] sm:$0xff]  ;;  %v359_v15 = vld [vmem:[%s2750_s17 + $0xf8] sm:$0xff]  ;;  %v3209_v17 = vld [vmem:[%s2750_s17 + $0xc8] sm:$0xff] }
 0x2b2   :  { %744 = vmatmul.f32.gmra.mxu2 %v655_v19  ;;  %782 = vmatpush.msrb.mxu3 %v321_v8  ;;  %v3212_v22 = vld [vmem:[%s2750_s17 + $0xc0] sm:$0xff]  ;;  %v354_v19 = vld [vmem:[%s2750_s17 + $0xd0] sm:$0xff]  ;;  %v3217_v24 = vld [vmem:[%s2750_s17 + $0xa8] sm:$0xff] }
 0x2b3   :  { %832 = vmatpush.msra.mxu1 %v3199_v11  ;;  %809 = vmatpush.msra.mxu0 %v3202_v12  ;;  %v3222_v25 = vld [vmem:[%s2750_s17 + $0xa0] sm:$0xff] }
 0x2b4   :  { %783 = vmatpush.msrb.mxu3 %v320_v9  ;;  %855 = vmatpush.msra.mxu2 %v358_v14  ;;  %v3264_v8 = vld [vmem:[%s2750_s17 + $0x20] sm:$0xff]  ;;  %v3267_v9 = vld [vmem:[%s2750_s17 + $0x30] sm:$0xff]  ;;  %v335_v14 = vld [vmem:[%s2750_s17 + $0x38] sm:$0xff] }
 0x2b5   :  { %833 = vmatpush.msra.mxu1 %v3209_v17  ;;  %810 = vmatpush.msra.mxu0 %v3212_v22  ;;  %3808 = vst [vmem:[#allocation43_spill] sm:$0xff] %v3267_v9 }
 0x2b6   :  { %878 = vmatpush.msra.mxu3 %v359_v15  ;;  %856 = vmatpush.msra.mxu2 %v354_v19  ;;  %v3274_v15 = vld [vmem:[%s2750_s17 + $0x8] sm:$0xff]  ;;  %v3277_v19 = vld [vmem:[%s2750_s17] sm:$0xff] }
 0x2b7   :  { %834 = vmatpush.msra.mxu1 %v3217_v24  ;;  %811 = vmatpush.msra.mxu0 %v3222_v25  ;;  %3809 = vst [vmem:[#allocation44_spill] sm:$0xff] %v3274_v15 }
 0x2b8   :  { %879 = vmatpush.msra.mxu3 %v355_v20  ;;  %3810 = vst [vmem:[#allocation45_spill] sm:$0xff] %v3277_v19  ;;  %v3280_v20 = vld [vmem:[%s2750_s17 + $0x10] sm:$0xff] }
 0x2b9   :  { %721 = vmatmul.f32.gmra.mxu1 %v653_v26  ;;  %v350_v26 = vld [vmem:[%s2750_s17 + $0xb0] sm:$0xff]  ;;  %3811 = vst [vmem:[#allocation46_spill] sm:$0xff] %v3280_v20 }
 0x2ba   :  { %857 = vmatpush.msra.mxu2 %v350_v26  ;;  %v331_v26 = vld [vmem:[%s2750_s17 + $0x18] sm:$0xff] }
 0x314   :  { %v673_v28 = vpop.f32.mrf.mxu3  ;;  %v742_v34 = vpop.f32.mrf.mxu2 }
 0x317   :  { %v696_v29 = vpop.f32.mrf.mxu0 }
 0x318   :  { %v697_v30 = vadd.f32 %v696_v29, %v673_v28  ;;  %v351_v28 = vld [vmem:[%s2750_s17 + $0xb8] sm:$0xff] }
 0x319   :  { %880 = vmatpush.msra.mxu3 %v351_v28 }
 0x31d   :  { %v676_v32 = vpop.f32.mrf.mxu3 }
 0x32e   :  { %v719_v33 = vpop.f32.mrf.mxu1  ;;  %v699_v59 = vpop.f32.mrf.mxu0 }
 0x32f   :  { %v720_v23 = vadd.f32 %v719_v33, %v697_v30  ;;  %v700_v62 = vadd.f32 %v699_v59, %v676_v32  ;;  %v3231_v32 = vld [vmem:[%s2750_s17 + $0x88] sm:$0xff] }
 0x330   :  { %835 = vmatpush.msra.mxu1 %v3231_v32 }
 0x331   :  { %v743_v58 = vadd.f32 %v742_v34, %v720_v23 }
 0x333   :  { %v748_v27 = vsel %vm447_vm0, %v743_v58, -inf }
 0x334   :  { %749 = vmax.xlane.f32.xlu2 %v748_v27 }
 0x335   :  { %v745_v1 = vpop.f32.mrf.mxu2 }
 0x336   :  { %v722_v63 = vpop.f32.mrf.mxu1 }
 0x337   :  { %v723_v0 = vadd.f32 %v722_v63, %v700_v62  ;;  %v3234_v62 = vld [vmem:[%s2750_s17 + $0x80] sm:$0xff]  ;;  %v346_v63 = vld [vmem:[%s2750_s17 + $0x90] sm:$0xff] }
 0x338   :  { %812 = vmatpush.msra.mxu0 %v3234_v62  ;;  %858 = vmatpush.msra.mxu2 %v346_v63  ;;  %v893_v63 = vperm.slane %v3012_v42, 0 }
 0x339   :  { %v746_v2 = vadd.f32 %v745_v1, %v723_v0  ;;  %v347_v0 = vld [vmem:[%s2750_s17 + $0x98] sm:$0xff]  ;;  %v3241_v1 = vld [vmem:[%s2750_s17 + $0x68] sm:$0xff] }
 0x33a   :  { %881 = vmatpush.msra.mxu3 %v347_v0  ;;  %3805 = vst [vmem:[#allocation40_spill] sm:$0xff] %v3241_v1  ;;  %836 = vmatpush.msra.mxu1 %v3241_v1  ;;  %v919_v0 = vperm.slane %v3012_v42, 2  ;;  %v976_v1 = vperm.slane %v3024_v51, 6 }
 0x33b   :  { %v751_v3 = vsel %vm447_vm0, %v746_v2, -inf }
 0x33c   :  { %752 = vmax.xlane.f32.xlu0 %v751_v3  ;;  %v342_v3 = vld [vmem:[%s2750_s17 + $0x70] sm:$0xff] }
 0x33d   :  { %859 = vmatpush.msra.mxu2 %v342_v3 }
 0x33f   :  { %860 = vmatpush.msra.mxu2 %v338_v21 }
 0x341   :  { %861 = vmatpush.msra.mxu2 %v3267_v9 }
 0x343   :  { %862 = vmatpush.msra.mxu2 %v3280_v20 }
 0x34c   :  { %957 = vrot.lane.b32.xlu2 %v953_v4, %s2725_s29  ;;  %v343_v4 = vld [vmem:[%s2750_s17 + $0x78] sm:$0xff] }
 0x34d   :  { %882 = vmatpush.msra.mxu3 %v343_v4 }
 0x34f   :  { %883 = vmatpush.msra.mxu3 %v339_v18 }
 0x350   :  { %959 = vrot.lane.b32.xlu0 %v954_v5, %s2725_s29  ;;  %v3251_v5 = vld [vmem:[%s2750_s17 + $0x48] sm:$0xff] }
 0x351   :  { %3806 = vst [vmem:[#allocation41_spill] sm:$0xff] %v3251_v5  ;;  %837 = vmatpush.msra.mxu1 %v3251_v5  ;;  %884 = vmatpush.msra.mxu3 %v335_v14 }
 0x353   :  { %838 = vmatpush.msra.mxu1 %v3261_v7  ;;  %885 = vmatpush.msra.mxu3 %v331_v26 }
 0x355   :  { %839 = vmatpush.msra.mxu1 %v3274_v15 }
 0x3a7   :  { %v750_v29 = vpop.xlane.xlu2 %749 }
 0x3a8   :  { %v754_v30 = vsub.f32 %v743_v58, %v750_v29 }
 0x3aa   :  { %v756_v33 = vmax.f32 %v754_v30, -60.0 }
 0x3ac   :  { %v758_v23 = vmul.f32 1.442695, %v756_v33 }
 0x3ae   :  { %2356 = vpow2.f32 %v758_v23 }
 0x3af   :  { %v753_v34 = vpop.xlane.xlu0 %752 }
 0x3b0   :  { %v755_v36 = vsub.f32 %v746_v2, %v753_v34  ;;  %v3244_v2 = vld [vmem:[%s2750_s17 + $0x60] sm:$0xff] }
 0x3b1   :  { %813 = vmatpush.msra.mxu0 %v3244_v2 }
 0x3b2   :  { %v757_v57 = vmax.f32 %v755_v36, -60.0  ;;  %v902_v36 = vpop.permute.xlu1 %901 }
 0x3b3   :  { %814 = vmatpush.msra.mxu0 %v3254_v6 }
 0x3b4   :  { %v2357_v59 = vpop.eup %2356  ;;  %v760_v27 = vmul.f32 1.442695, %v757_v57 }
 0x3b5   :  { %2200 = vmatmul.msk.f32.vlgmr.msrb.gmra.mxu3 %vm447_vm0, %v2357_v59  ;;  %815 = vmatpush.msra.mxu0 %v3264_v8 }
 0x3b6   :  { %2358 = vpow2.f32 %v760_v27 }
 0x3b7   :  { %816 = vmatpush.msra.mxu0 %v3277_v19 }
 0x3ba   :  { %v930_v57 = vpop.permute.xlu1 %929 }
 0x3bc   :  { %v2359_v58 = vpop.eup %2358 }
 0x3bd   :  { %2201 = vmatmul.msk.f32.gmra.mxu3 %vm447_vm0, %v2359_v58 }
 0x438   :  { %v785_v28 = vpop.f32.mrf.mxu3 }
 0x439   :  { %2360 = vrcp.f32 %v785_v28  ;;  %v947_v28 = vperm.slane %v3012_v42, 4 }
 0x43f   :  { %v2361_v29 = vpop.eup %2360 }
 0x440   :  { %v793_v30 = vmul.f32 %v2361_v29, %v2357_v59  ;;  %v788_v33 = vpop.f32.mrf.mxu3  ;;  %v904_v59 = vpop.permute.xlu1 %903  ;;  %v975_v29 = vperm.slane %v3012_v42, 6 }
 0x441   :  { %2362 = vrcp.f32 %v788_v33 }
 0x442   :  { %2202 = vmatmul.msk.f32.vlgmr.msra.gmra.mxu0 %vm447_vm0, %v793_v30  ;;  %2204 = vmatmul.msk.f32.vlgmr.msra.gmra.mxu1 %vm447_vm0, %v793_v30 }
 0x443   :  { %2206 = vmatmul.msk.f32.vlgmr.msra.gmra.mxu2 %vm447_vm0, %v793_v30  ;;  %2208 = vmatmul.msk.f32.vlgmr.msra.gmra.mxu3 %vm447_vm0, %v793_v30 }
 0x447   :  { %v2363_v23 = vpop.eup %2362 }
 0x448   :  { %v794_v34 = vmul.f32 %v2363_v23, %v2359_v58  ;;  %v932_v27 = vpop.permute.xlu1 %931  ;;  %v958_v23 = vpop.permute.xlu2 %957 }
 0x44a   :  { %2203 = vmatmul.msk.f32.gmra.mxu0 %vm447_vm0, %v794_v34  ;;  %2205 = vmatmul.msk.f32.gmra.mxu1 %vm447_vm0, %v794_v34 }
 0x44b   :  { %2207 = vmatmul.msk.f32.gmra.mxu2 %vm447_vm0, %v794_v34  ;;  %2209 = vmatmul.msk.f32.gmra.mxu3 %vm447_vm0, %v794_v34 }
 0x450   :  { %v986_v26 = vpop.permute.xlu1 %985 }
 0x4bf   :  { %v818_v3 = vpop.f32.mrf.mxu0  ;;  %v841_v4 = vpop.f32.mrf.mxu1 }
 0x4c0   :  { %v895_v21 = vmul.f32 %v893_v63, %v818_v3  ;;  %v907_v58 = vmul.f32 %v902_v36, %v818_v3  ;;  %v921_v18 = vmul.f32 %v919_v0, %v841_v4  ;;  %v935_v14 = vmul.f32 %v930_v57, %v841_v4  ;;  %v960_v0 = vpop.permute.xlu0 %959 }
 0x4c2   :  { %939 = vrot.lane.b32.xlu1 %v935_v14, %s2725_s29  ;;  %911 = vrot.lane.b32.xlu2 %v907_v58, %s2725_s29  ;;  %v988_v58 = vpop.permute.xlu1 %987  ;;  %v393_v14 = vld [vmem:[%s3812_s3 + $0x38] sm:$0xff] }
 0x4c3   :  { %1020 = vmatpush.msrb.mxu0 %v393_v14 }
 0x4c6   :  { %v864_v30 = vpop.f32.mrf.mxu2  ;;  %v887_v33 = vpop.f32.mrf.mxu3 }
 0x4c7   :  { %v949_v34 = vmul.f32 %v947_v28, %v864_v30  ;;  %v977_v20 = vmul.f32 %v975_v29, %v887_v33  ;;  %v991_v9 = vmul.f32 %v986_v26, %v887_v33  ;;  %v821_v15 = vpop.f32.mrf.mxu0  ;;  %v963_v63 = vmul.f32 %v958_v23, %v864_v30  ;;  %v844_v57 = vpop.f32.mrf.mxu1  ;;  %v392_v26 = vld [vmem:[%s3812_s3 + $0x30] sm:$0xff]  ;;  %v391_v28 = vld [vmem:[%s3812_s3 + $0x28] sm:$0xff]  ;;  %v389_v29 = vld [vmem:[%s3812_s3 + $0x18] sm:$0xff] }
 0x4c8   :  { %v908_v36 = vmul.f32 %v904_v59, %v821_v15  ;;  %v936_v3 = vmul.f32 %v932_v27, %v844_v57  ;;  %1021 = vmatpush.msrb.mxu0 %v392_v26  ;;  %v390_v27 = vld [vmem:[%s3812_s3 + $0x20] sm:$0xff] }
 0x4c9   :  { %995 = vrot.lane.b32.xlu0 %v991_v9, %s2725_s29 }
 0x4ca   :  { %967 = vrot.lane.b32.xlu1 %v963_v63, %s2725_s29  ;;  %913 = vrot.lane.b32.xlu2 %v908_v36, %s2725_s29  ;;  %v388_v63 = vld [vmem:[%s3812_s3 + $0x10] sm:$0xff]  ;;  %v387_v36 = vld [vmem:[%s3812_s3 + $0x8] sm:$0xff] }
 0x4cb   :  { %1022 = vmatpush.msrb.mxu0 %v391_v28  ;;  %v920_v28 = vperm.slane %v3024_v51, 2 }
 0x4cd   :  { %1023 = vmatpush.msrb.mxu0 %v390_v27  ;;  %v922_v7 = vmul.f32 %v920_v28, %v844_v57 }
 0x4ce   :  { %v867_v42 = vpop.f32.mrf.mxu2  ;;  %v890_v59 = vpop.f32.mrf.mxu3 }
 0x4cf   :  { %v964_v4 = vmul.f32 %v960_v0, %v867_v42  ;;  %v992_v9 = vmul.f32 %v988_v58, %v890_v59  ;;  %1024 = vmatpush.msrb.mxu0 %v389_v29  ;;  %v386_v0 = vld [vmem:[%s3812_s3] sm:$0xff]  ;;  %v894_v58 = vperm.slane %v3024_v51, 0 }
 0x4d1   :  { %1025 = vmatpush.msrb.mxu0 %v388_v63  ;;  %v896_v14 = vmul.f32 %v894_v58, %v821_v15 }
 0x4d2   :  { %941 = vrot.lane.b32.xlu2 %v936_v3, %s2725_s29  ;;  %969 = vrot.lane.b32.xlu1 %v964_v4, %s2725_s29 }
 0x4d3   :  { %1026 = vmatpush.msrb.mxu0 %v387_v36 }
 0x4d5   :  { %1027 = vmatpush.msrb.mxu0 %v386_v0 }
 0x4da   :  { %997 = vrot.lane.b32.xlu2 %v992_v9, %s2725_s29 }
 0x51c   :  { %v912_v30 = vpop.permute.xlu2 %911 }
 0x51d   :  { %v917_v33 = vadd.f32 %v912_v30, %v895_v21 }
 0x51f   :  { %v923_v23 = vadd.f32 %v921_v18, %v917_v33  ;;  %v948_v33 = vperm.slane %v3024_v51, 4 }
 0x521   :  { %v950_v5 = vmul.f32 %v948_v33, %v867_v42  ;;  %v2389_v42 = vld [vmem:[#allocation2 + $0x8] sm:$0xff] }
 0x524   :  { %v914_v3 = vpop.permute.xlu2 %913 }
 0x525   :  { %v918_v27 = vadd.f32 %v914_v3, %v896_v14 }
 0x527   :  { %v924_v18 = vadd.f32 %v922_v7, %v918_v27  ;;  %v2337_v7 = vld [vmem:[#allocation8] ss:$0 sm:$0xff] }
 0x52c   :  { %v942_v29 = vpop.permute.xlu2 %941 }
 0x52d   :  { %v946_v63 = vadd.f32 %v942_v29, %v924_v18 }
 0x52f   :  { %v952_v15 = vadd.f32 %v950_v5, %v946_v63 }
 0x534   :  { %v940_v4 = vpop.permute.xlu1 %939 }
 0x535   :  { %v945_v9 = vadd.f32 %v940_v4, %v923_v23  ;;  %v978_v23 = vmul.f32 %v976_v1, %v890_v59  ;;  %v998_v4 = vpop.permute.xlu2 %997 }
 0x537   :  { %v951_v26 = vadd.f32 %v949_v34, %v945_v9 }
 0x53b   :  { %v996_v0 = vpop.permute.xlu0 %995 }
 0x53c   :  { %v968_v21 = vpop.permute.xlu1 %967 }
 0x53d   :  { %v973_v30 = vadd.f32 %v968_v21, %v951_v26 }
 0x53f   :  { %v979_v36 = vadd.f32 %v977_v20, %v973_v30  ;;  %v2388_v20 = vld [vmem:[#allocation2] sm:$0xff] }
 0x541   :  { %v1001_v19 = vadd.f32 %v996_v0, %v979_v36 }
 0x543   :  { %2210 = vmatmul.msk.f32.vlgmr.msrb.gmra.mxu0 %vm447_vm0, %v1001_v19 }
 0x544   :  { %v970_v34 = vpop.permute.xlu1 %969 }
 0x545   :  { %v974_v3 = vadd.f32 %v970_v34, %v952_v15  ;;  %v411_v15 = vld [vmem:[%s3813_s8 + $0x70] sm:$0xff]  ;;  %v412_v34 = vld [vmem:[%s3813_s8 + $0x78] sm:$0xff] }
 0x546   :  { %1110 = vmatpush.msrb.mxu1 %v411_v15  ;;  %1133 = vmatpush.msrb.mxu2 %v412_v34  ;;  %v443_v34 = vld [vmem:[%s3814_s12 + $0xe8] sm:$0xff] }
 0x547   :  { %v980_v57 = vadd.f32 %v978_v23, %v974_v3  ;;  %v409_v23 = vld [vmem:[%s3813_s8 + $0x60] sm:$0xff]  ;;  %v410_v3 = vld [vmem:[%s3813_s8 + $0x68] sm:$0xff] }
 0x548   :  { %1111 = vmatpush.msrb.mxu1 %v409_v23  ;;  %1134 = vmatpush.msrb.mxu2 %v410_v3  ;;  %v426_v3 = vld [vmem:[%s3814_s12 + $0x60] sm:$0xff] }
 0x549   :  { %v1002_v58 = vadd.f32 %v998_v4, %v980_v57  ;;  %v407_v57 = vld [vmem:[%s3813_s8 + $0x50] sm:$0xff]  ;;  %v408_v4 = vld [vmem:[%s3813_s8 + $0x58] sm:$0xff] }
 0x54a   :  { %1112 = vmatpush.msrb.mxu1 %v407_v57  ;;  %1135 = vmatpush.msrb.mxu2 %v408_v4  ;;  %v442_v57 = vld [vmem:[%s3814_s12 + $0xe0] sm:$0xff] }
 0x54b   :  { %2211 = vmatmul.msk.f32.gmra.mxu0 %vm447_vm0, %v1002_v58  ;;  %v405_v58 = vld [vmem:[%s3813_s8 + $0x40] sm:$0xff] }
 0x54c   :  { %1113 = vmatpush.msrb.mxu1 %v405_v58 }
 0x5c0   :  { %v1029_v9 = vpop.f32.mrf.mxu0 }
 0x5c1   :  { %v1030_v14 = vadd.f32 %v2337_v7, %v1029_v9  ;;  %v403_v9 = vld [vmem:[%s3813_s8 + $0x30] sm:$0xff] }
 0x5c2   :  { %1114 = vmatpush.msrb.mxu1 %v403_v9 }
 0x5c3   :  { %v3320_v26 = vadd.f32 %v2388_v20, %v1030_v14  ;;  %v404_v14 = vld [vmem:[%s3813_s8 + $0x38] sm:$0xff]  ;;  %v401_v20 = vld [vmem:[%s3813_s8 + $0x20] sm:$0xff] }
 0x5c4   :  { %1115 = vmatpush.msrb.mxu1 %v401_v20  ;;  %v424_v20 = vld [vmem:[%s3814_s12 + $0x50] sm:$0xff] }
 0x5c5   :  { %v1037_v51 = vsel %vm447_vm0, %v3320_v26, 0.0 }
 0x5c6   :  { %1038 = vadd.xlane.f32.xlu0 %v1037_v51  ;;  %v402_v51 = vld [vmem:[%s3813_s8 + $0x28] sm:$0xff] }
 0x5c8   :  { %v1032_v19 = vpop.f32.mrf.mxu0 }
 0x5c9   :  { %v1033_v5 = vadd.f32 %v2337_v7, %v1032_v19  ;;  %v406_v7 = vld [vmem:[%s3813_s8 + $0x48] sm:$0xff]  ;;  %v399_v19 = vld [vmem:[%s3813_s8 + $0x10] sm:$0xff] }
 0x5ca   :  { %1136 = vmatpush.msrb.mxu2 %v406_v7  ;;  %1116 = vmatpush.msrb.mxu1 %v399_v19  ;;  %v425_v7 = vld [vmem:[%s3814_s12 + $0x58] sm:$0xff]  ;;  %v440_v19 = vld [vmem:[%s3814_s12 + $0xd0] sm:$0xff] }
 0x5cb   :  { %v3324_v1 = vadd.f32 %v2389_v42, %v1033_v5  ;;  %v400_v5 = vld [vmem:[%s3813_s8 + $0x18] sm:$0xff] }
 0x5cc   :  { %1137 = vmatpush.msrb.mxu2 %v404_v14  ;;  %v441_v14 = vld [vmem:[%s3814_s12 + $0xd8] sm:$0xff] }
 0x5cd   :  { %v1040_v59 = vsel %vm447_vm0, %v3324_v1, 0.0 }
 0x5ce   :  { %1041 = vadd.xlane.f32.xlu1 %v1040_v59  ;;  %1138 = vmatpush.msrb.mxu2 %v402_v51  ;;  %v397_v59 = vld [vmem:[%s3813_s8] sm:$0xff] }
 0x5cf   :  { %1117 = vmatpush.msrb.mxu1 %v397_v59  ;;  %v439_v59 = vld [vmem:[%s3814_s12 + $0xc8] sm:$0xff] }
 0x5d0   :  { %1139 = vmatpush.msrb.mxu2 %v400_v5  ;;  %v423_v5 = vld [vmem:[%s3814_s12 + $0x48] sm:$0xff] }
 0x639   :  { %v1039_v28 = vpop.xlane.xlu0 %1038 }
 0x63a   :  { %v1043_v27 = vmul.f32 %v1039_v28, %v2940_v10  ;;  %v398_v28 = vld [vmem:[%s3813_s8 + $0x8] sm:$0xff] }
 0x63b   :  { %1140 = vmatpush.msrb.mxu2 %v398_v28  ;;  %v422_v28 = vld [vmem:[%s3814_s12 + $0x40] sm:$0xff] }
 0x63c   :  { %v3330_v29 = vsub.f32 %v3320_v26, %v1043_v27 }
 0x63e   :  { %v1047_v21 = vmul.f32 %v3330_v29, %v3330_v29 }
 0x640   :  { %v1049_v18 = vsel %vm447_vm0, %v1047_v21, 0.0 }
 0x641   :  { %v1042_v30 = vpop.xlane.xlu1 %1041  ;;  %1050 = vadd.xlane.f32.xlu2 %v1049_v18  ;;  %v429_v18 = vld [vmem:[%s3814_s12 + $0x78] sm:$0xff] }
 0x642   :  { %v1044_v33 = vmul.f32 %v1042_v30, %v2940_v10  ;;  %v428_v30 = vld [vmem:[%s3814_s12 + $0x70] sm:$0xff]  ;;  %1155 = vmatpush.msrb.mxu3 %v429_v18  ;;  %v438_v18 = vld [vmem:[%s3814_s12 + $0xc0] sm:$0xff] }
 0x644   :  { %v3337_v63 = vsub.f32 %v3324_v1, %v1044_v33  ;;  %v445_v33 = vld [vmem:[%s3814_s12 + $0xf8] sm:$0xff]  ;;  %1156 = vmatpush.msrb.mxu3 %v428_v30 }
 0x645   :  { %1178 = vmatpush.msra.mxu0 %v445_v33  ;;  %v421_v33 = vld [vmem:[%s3814_s12 + $0x38] sm:$0xff] }
 0x646   :  { %v1048_v36 = vmul.f32 %v3337_v63, %v3337_v63 }
 0x648   :  { %v1052_v0 = vsel %vm447_vm0, %v1048_v36, 0.0  ;;  %v427_v36 = vld [vmem:[%s3814_s12 + $0x68] sm:$0xff] }
 0x649   :  { %1053 = vadd.xlane.f32.xlu0 %v1052_v0  ;;  %v444_v0 = vld [vmem:[%s3814_s12 + $0xf0] sm:$0xff]  ;;  %1157 = vmatpush.msrb.mxu3 %v427_v36 }
 0x64a   :  { %1179 = vmatpush.msra.mxu0 %v444_v0 }
 0x64b   :  { %1158 = vmatpush.msrb.mxu3 %v426_v3 }
 0x64c   :  { %1180 = vmatpush.msra.mxu0 %v443_v34  ;;  %v2338_v34 = vld [vmem:[#allocation10] ss:$0 sm:$0xff] }
 0x64d   :  { %1159 = vmatpush.msrb.mxu3 %v425_v7  ;;  %v436_v7 = vld [vmem:[%s3814_s12 + $0xb0] sm:$0xff] }
 0x64e   :  { %1181 = vmatpush.msra.mxu0 %v442_v57 }
 0x64f   :  { %1160 = vmatpush.msrb.mxu3 %v424_v20  ;;  %v419_v20 = vld [vmem:[%s3814_s12 + $0x28] sm:$0xff] }
 0x650   :  { %1182 = vmatpush.msra.mxu0 %v441_v14  ;;  %v2339_v14 = vld [vmem:[#allocation11] ss:$0 sm:$0xff] }
 0x651   :  { %1161 = vmatpush.msrb.mxu3 %v423_v5 }
 0x652   :  { %1183 = vmatpush.msra.mxu0 %v440_v19  ;;  %v418_v19 = vld [vmem:[%s3814_s12 + $0x20] sm:$0xff] }
 0x653   :  { %1162 = vmatpush.msrb.mxu3 %v422_v28 }
 0x654   :  { %1184 = vmatpush.msra.mxu0 %v439_v59 }
 0x655   :  { %1163 = vmatpush.msrb.mxu3 %v421_v33  ;;  %v435_v33 = vld [vmem:[%s3814_s12 + $0xa8] sm:$0xff] }
 0x656   :  { %1185 = vmatpush.msra.mxu0 %v438_v18 }
 0x6b4   :  { %v1051_v42 = vpop.xlane.xlu2 %1050 }
 0x6b5   :  { %v1055_v27 = vmul.f32 %v1051_v42, %v2940_v10 }
 0x6b7   :  { %v1057_v21 = vadd.f32 1e-05, %v1055_v27 }
 0x6b9   :  { %2364 = vrsqrt.f32 %v1057_v21  ;;  %vm1065_vm9 = vweird.f32 %v1057_v21 }
 0x6bc   :  { %v1054_v15 = vpop.xlane.xlu0 %1053 }
 0x6bd   :  { %v1056_v23 = vmul.f32 %v1054_v15, %v2940_v10  ;;  %v437_v15 = vld [vmem:[%s3814_s12 + $0xb8] sm:$0xff] }
 0x6be   :  { %1186 = vmatpush.msra.mxu0 %v437_v15  ;;  %v432_v15 = vld [vmem:[%s3814_s12 + $0x90] sm:$0xff] }
 0x6bf   :  { %v2365_v4 = vpop.eup %2364  ;;  %v1058_v58 = vadd.f32 1e-05, %v1056_v23  ;;  %v420_v23 = vld [vmem:[%s3814_s12 + $0x30] sm:$0xff] }
 0x6c0   :  { %v1060_v9 = vmul.f32 %v2365_v4, %v1057_v21  ;;  %vm1066_vm8 = vweird.f32 %v2365_v4  ;;  %1164 = vmatpush.msrb.mxu3 %v420_v23  ;;  %1187 = vmatpush.msra.mxu0 %v436_v7  ;;  %v431_v23 = vld [vmem:[%s3814_s12 + $0x88] sm:$0xff] }
 0x6c1   :  { %2366 = vrsqrt.f32 %v1058_v58  ;;  %vm1067_vm10 = vmor %vm1065_vm9, %vm1066_vm8  ;;  %vm1075_vm12 = vweird.f32 %v1058_v58  ;;  %v2392_v7 = vld [vmem:[%s2740_s9 + $0xe8] sm:$0xff] }
 0x6c2   :  { %v1061_v51 = vmul.f32 %v2365_v4, %v1060_v9  ;;  %1165 = vmatpush.msrb.mxu3 %v419_v20  ;;  %1188 = vmatpush.msra.mxu0 %v435_v33  ;;  %v2395_v20 = vld [vmem:[%s2740_s9 + $0xd0] sm:$0xff]  ;;  %v1218_v33 = vld [vmem:[%s3820_s27 + $0x28] sm:$0xff] }
 0x6c4   :  { %v1062_v42 = vmul.f32 0.5, %v1061_v51  ;;  %1166 = vmatpush.msrb.mxu3 %v418_v19 }
 0x6c6   :  { %v1063_v27 = vsub.f32 1.5, %v1062_v42 }
 0x6c7   :  { %v2367_v30 = vpop.eup %2366 }
 0x6c8   :  { %v1064_v36 = vmul.f32 %v2365_v4, %v1063_v27  ;;  %v1070_v0 = vmul.f32 %v2367_v30, %v1058_v58  ;;  %vm1076_vm11 = vweird.f32 %v2367_v30  ;;  %v416_v58 = vld [vmem:[%s3814_s12 + $0x10] sm:$0xff] }
 0x6c9   :  { %vm1077_vm13 = vmor %vm1075_vm12, %vm1076_vm11 }
 0x6ca   :  { %v1068_v3 = vsel %vm1067_vm10, %v2365_v4, %v1064_v36  ;;  %v1071_v57 = vmul.f32 %v2367_v30, %v1070_v0  ;;  %v417_v4 = vld [vmem:[%s3814_s12 + $0x18] sm:$0xff]  ;;  %v415_v36 = vld [vmem:[%s3814_s12 + $0x8] sm:$0xff]  ;;  %v414_v0 = vld [vmem:[%s3814_s12] sm:$0xff] }
 0x6cb   :  { %v1079_v9 = vmul.f32 %v1068_v3, %v3330_v29  ;;  %1167 = vmatpush.msrb.mxu3 %v417_v4  ;;  %v430_v3 = vld [vmem:[%s3814_s12 + $0x80] sm:$0xff] }
 0x6cc   :  { %v1072_v51 = vmul.f32 0.5, %v1071_v57  ;;  %v2391_v57 = vld [vmem:[%s2740_s9 + $0xf0] sm:$0xff] }
 0x6cd   :  { %v1084_v21 = vmul.f32 %v2338_v34, %v1079_v9  ;;  %1168 = vmatpush.msrb.mxu3 %v416_v58  ;;  %v2393_v9 = vld [vmem:[%s2740_s9 + $0xe0] sm:$0xff]  ;;  %v1211_v58 = vld [vmem:[%s3821_s21 + $0x30] sm:$0xff] }
 0x6ce   :  { %v1073_v5 = vsub.f32 1.5, %v1072_v51  ;;  %v2396_v51 = vld [vmem:[%s2740_s9 + $0xc8] sm:$0xff] }
 0x6cf   :  { %v1089_v42 = vadd.f32 %v2339_v14, %v1084_v21  ;;  %1169 = vmatpush.msrb.mxu3 %v415_v36  ;;  %v2397_v21 = vld [vmem:[%s2740_s9 + $0xc0] sm:$0xff]  ;;  %v1210_v36 = vld [vmem:[%s3821_s21 + $0x28] sm:$0xff] }
 0x6d0   :  { %v1074_v59 = vmul.f32 %v2367_v30, %v1073_v5 }
 0x6d1   :  { %2212 = vmatmul.msk.f32.vlgmr.msrb.gmra.mxu1 %vm447_vm0, %v1089_v42  ;;  %2214 = vmatmul.msk.f32.vlgmr.msrb.gmra.mxu2 %vm447_vm0, %v1089_v42 }
 0x6d2   :  { %v1078_v29 = vsel %vm1077_vm13, %v2367_v30, %v1074_v59  ;;  %v434_v30 = vld [vmem:[%s3814_s12 + $0xa0] sm:$0xff]  ;;  %1170 = vmatpush.msrb.mxu3 %v414_v0 }
 0x6d3   :  { %v1080_v28 = vmul.f32 %v1078_v29, %v3337_v63  ;;  %v433_v63 = vld [vmem:[%s3814_s12 + $0x98] sm:$0xff]  ;;  %1189 = vmatpush.msra.mxu0 %v434_v30  ;;  %v1217_v30 = vld [vmem:[%s3820_s27 + $0x20] sm:$0xff] }
 0x6d4   :  { %v1209_v0 = vld [vmem:[%s3821_s21 + $0x20] sm:$0xff] }
 0x6d5   :  { %v1085_v27 = vmul.f32 %v2338_v34, %v1080_v28  ;;  %1190 = vmatpush.msra.mxu0 %v433_v63  ;;  %v2390_v34 = vld [vmem:[%s2740_s9 + $0xf8] sm:$0xff] }
 0x6d6   :  { %1514 = vmatpush.msra.mxu3 %v2390_v34  ;;  %v1220_v28 = vld [vmem:[%s3820_s27 + $0x38] sm:$0xff]  ;;  %v1215_v34 = vld [vmem:[%s3820_s27 + $0x10] sm:$0xff] }
 0x6d7   :  { %v1090_v18 = vadd.f32 %v2339_v14, %v1085_v27  ;;  %1191 = vmatpush.msra.mxu0 %v432_v15  ;;  %v2394_v14 = vld [vmem:[%s2740_s9 + $0xd8] sm:$0xff]  ;;  %1381 = vmatpush.msra.mxu2 %v1220_v28 }
 0x6d8   :  { %1515 = vmatpush.msra.mxu3 %v2391_v57  ;;  %v1212_v27 = vld [vmem:[%s3821_s21 + $0x38] sm:$0xff]  ;;  %v1206_v57 = vld [vmem:[%s3821_s21 + $0x8] sm:$0xff] }
 0x6d9   :  { %2213 = vmatmul.msk.f32.gmra.mxu1 %vm447_vm0, %v1090_v18  ;;  %2215 = vmatmul.msk.f32.gmra.mxu2 %vm447_vm0, %v1090_v18  ;;  %v1219_v18 = vld [vmem:[%s3820_s27 + $0x30] sm:$0xff]  ;;  %v1216_v63 = vld [vmem:[%s3820_s27 + $0x18] sm:$0xff] }
 0x6da   :  { %1192 = vmatpush.msra.mxu0 %v431_v23  ;;  %1516 = vmatpush.msra.mxu3 %v2392_v7  ;;  %v1208_v15 = vld [vmem:[%s3821_s21 + $0x18] sm:$0xff]  ;;  %v1207_v23 = vld [vmem:[%s3821_s21 + $0x10] sm:$0xff] }
 0x6db   :  { %1358 = vmatpush.msra.mxu1 %v1212_v27  ;;  %1382 = vmatpush.msra.mxu2 %v1219_v18  ;;  %v2410_v27 = vld [vmem:[%s2740_s9 + $0x18] sm:$0xff] }
 0x6dc   :  { %1193 = vmatpush.msra.mxu0 %v430_v3  ;;  %1517 = vmatpush.msra.mxu3 %v2393_v9  ;;  %v1214_v3 = vld [vmem:[%s3820_s27 + $0x8] sm:$0xff]  ;;  %v1213_v9 = vld [vmem:[%s3820_s27] sm:$0xff]  ;;  %v2411_v18 = vld [vmem:[%s2740_s9 + $0x1f8] sm:$0xff] }
 0x6dd   :  { %1359 = vmatpush.msra.mxu1 %v1211_v58  ;;  %1383 = vmatpush.msra.mxu2 %v1218_v33  ;;  %v2412_v58 = vld [vmem:[%s2740_s9 + $0x10] sm:$0xff] }
 0x6de   :  { %1537 = vmatpush.msrb.mxu0 %v3088_v38  ;;  %1518 = vmatpush.msra.mxu3 %v2394_v14  ;;  %v413_v38 = vld [vmem:[#allocation13] sm:$0x3]  ;;  %v1205_v14 = vld [vmem:[%s3821_s21] sm:$0xff] }
 0x6df   :  { %1360 = vmatpush.msra.mxu1 %v1210_v36  ;;  %1384 = vmatpush.msra.mxu2 %v1217_v30  ;;  %v2413_v36 = vld [vmem:[%s2740_s9 + $0x1f0] sm:$0xff]  ;;  %v2414_v30 = vld [vmem:[%s2740_s9 + $0x8] sm:$0xff] }
 0x6e0   :  { %1538 = vmatpush.msrb.mxu0 %v3095_v40  ;;  %1519 = vmatpush.msra.mxu3 %v2395_v20  ;;  %v1092_v40 = vperm.slane %v413_v38, 0 }
 0x6e1   :  { %1361 = vmatpush.msra.mxu1 %v1209_v0  ;;  %1385 = vmatpush.msra.mxu2 %v1216_v63  ;;  %v2415_v63 = vld [vmem:[%s2740_s9 + $0x1e8] sm:$0xff] }
 0x6e2   :  { %1539 = vmatpush.msrb.mxu0 %v3104_v43  ;;  %1520 = vmatpush.msra.mxu3 %v2396_v51  ;;  %v1228_v51 = vld [vmem:[%s3822_s23 + $0x38] sm:$0xff] }
 0x6e3   :  { %1362 = vmatpush.msra.mxu1 %v1208_v15  ;;  %1386 = vmatpush.msra.mxu2 %v1215_v34  ;;  %v2416_v15 = vld [vmem:[%s2740_s9] sm:$0xff] }
 0x6e4   :  { %1540 = vmatpush.msrb.mxu0 %v3112_v45  ;;  %1521 = vmatpush.msra.mxu3 %v2397_v21 }
 0x6e5   :  { %1363 = vmatpush.msra.mxu1 %v1207_v23  ;;  %1387 = vmatpush.msra.mxu2 %v1214_v3  ;;  %v2417_v23 = vld [vmem:[%s2745_s13 + $0x38] sm:$0xff]  ;;  %v2418_v3 = vld [vmem:[%s2740_s9 + $0x1e0] sm:$0xff] }
 0x6e6   :  { %1541 = vmatpush.msrb.mxu0 %v3117_v46  ;;  %1522 = vmatpush.msra.mxu3 %v3053_v13  ;;  %v1093_v46 = vperm.slane %v413_v38, 1  ;;  %v1227_v38 = vld [vmem:[%s3822_s23 + $0x30] sm:$0xff] }
 0x6e7   :  { %1364 = vmatpush.msra.mxu1 %v1206_v57  ;;  %1388 = vmatpush.msra.mxu2 %v1213_v9  ;;  %v2420_v57 = vld [vmem:[%s2745_s13 + $0x30] sm:$0xff]  ;;  %v2422_v9 = vld [vmem:[%s2745_s13 + $0x28] sm:$0xff] }
 0x6e8   :  { %1542 = vmatpush.msrb.mxu0 %v3120_v47  ;;  %1523 = vmatpush.msra.mxu3 %v3058_v16 }
 0x6e9   :  { %1365 = vmatpush.msra.mxu1 %v1205_v14  ;;  %v2423_v14 = vld [vmem:[%s2740_s9 + $0x1c8] sm:$0xff] }
 0x6ea   :  { %1543 = vmatpush.msrb.mxu0 %v3124_v48  ;;  %1524 = vmatpush.msra.mxu3 %v3074_v31 }
 0x6eb   :  { %1404 = vmatpush.msrb.mxu1 %v1228_v51  ;;  %v2425_v51 = vld [vmem:[%s2740_s9 + $0x1c0] sm:$0xff] }
 0x6ec   :  { %1544 = vmatpush.msrb.mxu0 %v3128_v49  ;;  %1525 = vmatpush.msra.mxu3 %v3080_v35  ;;  %v3815_v49 = vld [vmem:[#allocation40_spill] sm:$0xff] }
 0x6ed   :  { %1405 = vmatpush.msrb.mxu1 %v1227_v38  ;;  %v2427_v38 = vld [vmem:[%s2740_s9 + $0x1b8] sm:$0xff] }
 0x6ee   :  { %1545 = vmatpush.msrb.mxu0 %v3132_v50  ;;  %1526 = vmatpush.msra.mxu3 %v3085_v37  ;;  %v3816_v50 = vld [vmem:[#allocation45_spill] sm:$0xff] }
 0x6f0   :  { %1546 = vmatpush.msrb.mxu0 %v3136_v52  ;;  %1527 = vmatpush.msra.mxu3 %v3092_v39  ;;  %v3817_v52 = vld [vmem:[#allocation41_spill] sm:$0xff] }
 0x6f2   :  { %1547 = vmatpush.msrb.mxu0 %v3140_v53  ;;  %1528 = vmatpush.msra.mxu3 %v3101_v41  ;;  %v3818_v53 = vld [vmem:[#allocation42_spill] sm:$0xff] }
 0x6f4   :  { %1548 = vmatpush.msrb.mxu0 %v3144_v54  ;;  %1529 = vmatpush.msra.mxu3 %v3109_v44  ;;  %v3819_v54 = vld [vmem:[#allocation44_spill] sm:$0xff] }
 0x6f6   :  { %1549 = vmatpush.msrb.mxu0 %v3148_v55  ;;  %v2340_v55 = vld [vmem:[#allocation14] ss:$0 sm:$0xff] }
 0x6f8   :  { %1550 = vmatpush.msrb.mxu0 %v3152_v56 }
 0x6fa   :  { %1551 = vmatpush.msrb.mxu0 %v3157_v60 }
 0x6fc   :  { %1552 = vmatpush.msrb.mxu0 %v3161_v61 }
 0x74e   :  { %v1119_v43 = vpop.f32.mrf.mxu1 }
 0x74f   :  { %v1120_v45 = vadd.f32 %v1119_v43, %v1092_v40  ;;  %v1226_v43 = vld [vmem:[%s3822_s23 + $0x28] sm:$0xff] }
 0x750   :  { %1406 = vmatpush.msrb.mxu1 %v1226_v43  ;;  %v2429_v43 = vld [vmem:[%s2740_s9 + $0x1b0] sm:$0xff] }
 0x751   :  { %v1148_v13 = vmax.f32 %v1120_v45, 0.0  ;;  %v2399_v45 = vld [vmem:[%s2740_s9 + $0x70] sm:$0xff] }
 0x753   :  { %1171 = vmatmul.f32.vlgmr.msrb.gmra.mxu3 %v1148_v13  ;;  %v1225_v13 = vld [vmem:[%s3822_s23 + $0x20] sm:$0xff] }
 0x754   :  { %v1142_v16 = vpop.f32.mrf.mxu2  ;;  %1644 = vmatpush.msrb.mxu3 %v3202_v12  ;;  %1407 = vmatpush.msrb.mxu1 %v1225_v13  ;;  %v2431_v13 = vld [vmem:[%s2740_s9 + $0x1a8] sm:$0xff] }
 0x755   :  { %v1143_v31 = vadd.f32 %v1142_v16, %v1093_v46  ;;  %v2400_v16 = vld [vmem:[%s2740_s9 + $0x68] sm:$0xff] }
 0x756   :  { %v1122_v35 = vpop.f32.mrf.mxu1  ;;  %1645 = vmatpush.msrb.mxu3 %v3212_v22 }
 0x757   :  { %v1149_v47 = vmax.f32 %v1143_v31, 0.0  ;;  %v1123_v37 = vadd.f32 %v1122_v35, %v1092_v40  ;;  %v2398_v40 = vld [vmem:[%s2740_s9 + $0x78] sm:$0xff] }
 0x758   :  { %1646 = vmatpush.msrb.mxu3 %v3222_v25  ;;  %1491 = vmatpush.msrb.mxu2 %v2398_v40  ;;  %v1224_v35 = vld [vmem:[%s3822_s23 + $0x18] sm:$0xff]  ;;  %v2428_v40 = vld [vmem:[%s2745_s13 + $0x10] sm:$0xff] }
 0x759   :  { %v1150_v48 = vmax.f32 %v1123_v37, 0.0  ;;  %1194 = vmatmul.f32.vlgmr.msra.gmra.mxu0 %v1149_v47  ;;  %v2401_v47 = vld [vmem:[%s2740_s9 + $0x60] sm:$0xff]  ;;  %1408 = vmatpush.msrb.mxu1 %v1224_v35  ;;  %v2435_v35 = vld [vmem:[%s2740_s9 + $0x190] sm:$0xff] }
 0x75a   :  { %1667 = vmatpush.msra.mxu0 %v3199_v11  ;;  %1647 = vmatpush.msrb.mxu3 %v3234_v62 }
 0x75b   :  { %1174 = vmatmul.f32.gmra.mxu3 %v1150_v48  ;;  %1492 = vmatpush.msrb.mxu2 %v2399_v45  ;;  %v2430_v45 = vld [vmem:[%s2745_s13 + $0x8] sm:$0xff] }
 0x75c   :  { %v1145_v39 = vpop.f32.mrf.mxu2  ;;  %1668 = vmatpush.msra.mxu0 %v3209_v17  ;;  %1648 = vmatpush.msrb.mxu3 %v3244_v2 }
 0x75d   :  { %v1146_v41 = vadd.f32 %v1145_v39, %v1093_v46  ;;  %1493 = vmatpush.msrb.mxu2 %v2400_v16  ;;  %v1223_v39 = vld [vmem:[%s3822_s23 + $0x10] sm:$0xff]  ;;  %v2433_v16 = vld [vmem:[%s2740_s9 + $0x1a0] sm:$0xff] }
 0x75e   :  { %1669 = vmatpush.msra.mxu0 %v3217_v24  ;;  %1649 = vmatpush.msrb.mxu3 %v3254_v6 }
 0x75f   :  { %v1151_v44 = vmax.f32 %v1146_v41, 0.0  ;;  %1494 = vmatpush.msrb.mxu2 %v2401_v47  ;;  %1409 = vmatpush.msrb.mxu1 %v1223_v39  ;;  %v2436_v47 = vld [vmem:[%s2740_s9 + $0x188] sm:$0xff]  ;;  %v2439_v39 = vld [vmem:[%s2750_s17 + $0xd0] sm:$0xff] }
 0x760   :  { %1670 = vmatpush.msra.mxu0 %v3231_v32  ;;  %1650 = vmatpush.msrb.mxu3 %v3264_v8 }
 0x761   :  { %1197 = vmatmul.f32.gmra.mxu0 %v1151_v44  ;;  %v2402_v44 = vld [vmem:[%s2740_s9 + $0x58] sm:$0xff] }
 0x762   :  { %1671 = vmatpush.msra.mxu0 %v3815_v49  ;;  %1651 = vmatpush.msrb.mxu3 %v3816_v50  ;;  %v1222_v49 = vld [vmem:[%s3822_s23 + $0x8] sm:$0xff] }
 0x763   :  { %1495 = vmatpush.msrb.mxu2 %v2402_v44  ;;  %1410 = vmatpush.msrb.mxu1 %v1222_v49  ;;  %v2441_v44 = vld [vmem:[%s2750_s17 + $0x90] sm:$0xff] }
 0x764   :  { %1672 = vmatpush.msra.mxu0 %v3817_v52  ;;  %v2403_v52 = vld [vmem:[%s2740_s9 + $0x50] sm:$0xff] }
 0x765   :  { %1496 = vmatpush.msrb.mxu2 %v2403_v52  ;;  %v2442_v49 = vld [vmem:[%s2750_s17 + $0x70] sm:$0xff]  ;;  %v3825_v52 = vld [vmem:[#allocation43_spill] sm:$0xff] }
 0x766   :  { %1673 = vmatpush.msra.mxu0 %v3818_v53  ;;  %v1221_v53 = vld [vmem:[%s3822_s23] sm:$0xff] }
 0x767   :  { %1411 = vmatpush.msrb.mxu1 %v1221_v53  ;;  %v3826_v53 = vld [vmem:[#allocation46_spill] sm:$0xff] }
 0x768   :  { %1674 = vmatpush.msra.mxu0 %v3819_v54 }
 0x7d6   :  { %v1172_v56 = vpop.f32.mrf.mxu3  ;;  %v1195_v60 = vpop.f32.mrf.mxu0 }
 0x7d7   :  { %v1173_v61 = vadd.f32 %v2340_v55, %v1172_v56 }
 0x7d9   :  { %v1196_v11 = vadd.f32 %v1195_v60, %v1173_v61  ;;  %v2405_v60 = vld [vmem:[%s2740_s9 + $0x40] sm:$0xff] }
 0x7db   :  { %v3447_v12 = vadd.f32 %v1196_v11, %v3320_v26 }
 0x7dd   :  { %v1290_v17 = vsel %vm447_vm0, %v3447_v12, 0.0 }
 0x7de   :  { %1291 = vadd.xlane.f32.xlu2 %v1290_v17  ;;  %v1175_v22 = vpop.f32.mrf.mxu3  ;;  %v1198_v25 = vpop.f32.mrf.mxu0 }
 0x7df   :  { %v1176_v24 = vadd.f32 %v2340_v55, %v1175_v22  ;;  %v2404_v55 = vld [vmem:[%s2740_s9 + $0x48] sm:$0xff]  ;;  %v2406_v22 = vld [vmem:[%s2740_s9 + $0x38] sm:$0xff] }
 0x7e0   :  { %1497 = vmatpush.msrb.mxu2 %v2404_v55 }
 0x7e1   :  { %v1199_v32 = vadd.f32 %v1198_v25, %v1176_v24  ;;  %v2341_v24 = vld [vmem:[%s3823_s0] ss:$0 sm:$0xff] }
 0x7e2   :  { %1498 = vmatpush.msrb.mxu2 %v2405_v60 }
 0x7e3   :  { %v3452_v62 = vadd.f32 %v1199_v32, %v3324_v1 }
 0x7e4   :  { %1499 = vmatpush.msrb.mxu2 %v2406_v22 }
 0x7e5   :  { %v1293_v2 = vsel %vm447_vm0, %v3452_v62, 0.0 }
 0x7e6   :  { %1294 = vadd.xlane.f32.xlu1 %v1293_v2  ;;  %v2407_v2 = vld [vmem:[%s2740_s9 + $0x30] sm:$0xff] }
 0x7e7   :  { %1500 = vmatpush.msrb.mxu2 %v2407_v2 }
 0x851   :  { %v1292_v6 = vpop.xlane.xlu2 %1291 }
 0x852   :  { %v1296_v8 = vmul.f32 %v1292_v6, %v2940_v10 }
 0x854   :  { %v3458_v26 = vsub.f32 %v3447_v12, %v1296_v8  ;;  %v2342_v8 = vld [vmem:[%s3824_s19] ss:$0 sm:$0xff] }
 0x856   :  { %v1300_v19 = vmul.f32 %v3458_v26, %v3458_v26 }
 0x858   :  { %v1302_v5 = vsel %vm447_vm0, %v1300_v19, 0.0 }
 0x859   :  { %1303 = vadd.xlane.f32.xlu0 %v1302_v5  ;;  %v1295_v1 = vpop.xlane.xlu1 %1294  ;;  %v2408_v5 = vld [vmem:[%s2740_s9 + $0x28] sm:$0xff] }
 0x85a   :  { %v1297_v42 = vmul.f32 %v1295_v1, %v2940_v10  ;;  %1501 = vmatpush.msrb.mxu2 %v2408_v5 }
 0x85c   :  { %v3465_v4 = vsub.f32 %v3452_v62, %v1297_v42 }
 0x85e   :  { %v1301_v59 = vmul.f32 %v3465_v4, %v3465_v4 }
 0x860   :  { %v1305_v29 = vsel %vm447_vm0, %v1301_v59, 0.0  ;;  %v2409_v59 = vld [vmem:[%s2740_s9 + $0x20] sm:$0xff] }
 0x861   :  { %1306 = vadd.xlane.f32.xlu2 %v1305_v29  ;;  %1502 = vmatpush.msrb.mxu2 %v2409_v59 }
 0x863   :  { %1503 = vmatpush.msrb.mxu2 %v2410_v27 }
 0x865   :  { %1504 = vmatpush.msrb.mxu2 %v2412_v58 }
 0x867   :  { %1505 = vmatpush.msrb.mxu2 %v2414_v30 }
 0x869   :  { %1506 = vmatpush.msrb.mxu2 %v2416_v15 }
 0x8cc   :  { %v1304_v7 = vpop.xlane.xlu0 %1303 }
 0x8cd   :  { %v1308_v20 = vmul.f32 %v1304_v7, %v2940_v10  ;;  %v2421_v7 = vld [vmem:[%s2740_s9 + $0x1d0] sm:$0xff] }
 0x8cf   :  { %v1310_v21 = vadd.f32 1e-05, %v1308_v20  ;;  %v2424_v20 = vld [vmem:[%s2745_s13 + $0x20] sm:$0xff] }
 0x8d1   :  { %2368 = vrsqrt.f32 %v1310_v21  ;;  %vm1318_vm15 = vweird.f32 %v1310_v21 }
 0x8d4   :  { %v1307_v46 = vpop.xlane.xlu2 %1306 }
 0x8d5   :  { %v1309_v31 = vmul.f32 %v1307_v46, %v2940_v10  ;;  %v2432_v46 = vld [vmem:[%s2745_s13] sm:$0xff] }
 0x8d7   :  { %v2369_v37 = vpop.eup %2368  ;;  %v1311_v48 = vadd.f32 1e-05, %v1309_v31  ;;  %v2434_v31 = vld [vmem:[%s2740_s9 + $0x198] sm:$0xff] }
 0x8d8   :  { %v1313_v41 = vmul.f32 %v2369_v37, %v1310_v21  ;;  %vm1319_vm14 = vweird.f32 %v2369_v37  ;;  %v2426_v21 = vld [vmem:[%s2745_s13 + $0x18] sm:$0xff]  ;;  %s3828_s13 = sld [smem:[#allocation32_spill]] }
 0x8d9   :  { %2370 = vrsqrt.f32 %v1311_v48  ;;  %vm1320_vm1 = vmor %vm1318_vm15, %vm1319_vm14  ;;  %vm1328_vm3 = vweird.f32 %v1311_v48 }
 0x8da   :  { %v1314_v50 = vmul.f32 %v2369_v37, %v1313_v41  ;;  %v2440_v41 = vld [vmem:[%s2750_s17 + $0xb0] sm:$0xff] }
 0x8dc   :  { %v1315_v54 = vmul.f32 0.5, %v1314_v50  ;;  %v2443_v50 = vld [vmem:[%s2750_s17 + $0x50] sm:$0xff] }
 0x8de   :  { %v1316_v56 = vsub.f32 1.5, %v1315_v54 }
 0x8df   :  { %v2371_v61 = vpop.eup %2370 }
 0x8e0   :  { %v1317_v11 = vmul.f32 %v2369_v37, %v1316_v56  ;;  %v1323_v17 = vmul.f32 %v2371_v61, %v1311_v48  ;;  %vm1329_vm2 = vweird.f32 %v2371_v61  ;;  %v2438_v48 = vld [vmem:[%s2750_s17 + $0xf0] sm:$0xff] }
 0x8e1   :  { %vm1330_vm4 = vmor %vm1328_vm3, %vm1329_vm2 }
 0x8e2   :  { %v1321_v25 = vsel %vm1320_vm1, %v2369_v37, %v1317_v11  ;;  %v1324_v32 = vmul.f32 %v2371_v61, %v1323_v17  ;;  %v2437_v37 = vld [vmem:[%s2740_s9 + $0x180] sm:$0xff] }
 0x8e3   :  { %v1332_v6 = vmul.f32 %v1321_v25, %v3458_v26 }
 0x8e4   :  { %v1325_v19 = vmul.f32 0.5, %v1324_v32 }
 0x8e5   :  { %v1337_v1 = vmul.f32 %v2341_v24, %v1332_v6 }
 0x8e6   :  { %v1326_v42 = vsub.f32 1.5, %v1325_v19 }
 0x8e7   :  { %v1342_v29 = vadd.f32 %v2342_v8, %v1337_v1 }
 0x8e8   :  { %v1327_v28 = vmul.f32 %v2371_v61, %v1326_v42 }
 0x8e9   :  { %2216 = vmatmul.msk.f32.vlgmr.msra.gmra.mxu1 %vm447_vm0, %v1342_v29  ;;  %2218 = vmatmul.msk.f32.vlgmr.msra.gmra.mxu2 %vm447_vm0, %v1342_v29 }
 0x8ea   :  { %v1331_v26 = vsel %vm1330_vm4, %v2371_v61, %v1327_v28  ;;  %1560 = vmatpush.msra.mxu1 %v2411_v18  ;;  %1611 = vmatpush.msra.mxu2 %v2417_v23 }
 0x8eb   :  { %v1333_v33 = vmul.f32 %v1331_v26, %v3465_v4  ;;  %v2419_v4 = vld [vmem:[%s2740_s9 + $0x1d8] sm:$0xff]  ;;  %s3827_s9 = sld [smem:[#allocation31_spill]] }
 0x8ec   :  { %1561 = vmatpush.msra.mxu1 %v2413_v36  ;;  %1612 = vmatpush.msra.mxu2 %v2420_v57 }
 0x8ed   :  { %v1338_v0 = vmul.f32 %v2341_v24, %v1333_v33 }
 0x8ee   :  { %1562 = vmatpush.msra.mxu1 %v2415_v63  ;;  %1613 = vmatpush.msra.mxu2 %v2422_v9 }
 0x8ef   :  { %v1343_v34 = vadd.f32 %v2342_v8, %v1338_v0 }
 0x8f0   :  { %1563 = vmatpush.msra.mxu1 %v2418_v3  ;;  %1614 = vmatpush.msra.mxu2 %v2424_v20 }
 0x8f1   :  { %2217 = vmatmul.msk.f32.gmra.mxu1 %vm447_vm0, %v1343_v34  ;;  %2219 = vmatmul.msk.f32.gmra.mxu2 %vm447_vm0, %v1343_v34 }
 0x8f2   :  { %1564 = vmatpush.msra.mxu1 %v2419_v4  ;;  %1615 = vmatpush.msra.mxu2 %v2426_v21 }
 0x8f4   :  { %1565 = vmatpush.msra.mxu1 %v2421_v7  ;;  %1616 = vmatpush.msra.mxu2 %v2428_v40 }
 0x8f6   :  { %1566 = vmatpush.msra.mxu1 %v2423_v14  ;;  %1617 = vmatpush.msra.mxu2 %v2430_v45 }
 0x8f8   :  { %1567 = vmatpush.msra.mxu1 %v2425_v51  ;;  %1618 = vmatpush.msra.mxu2 %v2432_v46 }
 0x8f9   :  { %2220 = vmatmul.msk.f32.vlgmr.msrb.gmra.mxu1 %vm447_vm0, %v1342_v29 }
 0x8fa   :  { %1568 = vmatpush.msra.mxu1 %v2427_v38 }
 0x8fc   :  { %1569 = vmatpush.msra.mxu1 %v2429_v43 }
 0x8fe   :  { %1570 = vmatpush.msra.mxu1 %v2431_v13 }
 0x900   :  { %1571 = vmatpush.msra.mxu1 %v2433_v16 }
 0x901   :  { %2221 = vmatmul.msk.f32.gmra.mxu1 %vm447_vm0, %v1343_v34 }
 0x902   :  { %1572 = vmatpush.msra.mxu1 %v2434_v31 }
 0x904   :  { %1573 = vmatpush.msra.mxu1 %v2435_v35 }
 0x906   :  { %1574 = vmatpush.msra.mxu1 %v2436_v47 }
 0x908   :  { %1575 = vmatpush.msra.mxu1 %v2437_v37  ;;  %v2444_v37 = vld [vmem:[%s2750_s17 + $0xf8] sm:$0xff] }
 0x90a   :  { %1690 = vmatpush.msrb.mxu1 %v2438_v48  ;;  %v2445_v48 = vld [vmem:[%s2750_s17 + $0xd8] sm:$0xff] }
 0x90c   :  { %1691 = vmatpush.msrb.mxu1 %v2439_v39 }
 0x90e   :  { %1692 = vmatpush.msrb.mxu1 %v2440_v41 }
 0x910   :  { %1693 = vmatpush.msrb.mxu1 %v2441_v44 }
 0x912   :  { %1694 = vmatpush.msrb.mxu1 %v2442_v49 }
 0x914   :  { %1695 = vmatpush.msrb.mxu1 %v2443_v50 }
 0x916   :  { %1696 = vmatpush.msrb.mxu1 %v3825_v52  ;;  %v2446_v52 = vld [vmem:[%s2750_s17 + $0xb8] sm:$0xff] }
 0x918   :  { %1697 = vmatpush.msrb.mxu1 %v3826_v53 }
 0x966   :  { %v1367_v54 = vpop.f32.mrf.mxu1 }
 0x96c   :  { %v1390_v55 = vpop.f32.mrf.mxu2 }
 0x96d   :  { %v1439_v56 = vperm.slane %v1390_v55, 5  ;;  %v1447_v60 = vperm.slane %v1390_v55, 7  ;;  %v1423_v61 = vperm.slane %v1390_v55, 1  ;;  %v1431_v11 = vperm.slane %v1390_v55, 3 }
 0x96e   :  { %v3554_v17 = vpop.f32.mrf.mxu1  ;;  %v1435_v22 = vperm.slane %v1390_v55, 4  ;;  %v1443_v24 = vperm.slane %v1390_v55, 6  ;;  %v1419_v25 = vperm.slane %v1390_v55, 0  ;;  %v1427_v32 = vperm.slane %v1390_v55, 2  ;;  %v2447_v55 = vld [vmem:[%s2750_s17 + $0x98] sm:$0xff] }
 0x96f   :  { %v1441_v2 = vmul.f32 %v1439_v56, %v1367_v54  ;;  %v1449_v6 = vmul.f32 %v1447_v60, %v1367_v54  ;;  %v1425_v8 = vmul.f32 %v1423_v61, %v1367_v54  ;;  %v1433_v19 = vmul.f32 %v1431_v11, %v1367_v54  ;;  %v2448_v61 = vld [vmem:[%s2750_s17 + $0x78] sm:$0xff] }
 0x970   :  { %v1437_v5 = vmul.f32 %v1435_v22, %v1367_v54  ;;  %v1445_v1 = vmul.f32 %v1443_v24, %v1367_v54  ;;  %v1421_v42 = vmul.f32 %v1419_v25, %v1367_v54  ;;  %v1429_v59 = vmul.f32 %v1427_v32, %v1367_v54  ;;  %v2449_v11 = vld [vmem:[%s2750_s17 + $0x58] sm:$0xff] }
 0x971   :  { %v2320_v29 = vpack.i.bf16 %v1449_v6, %v1441_v2  ;;  %v2315_v28 = vpack.i.bf16 %v1433_v19, %v1425_v8  ;;  %v2450_v6 = vld [vmem:[%s2750_s17 + $0x38] sm:$0xff] }
 0x973   :  { %2321 = vrot.lane.b32.xlu2 %v2320_v29, %s2725_s29  ;;  %2316 = vrot.lane.b32.xlu1 %v2315_v28, %s2725_s29 }
 0x974   :  { %v3558_v27 = vpop.f32.mrf.mxu2 }
 0x975   :  { %v1424_v26 = vperm.slane %v3558_v27, 1  ;;  %v1432_v18 = vperm.slane %v3558_v27, 3  ;;  %v1440_v63 = vperm.slane %v3558_v27, 5  ;;  %v1448_v15 = vperm.slane %v3558_v27, 7 }
 0x976   :  { %v3562_v58 = vpop.f32.mrf.mxu1  ;;  %v1420_v35 = vperm.slane %v3558_v27, 0  ;;  %v1428_v47 = vperm.slane %v3558_v27, 2  ;;  %v1436_v56 = vperm.slane %v3558_v27, 4  ;;  %v1444_v60 = vperm.slane %v3558_v27, 6 }
 0x977   :  { %v1426_v33 = vmul.f32 %v1424_v26, %v3554_v17  ;;  %v1434_v36 = vmul.f32 %v1432_v18, %v3554_v17  ;;  %v1732_v0 = vperm.slane %v3562_v58, 1  ;;  %v1442_v34 = vmul.f32 %v1440_v63, %v3554_v17 }
 0x978   :  { %v1450_v23 = vmul.f32 %v1448_v15, %v3554_v17  ;;  %v1760_v4 = vperm.slane %v3562_v58, 3  ;;  %v1788_v9 = vperm.slane %v3562_v58, 5  ;;  %v1422_v49 = vmul.f32 %v1420_v35, %v3554_v17 }
 0x979   :  { %v2325_v30 = vpack.i.bf16 %v1434_v36, %v1426_v33  ;;  %v1430_v50 = vmul.f32 %v1428_v47, %v3554_v17  ;;  %v1438_v32 = vmul.f32 %v1436_v56, %v3554_v17  ;;  %v1446_v2 = vmul.f32 %v1444_v60, %v3554_v17 }
 0x97a   :  { %v2330_v3 = vpack.i.bf16 %v1450_v23, %v1442_v34  ;;  %v1816_v23 = vperm.slane %v3562_v58, 7  ;;  %v1810_v60 = vperm.slane %v3562_v58, 6 }
 0x97b   :  { %2326 = vrot.lane.b32.xlu0 %v2325_v30, %s2725_s29  ;;  %1736 = vrot.lane.b32.xlu2 %v1732_v0, %s2725_s29 }
 0x97e   :  { %v3576_v57 = vpop.f32.mrf.mxu1 }
 0x97f   :  { %v1733_v7 = vperm.slane %v3576_v57, 1  ;;  %v1761_v14 = vperm.slane %v3576_v57, 3  ;;  %v1817_v20 = vperm.slane %v3576_v57, 7 }
 0x983   :  { %2331 = vrot.lane.b32.xlu0 %v2330_v3, %s2725_s29  ;;  %1764 = vrot.lane.b32.xlu2 %v1760_v4, %s2725_s29  ;;  %v1789_v3 = vperm.slane %v3576_v57, 5 }
 0x98b   :  { %1738 = vrot.lane.b32.xlu2 %v1733_v7, %s2725_s29 }
 0x993   :  { %1792 = vrot.lane.b32.xlu2 %v1788_v9, %s2725_s29 }
 0x99b   :  { %1766 = vrot.lane.b32.xlu2 %v1761_v14, %s2725_s29 }
 0x9a3   :  { %1822 = vrot.lane.b32.xlu2 %v1817_v20, %s2725_s29 }
 0x9cd   :  { %v2322_v51 = vpop.permute.xlu2 %2321 }
 0x9ce   :  { %v2324_v21 = vunpack.i.h.bf16 %v2322_v51  ;;  %v2323_v38 = vunpack.i.l.bf16 %v2322_v51 }
 0x9d0   :  { %v1487_v40 = vsel %vm447_vm0, %v1437_v5, %v2323_v38  ;;  %v1489_v43 = vsel %vm447_vm0, %v1445_v1, %v2324_v21  ;;  %v2451_v5 = vld [vmem:[%s2750_s17 + $0x18] sm:$0xff]  ;;  %s3829_s17 = sld [smem:[#allocation35_spill]] }
 0x9d1   :  { %1553 = vmatmul.f32.vlgmr.msrb.gmra.mxu0 %v1487_v40  ;;  %1576 = vmatmul.f32.vlgmr.msra.gmra.mxu1 %v1489_v43 }
 0x9d5   :  { %v1737_v47 = vpop.permute.xlu2 %1736 }
 0x9e5   :  { %v2317_v45 = vpop.permute.xlu1 %2316 }
 0x9e6   :  { %v2319_v13 = vunpack.i.h.bf16 %v2317_v45  ;;  %v2318_v46 = vunpack.i.l.bf16 %v2317_v45 }
 0x9e8   :  { %v1483_v16 = vsel %vm447_vm0, %v1421_v42, %v2318_v46  ;;  %v1485_v31 = vsel %vm447_vm0, %v1429_v59, %v2319_v13 }
 0x9e9   :  { %1507 = vmatmul.f32.vlgmr.msrb.gmra.mxu2 %v1483_v16  ;;  %1530 = vmatmul.f32.vlgmr.msra.gmra.mxu3 %v1485_v31 }
 0x9ea   :  { %1713 = vmatpush.msrb.mxu2 %v2444_v37  ;;  %v1765_v37 = vpop.permute.xlu2 %1764 }
 0x9ec   :  { %1714 = vmatpush.msrb.mxu2 %v2445_v48 }
 0x9ed   :  { %v2327_v39 = vpop.permute.xlu0 %2326 }
 0x9ee   :  { %v2329_v41 = vunpack.i.h.bf16 %v2327_v39  ;;  %v2328_v44 = vunpack.i.l.bf16 %v2327_v39  ;;  %1715 = vmatpush.msrb.mxu2 %v2446_v52  ;;  %v1754_v39 = vperm.slane %v3562_v58, 2 }
 0x9f0   :  { %v1484_v53 = vsel %vm447_vm0, %v1422_v49, %v2328_v44  ;;  %v1486_v54 = vsel %vm447_vm0, %v1430_v50, %v2329_v41  ;;  %1716 = vmatpush.msrb.mxu2 %v2447_v55  ;;  %v1782_v44 = vperm.slane %v3562_v58, 4  ;;  %v1728_v55 = vperm.slane %v3562_v58, 0 }
 0x9f1   :  { %1510 = vmatmul.f32.gmra.mxu2 %v1484_v53  ;;  %1533 = vmatmul.f32.gmra.mxu3 %v1486_v54 }
 0x9f2   :  { %1717 = vmatpush.msrb.mxu2 %v2448_v61  ;;  %v1739_v48 = vpop.permute.xlu2 %1738 }
 0x9f4   :  { %1718 = vmatpush.msrb.mxu2 %v2449_v11 }
 0x9f5   :  { %v2332_v22 = vpop.permute.xlu0 %2331 }
 0x9f6   :  { %v2334_v24 = vunpack.i.h.bf16 %v2332_v22  ;;  %v2333_v25 = vunpack.i.l.bf16 %v2332_v22  ;;  %1719 = vmatpush.msrb.mxu2 %v2450_v6 }
 0x9f8   :  { %v1488_v8 = vsel %vm447_vm0, %v1438_v32, %v2333_v25  ;;  %v1490_v19 = vsel %vm447_vm0, %v1446_v2, %v2334_v24  ;;  %1720 = vmatpush.msrb.mxu2 %v2451_v5 }
 0x9f9   :  { %1556 = vmatmul.f32.gmra.mxu0 %v1488_v8  ;;  %1579 = vmatmul.f32.gmra.mxu1 %v1490_v19 }
 0x9fa   :  { %v1793_v49 = vpop.permute.xlu2 %1792 }
 0xa02   :  { %v1767_v58 = vpop.permute.xlu2 %1766 }
 0xa4e   :  { %v1554_v29 = vpop.f32.mrf.mxu0  ;;  %v1577_v27 = vpop.f32.mrf.mxu1 }
 0xa6c   :  { %v1508_v1 = vpop.f32.mrf.mxu2  ;;  %v1531_v42 = vpop.f32.mrf.mxu3 }
 0xa6d   :  { %v1532_v59 = vadd.f32 %v1531_v42, %v1508_v1 }
 0xa6f   :  { %v1555_v28 = vadd.f32 %v1554_v29, %v1532_v59 }
 0xa71   :  { %v1578_v26 = vadd.f32 %v1577_v27, %v1555_v28  ;;  %v1823_v28 = vpop.permute.xlu2 %1822 }
 0xa73   :  { %v1583_v18 = vsel %vm447_vm0, %v1578_v26, -inf }
 0xa74   :  { %v1511_v17 = vpop.f32.mrf.mxu2  ;;  %v1534_v33 = vpop.f32.mrf.mxu3  ;;  %1584 = vmax.xlane.f32.xlu1 %v1583_v18  ;;  %v1235_v18 = vld [vmem:[%s3827_s9 + $0x30] sm:$0xff] }
 0xa75   :  { %v1535_v36 = vadd.f32 %v1534_v33, %v1511_v17  ;;  %v1234_v17 = vld [vmem:[%s3827_s9 + $0x28] sm:$0xff] }
 0xa76   :  { %v1557_v30 = vpop.f32.mrf.mxu0  ;;  %v1580_v63 = vpop.f32.mrf.mxu1 }
 0xa77   :  { %v1558_v0 = vadd.f32 %v1557_v30, %v1535_v36 }
 0xa79   :  { %v1581_v15 = vadd.f32 %v1580_v63, %v1558_v0  ;;  %v1233_v0 = vld [vmem:[%s3827_s9 + $0x20] sm:$0xff]  ;;  %v1232_v63 = vld [vmem:[%s3827_s9 + $0x18] sm:$0xff] }
 0xa7b   :  { %v1586_v34 = vsel %vm447_vm0, %v1581_v15, -inf }
 0xa7c   :  { %1587 = vmax.xlane.f32.xlu0 %v1586_v34 }
 0xa8d   :  { %1820 = vrot.lane.b32.xlu1 %v1816_v23, %s2725_s29  ;;  %v1231_v23 = vld [vmem:[%s3827_s9 + $0x10] sm:$0xff] }
 0xa90   :  { %1794 = vrot.lane.b32.xlu0 %v1789_v3, %s2725_s29 }
 0xae7   :  { %v1585_v4 = vpop.xlane.xlu1 %1584 }
 0xae8   :  { %v1589_v7 = vsub.f32 %v1578_v26, %v1585_v4  ;;  %v1236_v26 = vld [vmem:[%s3827_s9 + $0x38] sm:$0xff]  ;;  %v1230_v4 = vld [vmem:[%s3827_s9 + $0x8] sm:$0xff] }
 0xae9   :  { %1855 = vmatpush.msra.mxu3 %v1236_v26  ;;  %v1248_v26 = vld [vmem:[%s3829_s17 + $0x40] sm:$0xff] }
 0xaea   :  { %v1591_v9 = vmax.f32 %v1589_v7, -60.0  ;;  %v1229_v7 = vld [vmem:[%s3827_s9] sm:$0xff] }
 0xaeb   :  { %1856 = vmatpush.msra.mxu3 %v1235_v18  ;;  %v1249_v18 = vld [vmem:[%s3829_s17 + $0x48] sm:$0xff] }
 0xaec   :  { %v1593_v14 = vmul.f32 1.442695, %v1591_v9 }
 0xaed   :  { %1857 = vmatpush.msra.mxu3 %v1234_v17  ;;  %v1246_v17 = vld [vmem:[%s3829_s17 + $0x30] sm:$0xff] }
 0xaee   :  { %2372 = vpow2.f32 %v1593_v14 }
 0xaef   :  { %v1588_v20 = vpop.xlane.xlu0 %1587  ;;  %1858 = vmatpush.msra.mxu3 %v1233_v0  ;;  %v1242_v0 = vld [vmem:[%s3829_s17 + $0x10] sm:$0xff] }
 0xaf0   :  { %v1590_v51 = vsub.f32 %v1581_v15, %v1588_v20 }
 0xaf1   :  { %1859 = vmatpush.msra.mxu3 %v1232_v63  ;;  %v1243_v63 = vld [vmem:[%s3829_s17 + $0x18] sm:$0xff] }
 0xaf2   :  { %v1592_v21 = vmax.f32 %v1590_v51, -60.0  ;;  %v1729_v51 = vperm.slane %v3576_v57, 0 }
 0xaf3   :  { %1860 = vmatpush.msra.mxu3 %v1231_v23  ;;  %v1241_v23 = vld [vmem:[%s3829_s17 + $0x8] sm:$0xff] }
 0xaf4   :  { %v2373_v38 = vpop.eup %2372  ;;  %v1595_v40 = vmul.f32 1.442695, %v1592_v21  ;;  %v1755_v21 = vperm.slane %v3576_v57, 2 }
 0xaf5   :  { %2222 = vmatmul.msk.f32.vlgmr.msra.gmra.mxu2 %vm447_vm0, %v2373_v38  ;;  %1861 = vmatpush.msra.mxu3 %v1230_v4 }
 0xaf6   :  { %2374 = vpow2.f32 %v1595_v40 }
 0xaf7   :  { %1862 = vmatpush.msra.mxu3 %v1229_v7  ;;  %v1272_v7 = vld [vmem:[%s3830_s22 + $0x78] sm:$0xff] }
 0xaf8   :  { %1990 = vmatpush.msra.mxu2 %v1272_v7 }
 0xafc   :  { %v2375_v43 = vpop.eup %2374 }
 0xafd   :  { %2223 = vmatmul.msk.f32.gmra.mxu2 %vm447_vm0, %v2375_v43 }
 0xaff   :  { %v1821_v1 = vpop.permute.xlu1 %1820 }
 0xb02   :  { %v1795_v25 = vpop.permute.xlu0 %1794 }
 0xb78   :  { %v1620_v45 = vpop.f32.mrf.mxu2 }
 0xb79   :  { %2376 = vrcp.f32 %v1620_v45 }
 0xb7f   :  { %v2377_v13 = vpop.eup %2376 }
 0xb80   :  { %v1628_v46 = vmul.f32 %v2377_v13, %v2373_v38  ;;  %v1623_v16 = vpop.f32.mrf.mxu2  ;;  %v1783_v13 = vperm.slane %v3576_v57, 4 }
 0xb81   :  { %2378 = vrcp.f32 %v1623_v16 }
 0xb82   :  { %2224 = vmatmul.msk.f32.vlgmr.msrb.gmra.mxu3 %vm447_vm0, %v1628_v46  ;;  %2226 = vmatmul.msk.f32.vlgmr.msra.gmra.mxu0 %vm447_vm0, %v1628_v46 }
 0xb83   :  { %2228 = vmatmul.msk.f32.vlgmr.msrb.gmra.mxu1 %vm447_vm0, %v1628_v46  ;;  %2230 = vmatmul.msk.f32.vlgmr.msrb.gmra.mxu2 %vm447_vm0, %v1628_v46 }
 0xb87   :  { %v2379_v31 = vpop.eup %2378 }
 0xb88   :  { %v1629_v35 = vmul.f32 %v2379_v31, %v2375_v43 }
 0xb8a   :  { %2225 = vmatmul.msk.f32.gmra.mxu3 %vm447_vm0, %v1629_v35  ;;  %2227 = vmatmul.msk.f32.gmra.mxu0 %vm447_vm0, %v1629_v35 }
 0xb8b   :  { %2229 = vmatmul.msk.f32.gmra.mxu1 %vm447_vm0, %v1629_v35  ;;  %2231 = vmatmul.msk.f32.gmra.mxu2 %vm447_vm0, %v1629_v35 }
 0xbff   :  { %v1676_v41 = vpop.f32.mrf.mxu0 }
 0xc00   :  { %v1756_v50 = vmul.f32 %v1754_v39, %v1676_v41  ;;  %v1699_v52 = vpop.f32.mrf.mxu1  ;;  %v1770_v8 = vmul.f32 %v1765_v37, %v1676_v41  ;;  %v1811_v39 = vperm.slane %v3576_v57, 6 }
 0xc01   :  { %v1784_v53 = vmul.f32 %v1782_v44, %v1699_v52  ;;  %v1798_v54 = vmul.f32 %v1793_v49, %v1699_v52 }
 0xc03   :  { %1802 = vrot.lane.b32.xlu1 %v1798_v54, %s2725_s29  ;;  %v2343_v54 = vld [vmem:[%s3828_s13] ss:$0 sm:$0xff] }
 0xc05   :  { %v1653_v56 = vpop.f32.mrf.mxu3 }
 0xc06   :  { %v1730_v61 = vmul.f32 %v1728_v55, %v1653_v56  ;;  %v1742_v11 = vmul.f32 %v1737_v47, %v1653_v56  ;;  %v1722_v22 = vpop.f32.mrf.mxu2 }
 0xc07   :  { %v1812_v24 = vmul.f32 %v1810_v60, %v1722_v22  ;;  %v1679_v5 = vpop.f32.mrf.mxu0  ;;  %v1826_v42 = vmul.f32 %v1821_v1, %v1722_v22  ;;  %v1254_v1 = vld [vmem:[%s3829_s17 + $0x70] sm:$0xff] }
 0xc08   :  { %v1702_v32 = vpop.f32.mrf.mxu1  ;;  %1746 = vrot.lane.b32.xlu2 %v1742_v11, %s2725_s29  ;;  %v1771_v59 = vmul.f32 %v1767_v58, %v1679_v5  ;;  %v1757_v43 = vmul.f32 %v1755_v21, %v1679_v5  ;;  %1945 = vmatpush.msrb.mxu0 %v1254_v1  ;;  %v1286_v21 = vld [vmem:[%s3830_s22 + $0xe8] sm:$0xff]  ;;  %v1261_v1 = vld [vmem:[%s3830_s22 + $0x20] sm:$0xff] }
 0xc09   :  { %v1799_v2 = vmul.f32 %v1795_v25, %v1702_v32  ;;  %v1785_v31 = vmul.f32 %v1783_v13, %v1702_v32 }
 0xc0b   :  { %1804 = vrot.lane.b32.xlu1 %v1799_v2, %s2725_s29 }
 0xc0d   :  { %v1656_v6 = vpop.f32.mrf.mxu3 }
 0xc0e   :  { %v1743_v19 = vmul.f32 %v1739_v48, %v1656_v6  ;;  %v1725_v29 = vpop.f32.mrf.mxu2  ;;  %v1731_v38 = vmul.f32 %v1729_v51, %v1656_v6  ;;  %v1270_v51 = vld [vmem:[%s3830_s22 + $0x68] sm:$0xff] }
 0xc0f   :  { %v1827_v27 = vmul.f32 %v1823_v28, %v1725_v29  ;;  %v1813_v49 = vmul.f32 %v1811_v39, %v1725_v29  ;;  %v1253_v29 = vld [vmem:[%s3829_s17 + $0x68] sm:$0xff]  ;;  %v1250_v28 = vld [vmem:[%s3829_s17 + $0x50] sm:$0xff] }
 0xc10   :  { %1774 = vrot.lane.b32.xlu2 %v1770_v8, %s2725_s29  ;;  %1748 = vrot.lane.b32.xlu0 %v1743_v19, %s2725_s29  ;;  %v1266_v39 = vld [vmem:[%s3830_s22 + $0x48] sm:$0xff] }
 0xc18   :  { %1776 = vrot.lane.b32.xlu2 %v1771_v59, %s2725_s29  ;;  %1830 = vrot.lane.b32.xlu0 %v1826_v42, %s2725_s29  ;;  %v1255_v42 = vld [vmem:[%s3829_s17 + $0x78] sm:$0xff]  ;;  %v1252_v59 = vld [vmem:[%s3829_s17 + $0x60] sm:$0xff] }
 0xc19   :  { %1968 = vmatpush.msra.mxu1 %v1255_v42  ;;  %1946 = vmatpush.msrb.mxu0 %v1252_v59  ;;  %v1277_v42 = vld [vmem:[%s3830_s22 + $0xa0] sm:$0xff] }
 0xc1b   :  { %1969 = vmatpush.msra.mxu1 %v1253_v29  ;;  %1947 = vmatpush.msrb.mxu0 %v1250_v28  ;;  %v1260_v28 = vld [vmem:[%s3830_s22 + $0x18] sm:$0xff] }
 0xc1d   :  { %1948 = vmatpush.msrb.mxu0 %v1248_v26 }
 0xc1f   :  { %1949 = vmatpush.msrb.mxu0 %v1246_v17 }
 0xc20   :  { %1832 = vrot.lane.b32.xlu2 %v1827_v27, %s2725_s29  ;;  %v1251_v27 = vld [vmem:[%s3829_s17 + $0x58] sm:$0xff] }
 0xc21   :  { %1970 = vmatpush.msra.mxu1 %v1251_v27  ;;  %v1276_v27 = vld [vmem:[%s3830_s22 + $0x98] sm:$0xff] }
 0xc23   :  { %1971 = vmatpush.msra.mxu1 %v1249_v18 }
 0xc62   :  { %v1747_v33 = vpop.permute.xlu2 %1746 }
 0xc63   :  { %v1752_v36 = vadd.f32 %v1747_v33, %v1730_v61  ;;  %v1247_v33 = vld [vmem:[%s3829_s17 + $0x38] sm:$0xff] }
 0xc64   :  { %1972 = vmatpush.msra.mxu1 %v1247_v33 }
 0xc65   :  { %v1758_v30 = vadd.f32 %v1756_v50, %v1752_v36  ;;  %v1244_v36 = vld [vmem:[%s3829_s17 + $0x20] sm:$0xff] }
 0xc66   :  { %1950 = vmatpush.msrb.mxu0 %v1244_v36  ;;  %v1259_v36 = vld [vmem:[%s3830_s22 + $0x10] sm:$0xff] }
 0xc68   :  { %1951 = vmatpush.msrb.mxu0 %v1242_v0  ;;  %v1258_v0 = vld [vmem:[%s3830_s22 + $0x8] sm:$0xff] }
 0xc6a   :  { %v1775_v15 = vpop.permute.xlu2 %1774 }
 0xc6b   :  { %v1780_v34 = vadd.f32 %v1775_v15, %v1758_v30  ;;  %v1245_v30 = vld [vmem:[%s3829_s17 + $0x28] sm:$0xff] }
 0xc6c   :  { %1973 = vmatpush.msra.mxu1 %v1245_v30  ;;  %v1275_v30 = vld [vmem:[%s3830_s22 + $0x90] sm:$0xff] }
 0xc6d   :  { %v1786_v3 = vadd.f32 %v1784_v53, %v1780_v34  ;;  %v1240_v34 = vld [vmem:[%s3829_s17] sm:$0xff] }
 0xc6e   :  { %1974 = vmatpush.msra.mxu1 %v1243_v63  ;;  %1952 = vmatpush.msrb.mxu0 %v1240_v34  ;;  %v1274_v63 = vld [vmem:[%s3830_s22 + $0x88] sm:$0xff]  ;;  %v1273_v34 = vld [vmem:[%s3830_s22 + $0x80] sm:$0xff] }
 0xc70   :  { %1975 = vmatpush.msra.mxu1 %v1241_v23 }
 0xc72   :  { %v1777_v16 = vpop.permute.xlu2 %1776 }
 0xc75   :  { %v1803_v9 = vpop.permute.xlu1 %1802 }
 0xc76   :  { %v1808_v14 = vadd.f32 %v1803_v9, %v1786_v3  ;;  %v1288_v9 = vld [vmem:[%s3830_s22 + $0xf8] sm:$0xff] }
 0xc77   :  { %2013 = vmatpush.msrb.mxu3 %v1288_v9 }
 0xc78   :  { %v1814_v20 = vadd.f32 %v1812_v24, %v1808_v14  ;;  %v1271_v14 = vld [vmem:[%s3830_s22 + $0x70] sm:$0xff] }
 0xc79   :  { %1991 = vmatpush.msra.mxu2 %v1271_v14 }
 0xc7a   :  { %v1833_v52 = vpop.permute.xlu2 %1832 }
 0xc7b   :  { %1992 = vmatpush.msra.mxu2 %v1270_v51 }
 0xc7d   :  { %v1805_v37 = vpop.permute.xlu1 %1804 }
 0xc82   :  { %v1749_v40 = vpop.permute.xlu0 %1748 }
 0xc83   :  { %v1753_v45 = vadd.f32 %v1749_v40, %v1731_v38 }
 0xc85   :  { %v1759_v46 = vadd.f32 %v1757_v43, %v1753_v45  ;;  %v1269_v43 = vld [vmem:[%s3830_s22 + $0x60] sm:$0xff] }
 0xc86   :  { %v1285_v45 = vld [vmem:[%s3830_s22 + $0xe0] sm:$0xff]  ;;  %1993 = vmatpush.msra.mxu2 %v1269_v43 }
 0xc87   :  { %v1781_v35 = vadd.f32 %v1777_v16, %v1759_v46  ;;  %v1268_v16 = vld [vmem:[%s3830_s22 + $0x58] sm:$0xff] }
 0xc88   :  { %1994 = vmatpush.msra.mxu2 %v1268_v16 }
 0xc89   :  { %v1787_v47 = vadd.f32 %v1785_v31, %v1781_v35  ;;  %v1284_v31 = vld [vmem:[%s3830_s22 + $0xd8] sm:$0xff] }
 0xc8a   :  { %v1831_v48 = vpop.permute.xlu0 %1830 }
 0xc8b   :  { %v1836_v41 = vadd.f32 %v1831_v48, %v1814_v20  ;;  %v1809_v44 = vadd.f32 %v1805_v37, %v1787_v47  ;;  %v1287_v20 = vld [vmem:[%s3830_s22 + $0xf0] sm:$0xff] }
 0xc8c   :  { %2014 = vmatpush.msrb.mxu3 %v1287_v20  ;;  %v1267_v47 = vld [vmem:[%s3830_s22 + $0x50] sm:$0xff] }
 0xc8d   :  { %2232 = vmatmul.msk.f32.vlgmr.msra.gmra.mxu3 %vm447_vm0, %v1836_v41  ;;  %v1815_v50 = vadd.f32 %v1813_v49, %v1809_v44  ;;  %v1283_v37 = vld [vmem:[%s3830_s22 + $0xd0] sm:$0xff]  ;;  %v1282_v41 = vld [vmem:[%s3830_s22 + $0xc8] sm:$0xff]  ;;  %1995 = vmatpush.msra.mxu2 %v1267_v47  ;;  %v1265_v49 = vld [vmem:[%s3830_s22 + $0x40] sm:$0xff] }
 0xc8e   :  { %2015 = vmatpush.msrb.mxu3 %v1286_v21 }
 0xc8f   :  { %v1837_v53 = vadd.f32 %v1833_v52, %v1815_v50  ;;  %v1281_v50 = vld [vmem:[%s3830_s22 + $0xc0] sm:$0xff]  ;;  %1996 = vmatpush.msra.mxu2 %v1266_v39 }
 0xc90   :  { %2016 = vmatpush.msrb.mxu3 %v1285_v45 }
 0xc91   :  { %1997 = vmatpush.msra.mxu2 %v1265_v49 }
 0xc92   :  { %2017 = vmatpush.msrb.mxu3 %v1284_v31 }
 0xc94   :  { %2018 = vmatpush.msrb.mxu3 %v1283_v37 }
 0xc95   :  { %2233 = vmatmul.msk.f32.gmra.mxu3 %vm447_vm0, %v1837_v53 }
 0xc96   :  { %2019 = vmatpush.msrb.mxu3 %v1282_v41 }
 0xc98   :  { %2020 = vmatpush.msrb.mxu3 %v1281_v50 }
 0xd10   :  { %v1864_v55 = vpop.f32.mrf.mxu3 }
 0xd11   :  { %v1865_v56 = vadd.f32 %v2343_v54, %v1864_v55  ;;  %v1280_v55 = vld [vmem:[%s3830_s22 + $0xb8] sm:$0xff] }
 0xd12   :  { %2021 = vmatpush.msrb.mxu3 %v1280_v55 }
 0xd13   :  { %v3654_v60 = vadd.f32 %v1865_v56, %v3447_v12  ;;  %v2344_v56 = vld [vmem:[%s3831_s26] ss:$0 sm:$0xff] }
 0xd15   :  { %v1872_v61 = vsel %vm447_vm0, %v3654_v60, 0.0 }
 0xd16   :  { %1873 = vadd.xlane.f32.xlu0 %v1872_v61 }
 0xd18   :  { %v1867_v57 = vpop.f32.mrf.mxu3 }
 0xd19   :  { %v1868_v11 = vadd.f32 %v2343_v54, %v1867_v57  ;;  %v1264_v54 = vld [vmem:[%s3830_s22 + $0x38] sm:$0xff] }
 0xd1a   :  { %1998 = vmatpush.msra.mxu2 %v1264_v54 }
 0xd1b   :  { %v3659_v22 = vadd.f32 %v1868_v11, %v3452_v62  ;;  %v1263_v11 = vld [vmem:[%s3830_s22 + $0x30] sm:$0xff] }
 0xd1c   :  { %1999 = vmatpush.msra.mxu2 %v1263_v11 }
 0xd1d   :  { %v1875_v24 = vsel %vm447_vm0, %v3659_v22, 0.0 }
 0xd1e   :  { %1876 = vadd.xlane.f32.xlu1 %v1875_v24  ;;  %v1279_v24 = vld [vmem:[%s3830_s22 + $0xb0] sm:$0xff] }
 0xd1f   :  { %2022 = vmatpush.msrb.mxu3 %v1279_v24 }
 0xd89   :  { %v1874_v25 = vpop.xlane.xlu0 %1873 }
 0xd8a   :  { %v1878_v12 = vmul.f32 %v1874_v25, %v2940_v10 }
 0xd8c   :  { %v3665_v32 = vsub.f32 %v3654_v60, %v1878_v12 }
 0xd8e   :  { %v1882_v2 = vmul.f32 %v3665_v32, %v3665_v32 }
 0xd90   :  { %v1884_v6 = vsel %vm447_vm0, %v1882_v2, 0.0 }
 0xd91   :  { %1885 = vadd.xlane.f32.xlu2 %v1884_v6  ;;  %v1877_v62 = vpop.xlane.xlu1 %1876  ;;  %v2345_v6 = vld [vmem:[%s3832_s25] ss:$0 sm:$0xff] }
 0xd92   :  { %v1879_v8 = vmul.f32 %v1877_v62, %v2940_v10  ;;  %v1262_v62 = vld [vmem:[%s3830_s22 + $0x28] sm:$0xff] }
 0xd93   :  { %2000 = vmatpush.msra.mxu2 %v1262_v62  ;;  %v2043_v62 = vld [vmem:[%s2895_s14 + $0x18] sm:$0xff] }
 0xd94   :  { %v3672_v19 = vsub.f32 %v3659_v22, %v1879_v8  ;;  %v1278_v8 = vld [vmem:[%s3830_s22 + $0xa8] sm:$0xff] }
 0xd95   :  { %2023 = vmatpush.msrb.mxu3 %v1278_v8  ;;  %2001 = vmatpush.msra.mxu2 %v1261_v1  ;;  %v2042_v8 = vld [vmem:[%s2895_s14 + $0x10] sm:$0xff] }
 0xd96   :  { %v1883_v58 = vmul.f32 %v3672_v19, %v3672_v19 }
 0xd97   :  { %2024 = vmatpush.msrb.mxu3 %v1277_v42  ;;  %2002 = vmatpush.msra.mxu2 %v1260_v28  ;;  %v2040_v42 = vld [vmem:[%s2895_s14] sm:$0xff] }
 0xd98   :  { %v1887_v5 = vsel %vm447_vm0, %v1883_v58, 0.0 }
 0xd99   :  { %1888 = vadd.xlane.f32.xlu0 %v1887_v5  ;;  %2025 = vmatpush.msrb.mxu3 %v1276_v27 }
 0xd9a   :  { %2003 = vmatpush.msra.mxu2 %v1259_v36 }
 0xd9b   :  { %2026 = vmatpush.msrb.mxu3 %v1275_v30 }
 0xd9c   :  { %2004 = vmatpush.msra.mxu2 %v1258_v0 }
 0xd9d   :  { %2027 = vmatpush.msrb.mxu3 %v1274_v63  ;;  %v2347_v63 = vld [vmem:[%s3835_s7] ss:$0 sm:$0xff] }
 0xd9f   :  { %2028 = vmatpush.msrb.mxu3 %v1273_v34 }
 0xe04   :  { %v1886_v15 = vpop.xlane.xlu2 %1885 }
 0xe05   :  { %v1890_v3 = vmul.f32 %v1886_v15, %v2940_v10  ;;  %v1257_v15 = vld [vmem:[%s3830_s22] sm:$0xff] }
 0xe06   :  { %2005 = vmatpush.msra.mxu2 %v1257_v15 }
 0xe07   :  { %v1892_v4 = vadd.f32 1e-05, %v1890_v3 }
 0xe09   :  { %2380 = vrsqrt.f32 %v1892_v4  ;;  %vm1900_vm6 = vweird.f32 %v1892_v4 }
 0xe0c   :  { %v1889_v38 = vpop.xlane.xlu0 %1888 }
 0xe0d   :  { %v1891_v40 = vmul.f32 %v1889_v38, %v2940_v10 }
 0xe0f   :  { %v2381_v13 = vpop.eup %2380  ;;  %v1893_v46 = vadd.f32 1e-05, %v1891_v40 }
 0xe10   :  { %v1895_v35 = vmul.f32 %v2381_v13, %v1892_v4  ;;  %vm1901_vm5 = vweird.f32 %v2381_v13 }
 0xe11   :  { %2382 = vrsqrt.f32 %v1893_v46  ;;  %vm1902_vm7 = vmor %vm1900_vm6, %vm1901_vm5  ;;  %vm1910_vm9 = vweird.f32 %v1893_v46 }
 0xe12   :  { %v1896_v48 = vmul.f32 %v2381_v13, %v1895_v35 }
 0xe14   :  { %v1897_v44 = vmul.f32 0.5, %v1896_v48 }
 0xe16   :  { %v1898_v52 = vsub.f32 1.5, %v1897_v44 }
 0xe17   :  { %v2383_v53 = vpop.eup %2382 }
 0xe18   :  { %v1899_v61 = vmul.f32 %v2381_v13, %v1898_v52  ;;  %v1905_v57 = vmul.f32 %v2383_v53, %v1893_v46  ;;  %vm1911_vm8 = vweird.f32 %v2383_v53  ;;  %v2346_v46 = vld [vmem:[%s3834_s1] ss:$0 sm:$0xff] }
 0xe19   :  { %vm1912_vm10 = vmor %vm1910_vm9, %vm1911_vm8 }
 0xe1a   :  { %v1903_v25 = vsel %vm1902_vm7, %v2381_v13, %v1899_v61  ;;  %v1906_v12 = vmul.f32 %v2383_v53, %v1905_v57 }
 0xe1b   :  { %v1914_v2 = vmul.f32 %v1903_v25, %v3665_v32  ;;  %v2047_v25 = vld [vmem:[%s2895_s14 + $0x38] sm:$0xff] }
 0xe1c   :  { %v1907_v58 = vmul.f32 0.5, %v1906_v12  ;;  %2120 = vmatpush.msra.mxu0 %v2047_v25  ;;  %2240 = vmatpush.msrb.mxu1 %v2047_v25  ;;  %v2046_v12 = vld [vmem:[%s2895_s14 + $0x30] sm:$0xff] }
 0xe1d   :  { %v1919_v5 = vmul.f32 %v2344_v56, %v1914_v2  ;;  %v2045_v2 = vld [vmem:[%s2895_s14 + $0x28] sm:$0xff] }
 0xe1e   :  { %v1908_v59 = vsub.f32 1.5, %v1907_v58  ;;  %2121 = vmatpush.msra.mxu0 %v2046_v12  ;;  %2241 = vmatpush.msrb.mxu1 %v2046_v12 }
 0xe1f   :  { %v1924_v29 = vadd.f32 %v2345_v6, %v1919_v5  ;;  %v2041_v5 = vld [vmem:[%s2895_s14 + $0x8] sm:$0xff] }
 0xe20   :  { %v1909_v26 = vmul.f32 %v2383_v53, %v1908_v59  ;;  %2122 = vmatpush.msra.mxu0 %v2045_v2  ;;  %2242 = vmatpush.msrb.mxu1 %v2045_v2 }
 0xe21   :  { %2234 = vmatmul.msk.f32.vlgmr.msrb.gmra.mxu0 %vm447_vm0, %v1924_v29  ;;  %2236 = vmatmul.msk.f32.vlgmr.msra.gmra.mxu1 %vm447_vm0, %v1924_v29 }
 0xe22   :  { %v1913_v32 = vsel %vm1912_vm10, %v2383_v53, %v1909_v26 }
 0xe23   :  { %v1915_v18 = vmul.f32 %v1913_v32, %v3672_v19  ;;  %v1256_v19 = vld [vmem:[%s3833_s28] sm:$0x3] }
 0xe24   :  { %v1927_v23 = vperm.slane %v1256_v19, 0  ;;  %v1928_v3 = vperm.slane %v1256_v19, 1 }
 0xe25   :  { %v1920_v17 = vmul.f32 %v2344_v56, %v1915_v18 }
 0xe27   :  { %v1925_v33 = vadd.f32 %v2345_v6, %v1920_v17  ;;  %v2044_v6 = vld [vmem:[%s2895_s14 + $0x20] sm:$0xff]  ;;  %s2726_s14 = smov [#allocation16]  }
 0xe28   :  { %2123 = vmatpush.msra.mxu0 %v2044_v6  ;;  %2243 = vmatpush.msrb.mxu1 %v2044_v6 }
 0xe29   :  { %2235 = vmatmul.msk.f32.gmra.mxu0 %vm447_vm0, %v1925_v33  ;;  %2237 = vmatmul.msk.f32.gmra.mxu1 %vm447_vm0, %v1925_v33 }
 0xe2a   :  { %2124 = vmatpush.msra.mxu0 %v2043_v62  ;;  %2244 = vmatpush.msrb.mxu1 %v2043_v62 }
 0xe2c   :  { %2125 = vmatpush.msra.mxu0 %v2042_v8  ;;  %2245 = vmatpush.msrb.mxu1 %v2042_v8 }
 0xe2e   :  { %2126 = vmatpush.msra.mxu0 %v2041_v5  ;;  %2246 = vmatpush.msrb.mxu1 %v2041_v5 }
 0xe30   :  { %2127 = vmatpush.msra.mxu0 %v2040_v42  ;;  %2247 = vmatpush.msrb.mxu1 %v2040_v42 }
 0xe9e   :  { %v1954_v4 = vpop.f32.mrf.mxu0  ;;  %v1977_v7 = vpop.f32.mrf.mxu1 }
 0xe9f   :  { %v1955_v9 = vadd.f32 %v1954_v4, %v1927_v23  ;;  %v1978_v14 = vadd.f32 %v1977_v7, %v1928_v3 }
 0xea1   :  { %v1983_v20 = vmax.f32 %v1955_v9, 0.0  ;;  %v1984_v51 = vmax.f32 %v1978_v14, 0.0 }
 0xea3   :  { %2006 = vmatmul.f32.vlgmr.msra.gmra.mxu2 %v1983_v20  ;;  %2029 = vmatmul.f32.vlgmr.msrb.gmra.mxu3 %v1984_v51 }
 0xea6   :  { %v1957_v21 = vpop.f32.mrf.mxu0  ;;  %v1980_v38 = vpop.f32.mrf.mxu1 }
 0xea7   :  { %v1958_v40 = vadd.f32 %v1957_v21, %v1927_v23  ;;  %v1981_v43 = vadd.f32 %v1980_v38, %v1928_v3  ;;  %v2349_v38 = vld [vmem:[%s2900_s4] ss:$0 sm:$0xff] }
 0xea9   :  { %v1985_v45 = vmax.f32 %v1958_v40, 0.0  ;;  %v1986_v13 = vmax.f32 %v1981_v43, 0.0 }
 0xeab   :  { %2009 = vmatmul.f32.gmra.mxu2 %v1985_v45  ;;  %2032 = vmatmul.f32.gmra.mxu3 %v1986_v13 }
 0xf26   :  { %v2007_v16 = vpop.f32.mrf.mxu2  ;;  %v2030_v31 = vpop.f32.mrf.mxu3 }
 0xf27   :  { %v2008_v35 = vadd.f32 %v2346_v46, %v2007_v16 }
 0xf29   :  { %v2031_v47 = vadd.f32 %v2030_v31, %v2008_v35 }
 0xf2b   :  { %v2036_v37 = vadd.f32 %v2031_v47, %v3654_v60 }
 0xf2d   :  { %v2049_v48 = vsel %vm447_vm0, %v2036_v37, 0.0 }
 0xf2e   :  { %2050 = vadd.xlane.f32.xlu1 %v2049_v48  ;;  %v2010_v39 = vpop.f32.mrf.mxu2  ;;  %v2033_v44 = vpop.f32.mrf.mxu3 }
 0xf2f   :  { %v2011_v41 = vadd.f32 %v2346_v46, %v2010_v39 }
 0xf31   :  { %v2034_v49 = vadd.f32 %v2033_v44, %v2011_v41 }
 0xf33   :  { %v2037_v50 = vadd.f32 %v2034_v49, %v3659_v22 }
 0xf35   :  { %v2052_v52 = vsel %vm447_vm0, %v2037_v50, 0.0 }
 0xf36   :  { %2053 = vadd.xlane.f32.xlu2 %v2052_v52 }
 0xfa1   :  { %v2051_v53 = vpop.xlane.xlu1 %2050 }
 0xfa2   :  { %v2055_v54 = vmul.f32 %v2051_v53, %v2940_v10 }
 0xfa4   :  { %v2057_v55 = vsub.f32 %v2036_v37, %v2055_v54 }
 0xfa6   :  { %v2059_v60 = vmul.f32 %v2057_v55, %v2057_v55 }
 0xfa8   :  { %v2061_v56 = vsel %vm447_vm0, %v2059_v60, 0.0 }
 0xfa9   :  { %v2054_v61 = vpop.xlane.xlu2 %2053  ;;  %2062 = vadd.xlane.f32.xlu0 %v2061_v56 }
 0xfaa   :  { %v2056_v57 = vmul.f32 %v2054_v61, %v2940_v10 }
 0xfac   :  { %v3744_v11 = vsub.f32 %v2037_v50, %v2056_v57 }
 0xfae   :  { %v2060_v22 = vmul.f32 %v3744_v11, %v3744_v11 }
 0xfb0   :  { %v2064_v24 = vsel %vm447_vm0, %v2060_v22, 0.0 }
 0xfb1   :  { %2065 = vadd.xlane.f32.xlu1 %v2064_v24 }
0x101c   :  { %v2063_v58 = vpop.xlane.xlu0 %2062 }
0x101d   :  { %v2067_v1 = vmul.f32 %v2063_v58, %v2940_v10 }
0x101f   :  { %v2069_v59 = vadd.f32 1e-05, %v2067_v1 }
0x1021   :  { %2384 = vrsqrt.f32 %v2069_v59  ;;  %vm2077_vm12 = vweird.f32 %v2069_v59 }
0x1024   :  { %v2066_v29 = vpop.xlane.xlu1 %2065 }
0x1025   :  { %v2068_v28 = vmul.f32 %v2066_v29, %v2940_v10  ;;  %v2348_v10 = vld [vmem:[%s2890_s20] ss:$0 sm:$0xff]  ;;  %s2141_s20 = sshll.u32 %s2726_s14, 4  ;;  %s2142_s20 = int_to_ptr.vmem [resolvable:$true] %s2141_s20 }
0x1027   :  { %v2385_v27 = vpop.eup %2384  ;;  %v2070_v26 = vadd.f32 1e-05, %v2068_v28 }
0x1028   :  { %v2072_v32 = vmul.f32 %v2385_v27, %v2069_v59  ;;  %vm2078_vm11 = vweird.f32 %v2385_v27 }
0x1029   :  { %2386 = vrsqrt.f32 %v2070_v26  ;;  %vm2079_vm13 = vmor %vm2077_vm12, %vm2078_vm11  ;;  %vm2087_vm15 = vweird.f32 %v2070_v26 }
0x102a   :  { %v2073_v18 = vmul.f32 %v2385_v27, %v2072_v32 }
0x102c   :  { %v2074_v17 = vmul.f32 0.5, %v2073_v18 }
0x102e   :  { %v2075_v33 = vsub.f32 1.5, %v2074_v17 }
0x102f   :  { %v2387_v36 = vpop.eup %2386 }
0x1030   :  { %v2076_v30 = vmul.f32 %v2385_v27, %v2075_v33  ;;  %v2082_v0 = vmul.f32 %v2387_v36, %v2070_v26  ;;  %vm2088_vm14 = vweird.f32 %v2387_v36 }
0x1031   :  { %vm2089_vm1 = vmor %vm2087_vm15, %vm2088_vm14 }
0x1032   :  { %v2080_v15 = vsel %vm2079_vm13, %v2385_v27, %v2076_v30  ;;  %v2083_v34 = vmul.f32 %v2387_v36, %v2082_v0 }
0x1033   :  { %v2091_v19 = vmul.f32 %v2080_v15, %v2057_v55 }
0x1034   :  { %v2084_v23 = vmul.f32 0.5, %v2083_v34 }
0x1035   :  { %v2096_v3 = vmul.f32 %v2347_v63, %v2091_v19 }
0x1036   :  { %v2085_v4 = vsub.f32 1.5, %v2084_v23 }
0x1037   :  { %v2101_v7 = vadd.f32 %v2348_v10, %v2096_v3 }
0x1038   :  { %v2086_v9 = vmul.f32 %v2387_v36, %v2085_v4 }
0x1039   :  { %2238 = vmatmul.msk.f32.vlgmr.msra.gmra.mxu0 %vm447_vm0, %v2101_v7 }
0x103a   :  { %v2090_v14 = vsel %vm2089_vm1, %v2387_v36, %v2086_v9 }
0x103b   :  { %v2092_v20 = vmul.f32 %v2090_v14, %v3744_v11 }
0x103d   :  { %v2097_v51 = vmul.f32 %v2347_v63, %v2092_v20 }
0x103f   :  { %v2102_v21 = vadd.f32 %v2348_v10, %v2097_v51 }
0x1041   :  { %2239 = vmatmul.msk.f32.vlgmr.msrb.gmra.mxu1 %vm447_vm0, %v2102_v21 }
0x10b6   :  { %v2129_v40 = vpop.f32.mrf.mxu0 }
0x10b7   :  { %v2130_v43 = vadd.f32 %v2349_v38, %v2129_v40 }
0x10b9   :  { %2135 = vst [vmem:[#allocation16] sm:$0xff] %v2130_v43 }
0x10be   :  { %v2132_v45 = vpop.f32.mrf.mxu1 }
0x10bf   :  { %v2133_v13 = vadd.f32 %v2349_v38, %v2132_v45 }
0x10c1   :  { %2136 = vst [vmem:[#allocation16 + $0x8] sm:$0xff] %v2133_v13 }
0x10c2   :  { %2667 = shalt.err (!%p2664_p2)
}
0x10c3   :  { %2149 = dma.vmem_to_hbm [thread:$0]  %s2142_s20, 256, %s2144_s10, [#allocation4], %s2718_s30, %s2718_s30, %s2719_s2  }
0x10c4   :  { %2678 = dma.done.wait [#allocation4], 256  }
0x10c5   :  { %2679 = vsyncadd [#allocation4], 4294967040 }
0x10c6   :  { %2154 = vsyncpa [#allocation3], 1 }
0x10c7   :  { %2155 = vsyncpa [#allocation6], 1 }
0x10c8   :  { %2156 = vsyncpa [#allocation9], 1 }
0x10c9   :  { %2157 = vsyncpa [#allocation12], 1 }
0x10ca   :  { %2158 = vsyncpa [#allocation15], 1 }
0x10cb   :  { %2159 = vsyncpa [#allocation4], 1 }

</bundles_post_ra>
